<compile_context>
chip_gen: v6e
topology: v6e:2x2x1
jax: 0.10.0
libtpu: 0.0.40
codegen_flags: <defaults>
</compile_context>

<pallas_src>
import jax
import jax.numpy as jnp
from jax.experimental import pallas as pl
from jax.experimental.pallas import tpu as pltpu

LANE = 128
SUBLANE = 8


def _round_up(x, m):
    return (x + m - 1) // m * m


def basic_block_kernel(x_ref, w_ref, p_ref, o_ref, pad_ref):
    # x_ref:   (1, H, Wk, C)  f32 NHWC input; C padded to 128, Wk padded to 8
    # w_ref:   (3, C, 3*C)    bf16 folded weights:
    #                         w_ref[kw, ci, kh*C + co] = conv_w[kh, kw, ci, co] * bn_scale[co]
    # p_ref:   (8, C)         f32 per-channel params:
    #                         row0=bias0(move0), row1=bn_shift+bias1(move1),
    #                         row2=prelu_w, row3=bias2(move2)
    # o_ref:   (1, H, Wk, C)  f32
    # pad_ref: (H+2, Wp, C)   bf16 zero-padded, move0-shifted conv input scratch
    H = x_ref.shape[1]
    Wk = x_ref.shape[2]
    C = x_ref.shape[3]

    # Re-zero the whole scratch every step (cheap) so no cross-step state is needed
    # and the grid axis can legally run "parallel" across TensorCores.
    pad_ref[...] = jnp.zeros_like(pad_ref)

    x = x_ref[0]                                         # (H, Wk, C) f32 residual
    bias0 = p_ref[0:1, :].reshape(1, 1, C)
    # move0, then cast the conv operand to bf16 (MXU bf16 path, f32 accumulation).
    pad_ref[1:H + 1, 1:Wk + 1, :] = (x + bias0).astype(pad_ref.dtype)

    # conv3x3 without im2col:
    #   A_kw[r, w, ci]        = pad[r, w + kw, ci]                      (3 strided loads)
    #   R_kw[r, w, kh*C + co] = sum_ci A_kw[r, w, ci] * Wfold[kh, kw, ci, co]
    #   conv[h, w, co]        = sum_{kw, kh} R_kw[h + kh, w, kh*C + co]
    # The kh shift is a leading-axis slice of a value (free) and kh*C is lane-aligned,
    # so only the 3 kw-shifted input loads touch a misaligned sublane window.
    conv = None
    for kw in range(3):
        a = pad_ref[:, kw:kw + Wk, :].reshape((H + 2) * Wk, C)           # bf16
        r = jnp.dot(a, w_ref[kw], preferred_element_type=jnp.float32)    # ((H+2)*Wk, 3C)
        r = r.reshape(H + 2, Wk, 3 * C)
        for kh in range(3):
            term = r[kh:kh + H, :, kh * C:(kh + 1) * C]                  # (H, Wk, C) f32
            conv = term if conv is None else conv + term

    # Fused epilogue: BN scale already folded into the weights; BN shift + move1 bias
    # folded into one constant; residual add; per-channel PReLU; move2.
    shift1 = p_ref[1:2, :].reshape(1, 1, C)
    prelu_w = p_ref[2:3, :].reshape(1, 1, C)
    bias2 = p_ref[3:4, :].reshape(1, 1, C)

    y = conv + shift1 + x
    y = jnp.where(y >= 0, y, prelu_w * y)
    y = y + bias2
    o_ref[0] = y.astype(o_ref.dtype)


def basic_block_forward(x_nchw, params):
    """x_nchw: (N, Cin, H, W) float32. Returns (N, Cout, H, W) float32."""
    # TODO(synk): accept NHWC, lane-padded (and ideally bf16) activations directly to
    # remove this relayout + channel-pad HBM pass; the layer is HBM-bound on v6e/v7x.
    x = jnp.transpose(x_nchw, (0, 2, 3, 1)).astype(jnp.float32)   # NCHW -> NHWC
    N, H, W, Cin = x.shape
    w = params["conv_w"]                                          # (3, 3, Cin, Cout) HWIO
    Cout = w.shape[-1]
    # downsample=None / stride=1 -> residual is x itself, so Cin must equal Cout.
    assert Cin == Cout, "residual add requires inplanes == planes when downsample=None"

    Cp = _round_up(Cin, LANE)        # lane-dense channels
    Wk = _round_up(W, SUBLANE)       # sublane-aligned width; the extra zero columns
                                     # behave exactly like the conv's own zero padding
    x = jnp.pad(x, ((0, 0), (0, 0), (0, Wk - W), (0, Cp - Cin)))

    eps = 1e-5
    bn_scale = params["gamma"] / jnp.sqrt(params["running_var"] + eps)
    bn_shift = params["beta"] - params["running_mean"] * bn_scale
    shift1 = bn_shift + params["bias1"]                           # fold BN shift + move1

    # Fold bn_scale into the conv weights in f32, then reshape HWIO ->
    # (kw, ci, kh*Cp + co) so each kw tap column is one (Cp, 3*Cp) matmul RHS.
    wf = w.astype(jnp.float32) * bn_scale.reshape(1, 1, 1, Cout)
    wf = jnp.pad(wf, ((0, 0), (0, 0), (0, Cp - Cin), (0, Cp - Cout)))
    w_big = jnp.transpose(wf, (1, 2, 0, 3)).reshape(3, Cp, 3 * Cp).astype(jnp.bfloat16)

    def row(v):
        v = jnp.asarray(v, jnp.float32).reshape(-1)
        return jnp.pad(v, (0, Cp - v.shape[0]))

    # Stack the per-channel epilogue params into one (8, Cp) block (single DMA/step).
    p = jnp.zeros((8, Cp), jnp.float32)
    p = p.at[0].set(row(params["bias0"]))
    p = p.at[1].set(row(shift1))
    p = p.at[2].set(row(params["prelu_w"]))
    p = p.at[3].set(row(params["bias2"]))

    Wp = Wk + SUBLANE                                             # padded scratch width
    xb = H * Wk * Cp * 4                                          # one f32 act block
    wb = 3 * Cp * 3 * Cp * 2                                      # folded bf16 weights
    sb = (H + 2) * Wp * Cp * 2                                    # padded-input scratch
    tb = (H + 2) * Wk * 3 * Cp * 4 + 2 * H * Wk * Cp * 4          # in-kernel f32 temps
    need = 2 * xb + 2 * xb + 2 * wb + 2 * 8 * Cp * 4 + sb + tb    # double-buffered blocks
    vmem_limit = int(min(96 * 1024 * 1024, max(32 * 1024 * 1024, 2 * need)))

    out_nhwc = pl.pallas_call(
        basic_block_kernel,
        out_shape=jax.ShapeDtypeStruct((N, H, Wk, Cp), jnp.float32),
        grid_spec=pltpu.PrefetchScalarGridSpec(
            num_scalar_prefetch=0,
            grid=(N,),
            in_specs=[
                pl.BlockSpec((1, H, Wk, Cp), lambda n: (n, 0, 0, 0)),   # x
                # TODO(synk): single-buffer this constant-index weight block
                # (pipeline_mode=pl.Buffered(1)) once Cp grows; negligible at Cp=128.
                pl.BlockSpec((3, Cp, 3 * Cp), lambda n: (0, 0, 0)),     # folded weights
                pl.BlockSpec((8, Cp), lambda n: (0, 0)),                # per-channel params
            ],
            out_specs=pl.BlockSpec((1, H, Wk, Cp), lambda n: (n, 0, 0, 0)),
            scratch_shapes=[pltpu.VMEM((H + 2, Wp, Cp), jnp.bfloat16)],
        ),
        # Scratch is re-initialized every step, so the batch axis is safe to shard
        # across TensorCores (v7x has 2 TCs; neutral on v5e/v6e).
        # TODO(synk): for real ResNet feature maps add a row-tiled grid axis with a
        # +/-1-row halo and size the blocks for v7x's 64 MiB VMEM.
        compiler_params=pltpu.CompilerParams(
            dimension_semantics=("parallel",),
            vmem_limit_bytes=vmem_limit),
    )(x, w_big, p)

    return jnp.transpose(out_nhwc[:, :, :W, :Cout], (0, 3, 1, 2))  # NHWC -> NCHW


def reference_forward(x_nchw, params):
    """Pure-JAX (f32) reference with the same NHWC math, for a sanity check."""
    x = jnp.transpose(x_nchw, (0, 2, 3, 1))
    b = lambda v: v.reshape(1, 1, 1, -1)
    out = x + b(params["bias0"])
    out = jax.lax.conv_general_dilated(
        out, params["conv_w"], window_strides=(1, 1), padding="SAME",
        dimension_numbers=("NHWC", "HWIO", "NHWC"))
    scale = params["gamma"] / jnp.sqrt(params["running_var"] + 1e-5)
    shift = params["beta"] - params["running_mean"] * scale
    out = out * b(scale) + b(shift)
    out = out + x
    out = out + b(params["bias1"])
    out = jnp.where(out >= 0, out, b(params["prelu_w"]) * out)
    out = out + b(params["bias2"])
    return jnp.transpose(out, (0, 3, 1, 2))


def make_params(key, inplanes, planes):
    ks = jax.random.split(key, 8)
    # Deterministic synthetic init (the module's __init__ gives zero biases and 0.25
    # PReLU weights; use small non-trivial values so the test exercises every path).
    return {
        "bias0": 0.05 * jax.random.normal(ks[0], (inplanes,), jnp.float32),
        "conv_w": 0.1 * jax.random.normal(ks[1], (3, 3, inplanes, planes), jnp.float32),
        "gamma": 1.0 + 0.1 * jax.random.normal(ks[2], (planes,), jnp.float32),
        "beta": 0.05 * jax.random.normal(ks[3], (planes,), jnp.float32),
        "running_mean": 0.1 * jax.random.normal(ks[4], (planes,), jnp.float32),
        "running_var": 1.0 + 0.1 * jnp.abs(jax.random.normal(ks[5], (planes,), jnp.float32)),
        "bias1": 0.05 * jax.random.normal(ks[6], (planes,), jnp.float32),
        "prelu_w": jnp.full((planes,), 0.25, jnp.float32),
        "bias2": 0.05 * jax.random.normal(ks[7], (planes,), jnp.float32),
    }


if __name__ == "__main__":
    # TODO(synk): BatchNorm2d is implemented with inference (running-stats) semantics;
    # PyTorch training-mode batch statistics would need a cross-batch reduction pass.
    key = jax.random.PRNGKey(0)
    kx, kp = jax.random.split(key)
    N, C, H, W = 2, 4, 16, 16            # inplanes = planes = 4, stride = 1
    x = jax.random.normal(kx, (N, C, H, W), jnp.float32)
    params = make_params(kp, C, C)

    out = basic_block_forward(x, params)
    out = jax.block_until_ready(out)

    ref = jax.block_until_ready(reference_forward(x, params))
    assert out.shape == (N, C, H, W), out.shape
    assert jnp.all(jnp.isfinite(out))
    # bf16 conv operands (f32 accumulation) vs. the f32 reference -> loose tolerance.
    assert jnp.allclose(out, ref, atol=2e-2, rtol=2e-2), float(jnp.max(jnp.abs(out - ref)))

    print("KERNEL_OK")
</pallas_src>

<mosaic_0001>
module attributes {stable_mosaic.version = 11 : i64} {
  func.func @basic_block_kernel(%arg0: i32, %arg1: memref<1x16x16x128xf32, #tpu.memory_space<vmem>>, %arg2: memref<3x128x384xbf16, #tpu.memory_space<vmem>>, %arg3: memref<8x128xf32, #tpu.memory_space<vmem>>, %arg4: memref<1x16x16x128xf32, #tpu.memory_space<vmem>>, %arg5: memref<18x24x128xbf16, #tpu.memory_space<vmem>>) attributes {dimension_semantics = [#tpu.dimension_semantics<parallel>], iteration_bounds = array<i64: 2>, scalar_prefetch = 0 : i64, scratch_operands = 1 : i64, tpu.core_type = #tpu.core_type<tc>, window_params = [{transform_indices = @transform_0, window_bounds = array<i64: 1, 16, 16, 128>}, {pipeline_mode = #tpu.pipeline_mode<synchronous>, transform_indices = @transform_1, window_bounds = array<i64: 3, 128, 384>}, {pipeline_mode = #tpu.pipeline_mode<synchronous>, transform_indices = @transform_2, window_bounds = array<i64: 8, 128>}, {transform_indices = @transform_3, window_bounds = array<i64: 1, 16, 16, 128>}]} {
    %cst = arith.constant 0.000000e+00 : bf16
    %0 = vector.broadcast %cst : bf16 to vector<18x24x128xbf16>
    %c0 = arith.constant 0 : index
    %c0_0 = arith.constant 0 : index
    %c0_1 = arith.constant 0 : index
    %1 = vector.load %arg5[%c0, %c0_0, %c0_1] : memref<18x24x128xbf16, #tpu.memory_space<vmem>>, vector<18x24x128xbf16>
    tpu.vector_store %arg5[%c0, %c0_0, %c0_1], %0 {strides = array<i32>} : memref<18x24x128xbf16, #tpu.memory_space<vmem>>, vector<18x24x128xbf16>,
    %c0_2 = arith.constant 0 : index
    %c0_3 = arith.constant 0 : index
    %c0_4 = arith.constant 0 : index
    %c0_5 = arith.constant 0 : index
    %2 = vector.load %arg1[%c0_2, %c0_3, %c0_4, %c0_5] : memref<1x16x16x128xf32, #tpu.memory_space<vmem>>, vector<1x16x16x128xf32>
    %3 = vector.shape_cast %2 : vector<1x16x16x128xf32> to vector<16x16x128xf32>
    %c0_6 = arith.constant 0 : index
    %c0_7 = arith.constant 0 : index
    %4 = vector.load %arg3[%c0_6, %c0_7] : memref<8x128xf32, #tpu.memory_space<vmem>>, vector<1x128xf32>
    %5 = vector.shape_cast %4 : vector<1x128xf32> to vector<1x1x128xf32>
    %6 = vector.broadcast %5 : vector<1x1x128xf32> to vector<16x16x128xf32>
    %7 = arith.addf %3, %6 : vector<16x16x128xf32>
    %8 = arith.truncf %7 : vector<16x16x128xf32> to vector<16x16x128xbf16>
    %c1 = arith.constant 1 : index
    %c1_8 = arith.constant 1 : index
    %c0_9 = arith.constant 0 : index
    %9 = vector.load %arg5[%c1, %c1_8, %c0_9] : memref<18x24x128xbf16, #tpu.memory_space<vmem>>, vector<16x16x128xbf16>
    tpu.vector_store %arg5[%c1, %c1_8, %c0_9], %8 {strides = array<i32>} : memref<18x24x128xbf16, #tpu.memory_space<vmem>>, vector<16x16x128xbf16>,
    %c0_10 = arith.constant 0 : index
    %c0_11 = arith.constant 0 : index
    %c0_12 = arith.constant 0 : index
    %10 = vector.load %arg5[%c0_10, %c0_11, %c0_12] : memref<18x24x128xbf16, #tpu.memory_space<vmem>>, vector<18x16x128xbf16>
    %11 = vector.shape_cast %10 : vector<18x16x128xbf16> to vector<288x128xbf16>
    %c0_13 = arith.constant 0 : index
    %c0_14 = arith.constant 0 : index
    %c0_15 = arith.constant 0 : index
    %12 = vector.load %arg2[%c0_13, %c0_14, %c0_15] : memref<3x128x384xbf16, #tpu.memory_space<vmem>>, vector<1x128x384xbf16>
    %13 = vector.shape_cast %12 : vector<1x128x384xbf16> to vector<128x384xbf16>
    %cst_16 = arith.constant dense<0.000000e+00> : vector<288x384xf32>
    %14 = tpu.matmul %11, %13, %cst_16 {dimension_numbers = #tpu.dot_dimension_numbers<[1], [0], [0], [1], [0, 0, 1, 1], [], []>} : vector<288x128xbf16>, vector<128x384xbf16>, vector<288x384xf32> -> vector<288x384xf32>
    %15 = vector.shape_cast %14 : vector<288x384xf32> to vector<18x16x384xf32>
    %16 = vector.extract_strided_slice %15 {offsets = [0, 0, 0], sizes = [16, 16, 128], strides = [1, 1, 1]} : vector<18x16x384xf32> to vector<16x16x128xf32>
    %17 = vector.extract_strided_slice %15 {offsets = [1, 0, 128], sizes = [16, 16, 128], strides = [1, 1, 1]} : vector<18x16x384xf32> to vector<16x16x128xf32>
    %18 = arith.addf %16, %17 : vector<16x16x128xf32>
    %19 = vector.extract_strided_slice %15 {offsets = [2, 0, 256], sizes = [16, 16, 128], strides = [1, 1, 1]} : vector<18x16x384xf32> to vector<16x16x128xf32>
    %20 = arith.addf %18, %19 : vector<16x16x128xf32>
    %c0_17 = arith.constant 0 : index
    %c1_18 = arith.constant 1 : index
    %c0_19 = arith.constant 0 : index
    %21 = vector.load %arg5[%c0_17, %c1_18, %c0_19] : memref<18x24x128xbf16, #tpu.memory_space<vmem>>, vector<18x16x128xbf16>
    %22 = vector.shape_cast %21 : vector<18x16x128xbf16> to vector<288x128xbf16>
    %c1_20 = arith.constant 1 : index
    %c0_21 = arith.constant 0 : index
    %c0_22 = arith.constant 0 : index
    %23 = vector.load %arg2[%c1_20, %c0_21, %c0_22] : memref<3x128x384xbf16, #tpu.memory_space<vmem>>, vector<1x128x384xbf16>
    %24 = vector.shape_cast %23 : vector<1x128x384xbf16> to vector<128x384xbf16>
    %cst_23 = arith.constant dense<0.000000e+00> : vector<288x384xf32>
    %25 = tpu.matmul %22, %24, %cst_23 {dimension_numbers = #tpu.dot_dimension_numbers<[1], [0], [0], [1], [0, 0, 1, 1], [], []>} : vector<288x128xbf16>, vector<128x384xbf16>, vector<288x384xf32> -> vector<288x384xf32>
    %26 = vector.shape_cast %25 : vector<288x384xf32> to vector<18x16x384xf32>
    %27 = vector.extract_strided_slice %26 {offsets = [0, 0, 0], sizes = [16, 16, 128], strides = [1, 1, 1]} : vector<18x16x384xf32> to vector<16x16x128xf32>
    %28 = arith.addf %20, %27 : vector<16x16x128xf32>
    %29 = vector.extract_strided_slice %26 {offsets = [1, 0, 128], sizes = [16, 16, 128], strides = [1, 1, 1]} : vector<18x16x384xf32> to vector<16x16x128xf32>
    %30 = arith.addf %28, %29 : vector<16x16x128xf32>
    %31 = vector.extract_strided_slice %26 {offsets = [2, 0, 256], sizes = [16, 16, 128], strides = [1, 1, 1]} : vector<18x16x384xf32> to vector<16x16x128xf32>
    %32 = arith.addf %30, %31 : vector<16x16x128xf32>
    %c0_24 = arith.constant 0 : index
    %c2 = arith.constant 2 : index
    %c0_25 = arith.constant 0 : index
    %33 = vector.load %arg5[%c0_24, %c2, %c0_25] : memref<18x24x128xbf16, #tpu.memory_space<vmem>>, vector<18x16x128xbf16>
    %34 = vector.shape_cast %33 : vector<18x16x128xbf16> to vector<288x128xbf16>
    %c2_26 = arith.constant 2 : index
    %c0_27 = arith.constant 0 : index
    %c0_28 = arith.constant 0 : index
    %35 = vector.load %arg2[%c2_26, %c0_27, %c0_28] : memref<3x128x384xbf16, #tpu.memory_space<vmem>>, vector<1x128x384xbf16>
    %36 = vector.shape_cast %35 : vector<1x128x384xbf16> to vector<128x384xbf16>
    %cst_29 = arith.constant dense<0.000000e+00> : vector<288x384xf32>
    %37 = tpu.matmul %34, %36, %cst_29 {dimension_numbers = #tpu.dot_dimension_numbers<[1], [0], [0], [1], [0, 0, 1, 1], [], []>} : vector<288x128xbf16>, vector<128x384xbf16>, vector<288x384xf32> -> vector<288x384xf32>
    %38 = vector.shape_cast %37 : vector<288x384xf32> to vector<18x16x384xf32>
    %39 = vector.extract_strided_slice %38 {offsets = [0, 0, 0], sizes = [16, 16, 128], strides = [1, 1, 1]} : vector<18x16x384xf32> to vector<16x16x128xf32>
    %40 = arith.addf %32, %39 : vector<16x16x128xf32>
    %41 = vector.extract_strided_slice %38 {offsets = [1, 0, 128], sizes = [16, 16, 128], strides = [1, 1, 1]} : vector<18x16x384xf32> to vector<16x16x128xf32>
    %42 = arith.addf %40, %41 : vector<16x16x128xf32>
    %43 = vector.extract_strided_slice %38 {offsets = [2, 0, 256], sizes = [16, 16, 128], strides = [1, 1, 1]} : vector<18x16x384xf32> to vector<16x16x128xf32>
    %44 = arith.addf %42, %43 : vector<16x16x128xf32>
    %c1_30 = arith.constant 1 : index
    %c0_31 = arith.constant 0 : index
    %45 = vector.load %arg3[%c1_30, %c0_31] : memref<8x128xf32, #tpu.memory_space<vmem>>, vector<1x128xf32>
    %46 = vector.shape_cast %45 : vector<1x128xf32> to vector<1x1x128xf32>
    %c2_32 = arith.constant 2 : index
    %c0_33 = arith.constant 0 : index
    %47 = vector.load %arg3[%c2_32, %c0_33] : memref<8x128xf32, #tpu.memory_space<vmem>>, vector<1x128xf32>
    %48 = vector.shape_cast %47 : vector<1x128xf32> to vector<1x1x128xf32>
    %c3 = arith.constant 3 : index
    %c0_34 = arith.constant 0 : index
    %49 = vector.load %arg3[%c3, %c0_34] : memref<8x128xf32, #tpu.memory_space<vmem>>, vector<1x128xf32>
    %50 = vector.shape_cast %49 : vector<1x128xf32> to vector<1x1x128xf32>
    %51 = vector.broadcast %46 : vector<1x1x128xf32> to vector<16x16x128xf32>
    %52 = arith.addf %44, %51 : vector<16x16x128xf32>
    %53 = arith.addf %52, %3 : vector<16x16x128xf32>
    %cst_35 = arith.constant 0.000000e+00 : f32
    %54 = vector.broadcast %cst_35 : f32 to vector<16x16x128xf32>
    %55 = arith.cmpf oge, %53, %54 : vector<16x16x128xf32>
    %56 = vector.broadcast %48 : vector<1x1x128xf32> to vector<16x16x128xf32>
    %57 = arith.mulf %56, %53 : vector<16x16x128xf32>
    %58 = arith.select %55, %53, %57 : vector<16x16x128xi1>, vector<16x16x128xf32>
    %59 = vector.broadcast %50 : vector<1x1x128xf32> to vector<16x16x128xf32>
    %60 = arith.addf %58, %59 : vector<16x16x128xf32>
    %c0_36 = arith.constant 0 : index
    %c0_37 = arith.constant 0 : index
    %c0_38 = arith.constant 0 : index
    %c0_39 = arith.constant 0 : index
    %61 = vector.load %arg4[%c0_36, %c0_37, %c0_38, %c0_39] : memref<1x16x16x128xf32, #tpu.memory_space<vmem>>, vector<1x16x16x128xf32>
    %62 = vector.shape_cast %61 : vector<1x16x16x128xf32> to vector<16x16x128xf32>
    %63 = vector.shape_cast %60 : vector<16x16x128xf32> to vector<1x16x16x128xf32>
    tpu.vector_store %arg4[%c0_36, %c0_37, %c0_38, %c0_39], %63 {strides = array<i32>} : memref<1x16x16x128xf32, #tpu.memory_space<vmem>>, vector<1x16x16x128xf32>,
    return
  }
  func.func @transform_0(%arg0: i32) -> (i32, i32, i32, i32) {
    %c0_i32 = arith.constant 0 : i32
    %c0_i32_0 = arith.constant 0 : i32
    %c0_i32_1 = arith.constant 0 : i32
    %c0_i32_2 = arith.constant 0 : i32
    return %arg0, %c0_i32, %c0_i32_0, %c0_i32_1 : i32, i32, i32, i32
  }
  func.func @transform_1(%arg0: i32) -> (i32, i32, i32) {
    %c0_i32 = arith.constant 0 : i32
    %c0_i32_0 = arith.constant 0 : i32
    %c0_i32_1 = arith.constant 0 : i32
    %c0_i32_2 = arith.constant 0 : i32
    return %c0_i32, %c0_i32_0, %c0_i32_1 : i32, i32, i32
  }
  func.func @transform_2(%arg0: i32) -> (i32, i32) {
    %c0_i32 = arith.constant 0 : i32
    %c0_i32_0 = arith.constant 0 : i32
    %c0_i32_1 = arith.constant 0 : i32
    return %c0_i32, %c0_i32_0 : i32, i32
  }
  func.func @transform_3(%arg0: i32) -> (i32, i32, i32, i32) {
    %c0_i32 = arith.constant 0 : i32
    %c0_i32_0 = arith.constant 0 : i32
    %c0_i32_1 = arith.constant 0 : i32
    %c0_i32_2 = arith.constant 0 : i32
    return %arg0, %c0_i32, %c0_i32_0, %c0_i32_1 : i32, i32, i32, i32
  }
}

</mosaic_0001>

<bundles_post_ra>
// kernel: tpu_custom_call.1
= control target key start
LH: loop header
LB: loop body
LE: loop exit
PB: predicated region body
PF: predicated region fallthrough
CT: control target
= control target key end

     0   :  { %8 = vsyncpa [#allocation4], 0  ;;  %s6785_s0 = inlined_call_operand.hbm [shape: f32[2,16,16,128], index: 0, kind: input, shape index: {}]   ;;  %s6786_s1 = inlined_call_operand.hbm [shape: bf16[3,128,384], index: 1, kind: input, shape index: {}]   ;;  %s6787_s2 = inlined_call_operand.hbm [shape: f32[8,128], index: 2, kind: input, shape index: {}]   ;;  %s6788_s3 = inlined_call_operand.hbm [shape: f32[2,16,16,128], index: 3, kind: output, shape index: {}]  }
   0x1   :  { %10 = vsyncpa [#allocation4 + $0x1], 0 }
   0x2   :  { %11 = vsyncpa [#allocation7], 0 }
   0x3   :  { %12 = vsyncpa [#allocation5], 0 }
   0x4   :  { %14 = vsyncpa [#allocation5 + $0x1], 0  ;;  %s4971_s12 = smov 0   ;;  %s4973_s13 = smov 0  }
   0x5   :  { %s4975_s14 = smov 0   ;;  %s4977_s15 = smov 0  }
   0x6 LB: > { %s4992_s16 = sadd.s32 4294967295, %s4938_s15   ;;  %s4072_s17 = sadd.s32 4294967294, %s4938_s15   ;;  %s4938_s15 = sphi %s4977_s15, %s6839_s15   ;;  %s4934_s14 = sphi %s4975_s14, %s6838_s14   ;;  %s4930_s13 = sphi %s4973_s13, %s6837_s13   ;;  %s4926_s12 = sphi %s4971_s12, %s6836_s12  }
   0x7   : > { %p40_p0 = scmp.ne.s32.totalorder %s4930_s13, %s4926_s12  ;;  %p6789_p1 = scmp.eq.s32.totalorder %s4992_s16, 0 }
   0x8   : > { %p112_p3 = scmp.eq.s32.totalorder %s4072_s17, 1  ;;  %p4073_p5 = scmp.ge.s32.totalorder %s4938_s15, 1 }
   0x9   : > { %p5001_p4 = por %p6789_p1, %p40_p0  ;;  %p119_p7 = scmp.lt.s32.totalorder %s4938_s15, 3 }
   0xa   : > { %p5006_p6 = por %p112_p3, %p40_p0  ;;  %s4940_s21 = smov [#allocation6]  }
   0xb   : > { %s6793_s18 = scalar_select %p5001_p4, 1, 0 }
   0xc   : > { %s6794_s19 = scalar_select %p5006_p6, 1, 0 }
   0xd   : > { %p5011_p8 = pnand %p4073_p5, %p119_p7  ;;  %s131_s22 = sshll.u32 %s4940_s21, 4  ;;  %s132_s22 = int_to_ptr.vmem [resolvable:$true] %s131_s22 }
   0xe   : > { %s4941_s24 = smov [#allocation8]   ;;  %s4801_s26 = scalar_lea.vmem %s132_s22, 9216 }
   0xf   : > { %s6795_s20 = scalar_select %p5011_p8, 1, 0 }
  0x10   : > { %p4566_p9 = pneg %p5011_p8  ;;  %s145_s25 = sshll.u32 %s4941_s24, 4  ;;  %s146_s25 = int_to_ptr.vmem [resolvable:$true] %s145_s25 }
  0x11   : > { %p4802_p13 = scmp.ne.s32.totalorder %s132_s22, %s4801_s26  ;;  %p4809_p5 = scmp.lt.s32.totalorder %s132_s22, %s132_s22 }
  0x12   : > { %p5020_p11 = pnand %p4566_p9, %p6789_p1  ;;  %p4810_p7 = scmp.lt.s32.totalorder %s4801_s26, %s4801_s26 }
  0x14   : > { %p4792_p12 = pneg %p5020_p11  ;;  %p4811_p10 = por %p4810_p7, %p4809_p5 }
  0x16   : > { %p4804_p0 = pnand %p4802_p13, %p4792_p12 }
  0x18   : > { %p4805_p3 = pneg %p4804_p0 }
  0x1a   : > { %p4812_p9 = pnand %p4811_p10, %p4805_p3 }
  0x1c   : > { %4815 = shalt.err (!%p4812_p9)
}
  0x1d   : > { %s4942_s27 = smov 192   ;;  %s4943_s28 = smov 12  }
  0x1e   : > { %4569 = dma.hbm_to_vmem [thread:$0]  (!%p5020_p11), %s6786_s1, 9216, %s132_s22, [#allocation7], %s4942_s27, %s4942_s27, %s4943_s28  }
  0x1f   : > { %s4827_s4 = scalar_lea.vmem %s146_s25, 128  ;;  %p4835_p2 = scmp.lt.s32.totalorder %s146_s25, %s146_s25 }
  0x20   : > { %p4828_p1 = scmp.ne.s32.totalorder %s146_s25, %s4827_s4  ;;  %p4836_p6 = scmp.lt.s32.totalorder %s4827_s4, %s4827_s4 }
  0x22   : > { %p4830_p13 = pnand %p4828_p1, %p4792_p12  ;;  %p4837_p5 = por %p4836_p6, %p4835_p2 }
  0x24   : > { %p4831_p0 = pneg %p4830_p13 }
  0x26   : > { %p4838_p10 = pnand %p4837_p5, %p4831_p0 }
  0x28   : > { %4841 = shalt.err (!%p4838_p10)
}
  0x29   : > { %4572 = dma.hbm_to_vmem [thread:$0]  (!%p5020_p11), %s6787_s2, 128, %s146_s25, [#allocation7]  }
  0x2a   : > { %s5043_s7 = sadd.s32 1, %s4938_s15   ;;  %s27_s8 = sadd.s32 1, %s4934_s14 }
  0x2b   : > { %s24_s9 = ssub.s32 %s4938_s15, %s5043_s7  ;;  %p34_p1 = scmp.ne.s32.totalorder %s4934_s14, %s4930_s13 }
  0x2c   : > { %p25_p2 = scmp.eq.s32.totalorder %s24_s9, 0  ;;  %p35_p6 = scmp.eq.s32.totalorder %s4938_s15, 0 }
  0x2d   : > { %p6797_p12 = scmp.eq.s32.totalorder %s4992_s16, 1  ;;  %p4583_p7 = scmp.lt.s32.totalorder %s4938_s15, 2 }
  0x2e   : > { %s5059_s11 = scalar_select %p25_p2, %s4934_s14, %s27_s8  }
  0x2f   : > { %p5053_p3 = por %p6797_p12, %p34_p1  ;;  %p36_p9 = por %p35_p6, %p34_p1 }
  0x30   : > { %s156_s17 = sand.u32 1, %s4934_s14   ;;  %s4270_s22 = sshll.u32 %s4938_s15, 12 }
  0x31   : > { %s6798_s10 = scalar_select %p5053_p3, 1, 0 }
  0x32   : > { %s4077_s21 = sshll.u32 %s156_s17, 8  ;;  %s5066_s25 = scalar_lea.hbm %s6785_s0, %s4270_s22 }
  0x33   : > { %s160_s26 = scalar_lea.vmem [#allocation3], %s4077_s21  ;;  %p5070_p11 = pnand %p4583_p7, %p36_p9 }
  0x34   : > { %s167_s27 = sshll.u32 %s160_s26, 4  ;;  %s5074_s29 = scalar_lea.sflag [#allocation4], %s156_s17  ;;  %s5068_s27 = int_to_ptr.vmem [resolvable:$true] %s167_s27 }
  0x35   : > { %s4842_s30 = scalar_lea.hbm %s5066_s25, 4096  ;;  %p4844_p0 = pneg %p5070_p11 }
  0x36   : > { %p4843_p13 = scmp.ne.s32.totalorder %s5066_s25, %s4842_s30  ;;  %s4847_s6 = scalar_lea.hbm %s6785_s0, 8192 }
  0x37   : > { %p4848_p1 = scmp.lt.s32.totalorder %s5066_s25, %s6785_s0  ;;  %p4849_p2 = scmp.lt.s32.totalorder %s4847_s6, %s4842_s30 }
  0x38   : > { %p4845_p5 = pnand %p4844_p0, %p4843_p13 }
  0x39   : > { %p4850_p6 = por %p4849_p2, %p4848_p1 }
  0x3a   : > { %p4846_p10 = pneg %p4845_p5 }
  0x3c   : > { %p4851_p12 = pnand %p4850_p6, %p4846_p10 }
  0x3e   : > { %4854 = shalt.err (!%p4851_p12)
}
  0x3f   : > { %s4855_s17 = scalar_lea.vmem %s5068_s27, 4096  ;;  %s4944_s21 = smov [#allocation3]  }
  0x40   : > { %p4856_p7 = scmp.ne.s32.totalorder %s5068_s27, %s4855_s17  ;;  %s4860_s22 = sshll.u32 %s4944_s21, 4  ;;  %s4861_s22 = int_to_ptr.vmem [resolvable:$false] %s4860_s22 }
  0x41   : > { %s4862_s23 = scalar_lea.vmem %s4861_s22, 8192  ;;  %p4863_p5 = scmp.lt.s32.totalorder %s5068_s27, %s4861_s22 }
  0x42   : > { %p4858_p9 = pnand %p4856_p7, %p4844_p0  ;;  %p4864_p3 = scmp.lt.s32.totalorder %s4862_s23, %s4855_s17 }
  0x44   : > { %p4859_p13 = pneg %p4858_p9  ;;  %p4865_p4 = por %p4864_p3, %p4863_p5 }
  0x46   : > { %p4866_p8 = pnand %p4865_p4, %p4859_p13 }
  0x48   : > { %4869 = shalt.err (!%p4866_p8)
}
  0x49   : > { %s4945_s24 = smov 128   ;;  %s4946_s26 = smov 8  }
  0x4a   : > { %4576 = dma.hbm_to_vmem [thread:$0]  (!%p5070_p11), %s5066_s25, 4096, %s5068_s27, %s5074_s29, %s4945_s24, %s4945_s24, %s4946_s26  }
  0x4b   : > { %p6800_p0 = scmp.ne.s32.totalorder %s6795_s20, 0 }
  0x4d   : > { %179 = sbr.rel (%p6800_p0) target bundleno = 665 (0x299), region = 32 }
  0x52   : > { %s5098_s30 = sand.u32 1, %s4930_s13   ;;  %p6801_p4 = scmp.ne.s32.totalorder %s6793_s18, 0 }
  0x53   : > { %s4081_s4 = sshll.u32 %s5098_s30, 8  ;;  %s182_s5 = scalar_lea.sflag [#allocation4], %s5098_s30 }
  0x54   : > { %s5104_s6 = scalar_lea.vmem [#allocation3], %s4081_s4 }
  0x55   : > { %4913 = dma.done.wait (%p6801_p4), %s182_s5, 4096  }
  0x56   : > { %4915 = vsyncadd (%p6801_p4), %s182_s5, 4294963200  ;;  %p6802_p8 = scmp.eq.s32.totalorder %s4992_s16, 0 }
  0x58   : > { %4917 = dma.done.wait (%p6802_p8), [#allocation7], 9344   ;;  %p6803_p3 = pmov %p6802_p8 }
  0x59   : > { %v4947_v0 = vmov 0   ;;  %v4628_v1 = vld [vmem:[#allocation6 + $0xac] ss:$12 sps:$4 sm:$0xff]   ;;  %v4630_v2 = vld [vmem:[#allocation6 + $0xa8] ss:$12 sps:$4 sm:$0xff]   ;;  %vm760_vm1 = vcmask 1043456  }
  0x5a   : > { %4919 = vsyncadd (%p6803_p3), [#allocation7], 4294957952  ;;  %1213 = vmatprep.mubr.bf16.mxu0 %v4947_v0  ;;  %217 = vst [vmem:[#allocation2] sm:$0xf] %v4947_v0  ;;  %1351 = vmatprep.mubr.bf16.mxu1 %v4947_v0  ;;  %v4631_v3 = vld [vmem:[#allocation6 + $0x94] ss:$12 sps:$4 sm:$0xff]  }
  0x5b   : > { %218 = vst [vmem:[#allocation2 + $0x4] sm:$0xf] %v4947_v0  ;;  %219 = vst [vmem:[#allocation2 + $0x8] sm:$0xf] %v4947_v0  ;;  %1181 = vmatprep.subr.bf16.mxu0 %v4628_v1  ;;  %4538 = vmatprep.subr.bf16.mxu1 %v4628_v1  ;;  %v4633_v4 = vld [vmem:[#allocation6 + $0x90] ss:$12 sps:$4 sm:$0xff]  }
  0x5c   : > { %220 = vst [vmem:[#allocation2 + $0xc] sm:$0xf] %v4947_v0  ;;  %221 = vst [vmem:[#allocation2 + $0x10] sm:$0xf] %v4947_v0  ;;  %1182 = vmatpush1.bf16.msra.mxu0 %v4630_v2  ;;  %4546 = vmatpush1.bf16.msra.mxu1 %v4630_v2  ;;  %v4634_v5 = vld [vmem:[#allocation6 + $0x7c] ss:$12 sps:$4 sm:$0xff]  }
  0x5d   : > { %222 = vst [vmem:[#allocation2 + $0x14] sm:$0xf] %v4947_v0  ;;  %223 = vst [vmem:[#allocation2 + $0x18] sm:$0xf] %v4947_v0  ;;  %1183 = vmatprep.subr.bf16.mxu0 %v4631_v3  ;;  %4539 = vmatprep.subr.bf16.mxu1 %v4631_v3  ;;  %v4636_v6 = vld [vmem:[#allocation6 + $0x78] ss:$12 sps:$4 sm:$0xff]  }
  0x5e   : > { %224 = vst [vmem:[#allocation2 + $0x1c] sm:$0xf] %v4947_v0  ;;  %225 = vst [vmem:[#allocation2 + $0x20] sm:$0xf] %v4947_v0  ;;  %v4637_v7 = vld [vmem:[#allocation6 + $0x64] ss:$12 sps:$4 sm:$0xff]  }
  0x5f   : > { %226 = vst [vmem:[#allocation2 + $0x24] sm:$0xf] %v4947_v0  ;;  %227 = vst [vmem:[#allocation2 + $0x28] sm:$0xf] %v4947_v0  ;;  %vm436_vm0 = vsmask.f32 256 }
  0x60   : > { %228 = vst [vmem:[#allocation2 + $0x2c] sm:$0xf] %v4947_v0  ;;  %229 = vst [vmem:[#allocation2 + $0x30] sm:$0xf] %v4947_v0  ;;  %1184 = vmatpush1.bf16.msra.mxu0 %v4633_v4  ;;  %4547 = vmatpush1.bf16.msra.mxu1 %v4633_v4  ;;  %v4639_v8 = vld [vmem:[#allocation6 + $0x60] ss:$12 sps:$4 sm:$0xff]  }
  0x61   : > { %230 = vst [vmem:[#allocation2 + $0x34] sm:$0xf] %v4947_v0  ;;  %231 = vst [vmem:[#allocation2 + $0x38] sm:$0xf] %v4947_v0  ;;  %1185 = vmatprep.subr.bf16.mxu0 %v4634_v5  ;;  %4540 = vmatprep.subr.bf16.mxu1 %v4634_v5  ;;  %v297_v9 = vld [vmem:[%s5104_s6 + $0xd0] sm:$0xff]  ;;  %v298_v11 = vld [vmem:[%s5104_s6 + $0xd8] sm:$0xff] }
  0x62   : > { %232 = vst [vmem:[#allocation2 + $0x3c] sm:$0xf] %v4947_v0  ;;  %233 = vst [vmem:[#allocation2 + $0x40] sm:$0xf] %v4947_v0  ;;  %v4640_v10 = vld [vmem:[#allocation6 + $0x4c] ss:$12 sps:$4 sm:$0xff]  }
  0x63   : > { %234 = vst [vmem:[#allocation2 + $0x44] sm:$0xf] %v4947_v0  ;;  %235 = vst [vmem:[#allocation2 + $0x48] sm:$0xf] %v4947_v0  ;;  %v5172_v12 = vld [vmem:[#allocation8] ss:$0 sm:$0xff] }
  0x64   : > { %236 = vst [vmem:[#allocation2 + $0x4c] sm:$0xf] %v4947_v0  ;;  %237 = vst [vmem:[#allocation2 + $0x50] sm:$0xf] %v4947_v0  ;;  %1186 = vmatpush1.bf16.msra.mxu0 %v4636_v6  ;;  %4548 = vmatpush1.bf16.msra.mxu1 %v4636_v6  ;;  %v334_v13 = vadd.f32 %v5172_v12, %v297_v9  ;;  %v335_v14 = vadd.f32 %v5172_v12, %v298_v11  ;;  %vm437_vm2 = vsmask.f32 4368 }
  0x65   : > { %238 = vst [vmem:[#allocation2 + $0x54] sm:$0xf] %v4947_v0  ;;  %239 = vst [vmem:[#allocation2 + $0x58] sm:$0xf] %v4947_v0  ;;  %1187 = vmatprep.subr.bf16.mxu0 %v4637_v7  ;;  %4541 = vmatprep.subr.bf16.mxu1 %v4637_v7  ;;  %v4642_v15 = vld [vmem:[#allocation6 + $0x48] ss:$12 sps:$4 sm:$0xff]  }
  0x66   : > { %240 = vst [vmem:[#allocation2 + $0x5c] sm:$0xf] %v4947_v0  ;;  %241 = vst [vmem:[#allocation2 + $0x60] sm:$0xf] %v4947_v0  ;;  %v4297_v16 = vpack.c.bf16 %v334_v13, %v334_v13  ;;  %v4298_v17 = vpack.c.bf16 %v335_v14, %v335_v14  ;;  %v4643_v18 = vld [vmem:[#allocation6 + $0x34] ss:$12 sps:$4 sm:$0xff]  }
  0x67   : > { %242 = vst [vmem:[#allocation2 + $0x64] sm:$0xf] %v4947_v0  ;;  %243 = vst [vmem:[#allocation2 + $0x68] sm:$0xf] %v4947_v0  ;;  %vm761_vm3 = vsmask.f32 7938 }
  0x68   : > { %244 = vst [vmem:[#allocation2 + $0x6c] sm:$0xf] %v4947_v0  ;;  %245 = vst [vmem:[#allocation2 + $0x70] sm:$0xf] %v4947_v0  ;;  %1188 = vmatpush1.bf16.msra.mxu0 %v4639_v8  ;;  %4549 = vmatpush1.bf16.msra.mxu1 %v4639_v8  ;;  %v271_v19 = vld [vmem:[%s5104_s6] sm:$0xff]  ;;  %v272_v20 = vld [vmem:[%s5104_s6 + $0x8] sm:$0xff] }
  0x69   : > { %246 = vst [vmem:[#allocation2 + $0x74] sm:$0xf] %v4947_v0  ;;  %247 = vst [vmem:[#allocation2 + $0x78] sm:$0xf] %v4947_v0  ;;  %1189 = vmatprep.subr.bf16.mxu0 %v4640_v10  ;;  %4542 = vmatprep.subr.bf16.mxu1 %v4640_v10  ;;  %v661_v22 = vshrl.u32 %v4297_v16, 16  ;;  %v664_v23 = vshll.u32 %v4297_v16, 16  ;;  %v308_v29 = vadd.f32 %v5172_v12, %v271_v19 }
  0x6a   : > { %248 = vst [vmem:[#allocation2 + $0x7c] sm:$0xf] %v4947_v0  ;;  %249 = vst [vmem:[#allocation2 + $0x80] sm:$0xf] %v4947_v0  ;;  %v669_v24 = vshrl.u32 %v4298_v17, 16  ;;  %v672_v25 = vshll.u32 %v4298_v17, 16  ;;  %v309_v30 = vadd.f32 %v5172_v12, %v272_v20 }
  0x6b   : > { %250 = vst [vmem:[#allocation2 + $0x84] sm:$0xf] %v4947_v0  ;;  %251 = vst [vmem:[#allocation2 + $0x88] sm:$0xf] %v4947_v0  ;;  %v299_v26 = vld [vmem:[%s5104_s6 + $0xe0] sm:$0xff]  ;;  %v300_v27 = vld [vmem:[%s5104_s6 + $0xe8] sm:$0xff]  ;;  %v4271_v38 = vpack.c.bf16 %v308_v29, %v308_v29 }
  0x6c   : > { %252 = vst [vmem:[#allocation2 + $0x8c] sm:$0xf] %v4947_v0  ;;  %253 = vst [vmem:[#allocation2 + $0x90] sm:$0xf] %v4947_v0  ;;  %v4645_v28 = vld [vmem:[#allocation6 + $0x30] ss:$12 sps:$4 sm:$0xff]   ;;  %v336_v31 = vadd.f32 %v5172_v12, %v299_v26  ;;  %1190 = vmatpush1.bf16.msra.mxu0 %v4642_v15  ;;  %4550 = vmatpush1.bf16.msra.mxu1 %v4642_v15  ;;  %v337_v36 = vadd.f32 %v5172_v12, %v300_v27 }
  0x6d   : > { %254 = vst [vmem:[#allocation2 + $0x94] sm:$0xf] %v4947_v0  ;;  %255 = vst [vmem:[#allocation2 + $0x98] sm:$0xf] %v4947_v0  ;;  %v4646_v32 = vld [vmem:[#allocation6 + $0x1c] ss:$12 sps:$4 sm:$0xff]   ;;  %1191 = vmatprep.subr.bf16.mxu0 %v4643_v18  ;;  %4543 = vmatprep.subr.bf16.mxu1 %v4643_v18  ;;  %v4272_v39 = vpack.c.bf16 %v309_v30, %v309_v30 }
  0x6e   : > { %256 = vst [vmem:[#allocation2 + $0x9c] sm:$0xf] %v4947_v0  ;;  %257 = vst [vmem:[#allocation2 + $0xa0] sm:$0xf] %v4947_v0  ;;  %v663_v33 = vrot.slane %v661_v22, 7  ;;  %v5188_v34 = vrot.slane %v669_v24, 7  ;;  %v4299_v40 = vpack.c.bf16 %v336_v31, %v336_v31  ;;  %v4300_v54 = vpack.c.bf16 %v337_v36, %v337_v36 }
  0x6f   : > { %258 = vst [vmem:[#allocation2 + $0xa4] sm:$0xf] %v4947_v0  ;;  %259 = vst [vmem:[#allocation2 + $0xa8] sm:$0xf] %v4947_v0  ;;  %v440_v44 = vshrl.u32 %v4271_v38, 16  ;;  %v443_v45 = vshll.u32 %v4271_v38, 16 }
  0x70   : > { %260 = vst [vmem:[#allocation2 + $0xac] sm:$0xf] %v4947_v0  ;;  %261 = vst [vmem:[#allocation2 + $0xb0] sm:$0xf] %v4947_v0  ;;  %v666_v41 = vor.u32 %v664_v23, %v663_v33  ;;  %v667_v42 = vrot.slane %v663_v33, 4  ;;  %v674_v43 = vor.u32 %v672_v25, %v5188_v34  ;;  %v448_v46 = vshrl.u32 %v4272_v39, 16  ;;  %1192 = vmatpush1.bf16.msra.mxu0 %v4645_v28 }
  0x71   : > { %262 = vst [vmem:[#allocation2 + $0xb4] sm:$0xf] %v4947_v0  ;;  %263 = vst [vmem:[#allocation2 + $0xb8] sm:$0xf] %v4947_v0  ;;  %v451_v47 = vshll.u32 %v4272_v39, 16  ;;  %v273_v48 = vld [vmem:[%s5104_s6 + $0x10] sm:$0xff]  ;;  %4551 = vmatpush1.bf16.msra.mxu1 %v4645_v28  ;;  %1193 = vmatprep.subr.bf16.mxu0 %v4646_v32 }
  0x72   : > { %264 = vst [vmem:[#allocation2 + $0xbc] sm:$0xf] %v4947_v0  ;;  %265 = vst [vmem:[#allocation2 + $0xc0] sm:$0xf] %v4947_v0  ;;  %v274_v49 = vld [vmem:[%s5104_s6 + $0x18] sm:$0xff]  ;;  %v678_v55 = vshrl.u32 %v4299_v40, 16  ;;  %4544 = vmatprep.subr.bf16.mxu1 %v4646_v32  ;;  %v310_v60 = vadd.f32 %v5172_v12, %v273_v48 }
  0x73   : > { %266 = vst [vmem:[#allocation2 + $0xc4] sm:$0xf] %v4947_v0  ;;  %267 = vst [vmem:[#allocation2 + $0xc8] sm:$0xf] %v4947_v0  ;;  %v4648_v50 = vld [vmem:[#allocation6 + $0x18] ss:$12 sps:$4 sm:$0xff]   ;;  %v311_v2 = vadd.f32 %v5172_v12, %v274_v49 }
  0x74   : > { %268 = vst [vmem:[#allocation2 + $0xcc] sm:$0xf] %v4947_v0  ;;  %269 = vst [vmem:[#allocation2 + $0xd0] sm:$0xf] %v4947_v0  ;;  %v4649_v51 = vld [vmem:[#allocation6 + $0x4] ss:$12 sps:$4 sm:$0xff]   ;;  %1194 = vmatpush1.bf16.msra.mxu0 %v4648_v50  ;;  %v4273_v14 = vpack.c.bf16 %v310_v60, %v310_v60 }
  0x75   : > { %270 = vst [vmem:[#allocation2 + $0xd4] sm:$0xf] %v4947_v0  ;;  %vm5179_vm4 = vmor %vm436_vm0, %vm437_vm2  ;;  %v442_v56 = vrot.slane %v440_v44, 7  ;;  %v5204_v57 = vrot.slane %v448_v46, 7  ;;  %v763_v58 = vld [vmem:[#allocation2 + $0xc] sm:$0xf]  ;;  %4552 = vmatpush1.bf16.msra.mxu1 %v4648_v50  ;;  %1195 = vmatprep.subr.bf16.mxu0 %v4649_v51  ;;  %v4274_v17 = vpack.c.bf16 %v311_v2, %v311_v2 }
  0x76   : > { %vm5192_vm5 = vmand %vm760_vm1, %vm761_vm3  ;;  %v856_v37 = vld [vmem:[#allocation2 + $0xa8] sm:$0xf]  ;;  %v675_v52 = vsel %vm5179_vm4, %v667_v42, %v674_v43  ;;  %v681_v59 = vshll.u32 %v4299_v40, 16  ;;  %v4651_v61 = vld [vmem:[#allocation6] ss:$12 sps:$4 sm:$0xff]   ;;  %v680_v62 = vrot.slane %v678_v55, 7  ;;  %4545 = vmatprep.subr.bf16.mxu1 %v4649_v51 }
  0x77   : > { %v857_v53 = vsel %vm5192_vm5, %v666_v41, %v856_v37  ;;  %859 = vst [vmem:[#allocation2 + $0xac] sm:$0xf] %v675_v52  ;;  %v686_v63 = vshrl.u32 %v4300_v54, 16  ;;  %v689_v1 = vshll.u32 %v4300_v54, 16  ;;  %v4654_v3 = vld [vmem:[#allocation6 + $0xb0] ss:$12 sps:$4 sm:$0xff]   ;;  %v445_v5 = vor.u32 %v443_v45, %v442_v56 }
  0x78   : > { %858 = vst [vmem:[#allocation2 + $0xa8] sm:$0xf] %v857_v53  ;;  %v4655_v4 = vld [vmem:[#allocation6 + $0x170] ss:$12 sps:$4 sm:$0xff]   ;;  %v446_v6 = vrot.slane %v442_v56, 4  ;;  %v453_v7 = vor.u32 %v451_v47, %v5204_v57  ;;  %v683_v10 = vor.u32 %v681_v59, %v680_v62  ;;  %v684_v11 = vrot.slane %v680_v62, 4  ;;  %1196 = vmatpush1.bf16.msra.mxu0 %v4651_v61 }
  0x79   : > { %v863_v8 = vld [vmem:[#allocation2 + $0xb4] sm:$0xf]  ;;  %v301_v9 = vld [vmem:[%s5104_s6 + $0xf0] sm:$0xff]  ;;  %v5210_v13 = vrot.slane %v686_v63, 7  ;;  %v764_v16 = vsel %vm5192_vm5, %v445_v5, %v763_v58  ;;  %v275_v19 = vld [vmem:[%s5104_s6 + $0x20] sm:$0xff]  ;;  %v457_v23 = vshrl.u32 %v4273_v14, 16  ;;  %4553 = vmatpush1.bf16.msra.mxu1 %v4651_v61  ;;  %4434 = vmatprep.subr.bf16.mxu0 %v4655_v4 }
  0x7a   : > { %v454_v15 = vsel %vm5179_vm4, %v446_v6, %v453_v7  ;;  %v302_v18 = vld [vmem:[%s5104_s6 + $0xf8] sm:$0xff]  ;;  %765 = vst [vmem:[#allocation2 + $0xc] sm:$0xf] %v764_v16  ;;  %v864_v22 = vsel %vm5192_vm5, %v683_v10, %v863_v8  ;;  %v276_v24 = vld [vmem:[%s5104_s6 + $0x28] sm:$0xff]  ;;  %v277_v25 = vld [vmem:[%s5104_s6 + $0x30] sm:$0xff]  ;;  %v460_v28 = vshll.u32 %v4273_v14, 16  ;;  %v338_v32 = vadd.f32 %v5172_v12, %v301_v9  ;;  %4382 = vmatprep.subr.bf16.mxu1 %v4654_v3 }
  0x7b   : > { %766 = vst [vmem:[#allocation2 + $0x10] sm:$0xf] %v454_v15  ;;  %v691_v20 = vor.u32 %v689_v1, %v5210_v13  ;;  %v5223_v26 = vld [vmem:[#allocation2] sm:$0xff]   ;;  %v4656_v27 = vld [vmem:[#allocation6 + $0x98] ss:$12 sps:$4 sm:$0xff]   ;;  %v465_v29 = vshrl.u32 %v4274_v17, 16  ;;  %v339_v39 = vadd.f32 %v5172_v12, %v302_v18  ;;  %v312_v40 = vadd.f32 %v5172_v12, %v275_v19 }
  0x7c   : > { %865 = vst [vmem:[#allocation2 + $0xb4] sm:$0xf] %v864_v22  ;;  %v468_v30 = vshll.u32 %v4274_v17, 16  ;;  %v772_v31 = vld [vmem:[#allocation2 + $0x18] sm:$0xf]  ;;  %v459_v38 = vrot.slane %v457_v23, 7  ;;  %v4301_v42 = vpack.c.bf16 %v338_v32, %v338_v32  ;;  %v313_v43 = vadd.f32 %v5172_v12, %v276_v24  ;;  %1214 = vmatmul.mubr.bf16.vlgmr.msra.gmra.mxu0 %v5223_v26 }
  0x7d   : > { %v692_v36 = vsel %vm5179_vm4, %v684_v11, %v691_v20  ;;  %v4661_v37 = vld [vmem:[#allocation6 + $0x158] ss:$12 sps:$4 sm:$0xff]   ;;  %v5230_v41 = vrot.slane %v465_v29, 7  ;;  %v314_v45 = vadd.f32 %v5172_v12, %v277_v25  ;;  %v4302_v48 = vpack.c.bf16 %v339_v39, %v339_v39  ;;  %v4659_v50 = vld [vmem:[#allocation6 + $0x80] ss:$12 sps:$4 sm:$0xff]   ;;  %4435 = vmatpush3.bf16.msra.mxu0 %v4655_v4  ;;  %1221 = vmatprep.mubr.bf16.mxu0 %v4947_v0  ;;  %s6518_s18 = scalar_lea.vmem [#allocation9], %s4081_s4 }
  0x7e   : > { %866 = vst [vmem:[#allocation2 + $0xb8] sm:$0xf] %v692_v36  ;;  %v278_v44 = vld [vmem:[%s5104_s6 + $0x38] sm:$0xff]  ;;  %v462_v46 = vor.u32 %v460_v28, %v459_v38  ;;  %v463_v47 = vrot.slane %v459_v38, 4  ;;  %v4275_v49 = vpack.c.bf16 %v312_v40, %v312_v40  ;;  %v695_v52 = vshrl.u32 %v4301_v42, 16  ;;  %4436 = vmatprep.subr.bf16.mxu0 %v4661_v37  ;;  %v279_v24 = vld [vmem:[%s5104_s6 + $0x40] sm:$0xff] }
  0x7f   : > { %v4653_v33 = vld [vmem:[#allocation2 + $0xa8] sm:$0xff]   ;;  %v470_v51 = vor.u32 %v468_v30, %v5230_v41  ;;  %v698_v53 = vshll.u32 %v4301_v42, 16  ;;  %v703_v55 = vshrl.u32 %v4302_v48, 16  ;;  %v706_v56 = vshll.u32 %v4302_v48, 16  ;;  %v870_v58 = vld [vmem:[#allocation2 + $0xc0] sm:$0xf] }
  0x80   : > { %1352 = vmatmul.mubr.bf16.vlgmr.msra.gmra.mxu1 %v4653_v33  ;;  %v773_v54 = vsel %vm5192_vm5, %v462_v46, %v772_v31  ;;  %v4276_v59 = vpack.c.bf16 %v313_v43, %v313_v43  ;;  %v697_v61 = vrot.slane %v695_v52, 7  ;;  %v315_v62 = vadd.f32 %v5172_v12, %v278_v44  ;;  %v4660_v6 = vld [vmem:[#allocation6 + $0x68] ss:$12 sps:$4 sm:$0xff]   ;;  %v4670_v10 = vld [vmem:[#allocation6 + $0x140] ss:$12 sps:$4 sm:$0xff]   ;;  %v282_v52 = vld [vmem:[%s5104_s6 + $0x58] sm:$0xff] }
  0x81   : > { %4383 = vmatpush3.bf16.msra.mxu1 %v4654_v3  ;;  %v471_v60 = vsel %vm5179_vm4, %v463_v47, %v470_v51  ;;  %774 = vst [vmem:[#allocation2 + $0x18] sm:$0xf] %v773_v54  ;;  %v4277_v63 = vpack.c.bf16 %v314_v45, %v314_v45  ;;  %1361 = vmatprep.mubr.bf16.mxu1 %v4947_v0  ;;  %v5244_v1 = vrot.slane %v703_v55, 7  ;;  %v474_v2 = vshrl.u32 %v4275_v49, 16  ;;  %v779_v19 = vld [vmem:[#allocation2 + $0x24] sm:$0xf] }
  0x82   : > { %4384 = vmatprep.subr.bf16.mxu1 %v4656_v27  ;;  %775 = vst [vmem:[#allocation2 + $0x1c] sm:$0xf] %v471_v60  ;;  %v477_v3 = vshll.u32 %v4275_v49, 16  ;;  %v482_v4 = vshrl.u32 %v4276_v59, 16  ;;  %v5246_v5 = vld [vmem:[#allocation2 + $0xc] sm:$0xff]   ;;  %v700_v7 = vor.u32 %v698_v53, %v697_v61  ;;  %v701_v8 = vrot.slane %v697_v61, 4  ;;  %4437 = vmatpush3.bf16.msra.mxu0 %v4661_v37 }
  0x83   : > { %v485_v9 = vshll.u32 %v4276_v59, 16  ;;  %v4278_v11 = vpack.c.bf16 %v315_v62, %v315_v62  ;;  %v708_v15 = vor.u32 %v706_v56, %v5244_v1  ;;  %v476_v16 = vrot.slane %v474_v2, 7  ;;  %4438 = vmatprep.subr.bf16.mxu0 %v4670_v10  ;;  %v786_v30 = vld [vmem:[#allocation2 + $0x30] sm:$0xf]  ;;  %v280_v36 = vld [vmem:[%s5104_s6 + $0x48] sm:$0xff]  ;;  %v281_v48 = vld [vmem:[%s5104_s6 + $0x50] sm:$0xff] }
  0x84   : > { %v5249_v17 = vrot.slane %v482_v4, 7  ;;  %v871_v18 = vsel %vm5192_vm5, %v700_v7, %v870_v58  ;;  %v491_v20 = vshrl.u32 %v4277_v63, 16  ;;  %v494_v22 = vshll.u32 %v4277_v63, 16  ;;  %1222 = vmatmul.mubr.bf16.gmra.mxu0 %v5246_v5  ;;  %v4676_v40 = vld [vmem:[#allocation6 + $0x128] ss:$12 sps:$4 sm:$0xff]   ;;  %v283_v59 = vld [vmem:[%s5104_s6 + $0x60] sm:$0xff] }
  0x85   : > { %4385 = vmatpush3.bf16.msra.mxu1 %v4656_v27  ;;  %v4658_v14 = vld [vmem:[#allocation2 + $0xb4] sm:$0xff]   ;;  %v499_v23 = vshrl.u32 %v4278_v11, 16  ;;  %v709_v25 = vsel %vm5179_vm4, %v701_v8, %v708_v15  ;;  %872 = vst [vmem:[#allocation2 + $0xc0] sm:$0xf] %v871_v18  ;;  %v479_v27 = vor.u32 %v477_v3, %v476_v16  ;;  %v480_v28 = vrot.slane %v476_v16, 4  ;;  %1231 = vmatprep.mubr.bf16.mxu0 %v4947_v0  ;;  %v284_v62 = vld [vmem:[%s5104_s6 + $0x68] sm:$0xff] }
  0x86   : > { %4386 = vmatprep.subr.bf16.mxu1 %v4659_v50  ;;  %v487_v29 = vor.u32 %v485_v9, %v5249_v17  ;;  %873 = vst [vmem:[#allocation2 + $0xc4] sm:$0xf] %v709_v25  ;;  %v493_v31 = vrot.slane %v491_v20, 7  ;;  %v502_v33 = vshll.u32 %v4278_v11, 16  ;;  %v316_v39 = vadd.f32 %v5172_v12, %v279_v24  ;;  %v4664_v42 = vld [vmem:[#allocation6 + $0x50] ss:$12 sps:$4 sm:$0xff]   ;;  %4439 = vmatpush3.bf16.msra.mxu0 %v4670_v10 }
  0x87   : > { %v5258_v32 = vrot.slane %v499_v23, 7  ;;  %v780_v38 = vsel %vm5192_vm5, %v479_v27, %v779_v19  ;;  %v317_v46 = vadd.f32 %v5172_v12, %v280_v36  ;;  %4440 = vmatprep.subr.bf16.mxu0 %v4676_v40  ;;  %v318_v53 = vadd.f32 %v5172_v12, %v281_v48  ;;  %v4665_v60 = vld [vmem:[#allocation6 + $0x38] ss:$12 sps:$4 sm:$0xff]   ;;  %v4668_v15 = vld [vmem:[#allocation6 + $0x20] ss:$12 sps:$4 sm:$0xff]   ;;  %s4303_s20 = sshll.u32 %s4992_s16, 12 }
  0x88   : > { %1362 = vmatmul.mubr.bf16.gmra.mxu1 %v4658_v14  ;;  %v488_v37 = vsel %vm5179_vm4, %v480_v28, %v487_v29  ;;  %781 = vst [vmem:[#allocation2 + $0x24] sm:$0xf] %v780_v38  ;;  %v496_v43 = vor.u32 %v494_v22, %v493_v31  ;;  %v497_v44 = vrot.slane %v493_v31, 4  ;;  %v4279_v47 = vpack.c.bf16 %v316_v39, %v316_v39  ;;  %v793_v8 = vld [vmem:[#allocation2 + $0x3c] sm:$0xf]  ;;  %v286_v48 = vld [vmem:[%s5104_s6 + $0x78] sm:$0xff]  ;;  %s6737_s29 = scalar_lea.hbm %s6788_s3, %s4303_s20 }
  0x89   : > { %4387 = vmatpush3.bf16.msra.mxu1 %v4659_v50  ;;  %1371 = vmatprep.mubr.bf16.mxu1 %v4947_v0  ;;  %782 = vst [vmem:[#allocation2 + $0x28] sm:$0xf] %v488_v37  ;;  %v504_v45 = vor.u32 %v502_v33, %v5258_v32  ;;  %v5271_v49 = vld [vmem:[#allocation2 + $0x18] sm:$0xff]   ;;  %v4280_v54 = vpack.c.bf16 %v317_v46, %v317_v46  ;;  %v800_v19 = vld [vmem:[#allocation2 + $0x48] sm:$0xf]  ;;  %v5297_v37 = vld [vmem:[#allocation2 + $0xcc] sm:$0xff]  }
  0x8a   : > { %4388 = vmatprep.subr.bf16.mxu1 %v4660_v6  ;;  %v787_v51 = vsel %vm5192_vm5, %v496_v43, %v786_v30  ;;  %v508_v55 = vshrl.u32 %v4279_v47, 16  ;;  %v511_v56 = vshll.u32 %v4279_v47, 16  ;;  %v319_v58 = vadd.f32 %v5172_v12, %v282_v52  ;;  %4441 = vmatpush3.bf16.msra.mxu0 %v4676_v40  ;;  %v4685_v30 = vld [vmem:[#allocation6 + $0x110] ss:$12 sps:$4 sm:$0xff]   ;;  %v776_v21 = vld [vmem:[#allocation2 + $0x20] sm:$0x1] }
  0x8b   : > { %v505_v50 = vsel %vm5179_vm4, %v497_v44, %v504_v45  ;;  %788 = vst [vmem:[#allocation2 + $0x30] sm:$0xf] %v787_v51  ;;  %v4281_v61 = vpack.c.bf16 %v318_v53, %v318_v53  ;;  %v320_v63 = vadd.f32 %v5172_v12, %v283_v59  ;;  %v516_v4 = vshrl.u32 %v4280_v54, 16  ;;  %4442 = vmatprep.subr.bf16.mxu0 %v4685_v30  ;;  %v807_v46 = vld [vmem:[#allocation2 + $0x54] sm:$0xf]  ;;  %v285_v47 = vld [vmem:[%s5104_s6 + $0x70] sm:$0xff] }
  0x8c   : > { %789 = vst [vmem:[#allocation2 + $0x34] sm:$0xf] %v505_v50  ;;  %v510_v3 = vrot.slane %v508_v55, 7  ;;  %v519_v7 = vshll.u32 %v4280_v54, 16  ;;  %1232 = vmatmul.mubr.bf16.gmra.mxu0 %v5271_v49  ;;  %v321_v11 = vadd.f32 %v5172_v12, %v284_v62  ;;  %v4669_v50 = vld [vmem:[#allocation6 + $0x8] ss:$12 sps:$4 sm:$0xff]   ;;  %v323_v59 = vadd.f32 %v5172_v12, %v286_v48 }
  0x8d   : > { %4389 = vmatpush3.bf16.msra.mxu1 %v4660_v6  ;;  %v5283_v2 = vld [vmem:[#allocation2 + $0xc0] sm:$0xff]   ;;  %v4282_v6 = vpack.c.bf16 %v319_v58, %v319_v58  ;;  %v525_v9 = vshrl.u32 %v4281_v61, 16  ;;  %v528_v10 = vshll.u32 %v4281_v61, 16  ;;  %v4283_v14 = vpack.c.bf16 %v320_v63, %v320_v63  ;;  %1241 = vmatprep.mubr.bf16.mxu0 %v4947_v0  ;;  %v287_v54 = vld [vmem:[%s5104_s6 + $0x80] sm:$0xff]  ;;  %s3980_s25 = sshll.u32 %s6518_s18, 4  ;;  %s3967_s16 = scalar_lea.sflag [#allocation5], %s5098_s30  ;;  %s6739_s25 = int_to_ptr.vmem [resolvable:$true] %s3980_s25 }
  0x8e   : > { %4390 = vmatprep.subr.bf16.mxu1 %v4664_v42  ;;  %v513_v16 = vor.u32 %v511_v56, %v510_v3  ;;  %v514_v18 = vrot.slane %v510_v3, 4  ;;  %v5290_v20 = vrot.slane %v516_v4, 7  ;;  %v4284_v27 = vpack.c.bf16 %v321_v11, %v321_v11  ;;  %4443 = vmatpush3.bf16.msra.mxu0 %v4685_v30  ;;  %v288_v55 = vld [vmem:[%s5104_s6 + $0x88] sm:$0xff]  ;;  %v4708_v35 = vld [vmem:[#allocation6 + $0xc4] ss:$12 sps:$4 sm:$0xff]   ;;  %s4870_s8 = scalar_lea.vmem %s6739_s25, 4096 }
  0x8f   : > { %v527_v22 = vrot.slane %v525_v9, 7  ;;  %v533_v23 = vshrl.u32 %v4282_v6, 16  ;;  %v536_v24 = vshll.u32 %v4282_v6, 16  ;;  %v542_v28 = vshrl.u32 %v4283_v14, 16  ;;  %v4694_v6 = vld [vmem:[#allocation6 + $0xf8] ss:$12 sps:$4 sm:$0xff]   ;;  %p4871_p11 = scmp.ne.s32.totalorder %s6739_s25, %s4870_s8 }
  0x90   : > { %1372 = vmatmul.mubr.bf16.gmra.mxu1 %v5283_v2  ;;  %v794_v25 = vsel %vm5192_vm5, %v513_v16, %v793_v8  ;;  %v545_v29 = vshll.u32 %v4283_v14, 16  ;;  %v5294_v31 = vld [vmem:[#allocation2 + $0x24] sm:$0xff]   ;;  %v521_v33 = vor.u32 %v519_v7, %v5290_v20  ;;  %v553_v45 = vshll.u32 %v4284_v27, 16  ;;  %v290_v14 = vld [vmem:[%s5104_s6 + $0x98] sm:$0xff]  ;;  %4444 = vmatprep.subr.bf16.mxu0 %v4694_v6  ;;  %p6833_p10 = scmp.ne.s32.totalorder %s6798_s10, 0  ;;  %s4948_s9 = smov [#allocation9]  }
  0x91   : > { %4391 = vmatpush3.bf16.msra.mxu1 %v4664_v42  ;;  %1379 = vmatprep.mubr.bf16.mxu1 %v4947_v0  ;;  %795 = vst [vmem:[#allocation2 + $0x3c] sm:$0xf] %v794_v25  ;;  %v530_v36 = vor.u32 %v528_v10, %v527_v22  ;;  %v531_v38 = vrot.slane %v527_v22, 4  ;;  %v5299_v39 = vrot.slane %v533_v23, 7  ;;  %v544_v40 = vrot.slane %v542_v28, 7  ;;  %v289_v8 = vld [vmem:[%s5104_s6 + $0x90] sm:$0xff] }
  0x92   : > { %4392 = vmatprep.subr.bf16.mxu1 %v4665_v60  ;;  %v550_v42 = vshrl.u32 %v4284_v27, 16  ;;  %v522_v43 = vsel %vm5179_vm4, %v514_v18, %v521_v33  ;;  %v322_v58 = vadd.f32 %v5172_v12, %v285_v47  ;;  %v325_v63 = vadd.f32 %v5172_v12, %v288_v55  ;;  %v4674_v9 = vld [vmem:[#allocation6 + $0x16c] ss:$12 sps:$4 sm:$0xff]   ;;  %v4679_v25 = vld [vmem:[#allocation6 + $0x154] ss:$12 sps:$4 sm:$0xff]   ;;  %4445 = vmatpush3.bf16.msra.mxu0 %v4694_v6  ;;  %p4872_p1 = pnand %p4871_p11, %p6833_p10  ;;  %s4874_s17 = sshll.u32 %s4948_s9, 4  ;;  %s4875_s17 = int_to_ptr.vmem [resolvable:$false] %s4874_s17 }
  0x93   : > { %v801_v44 = vsel %vm5192_vm5, %v530_v36, %v800_v19  ;;  %796 = vst [vmem:[#allocation2 + $0x40] sm:$0xf] %v522_v43  ;;  %v538_v51 = vor.u32 %v536_v24, %v5299_v39  ;;  %v547_v52 = vor.u32 %v545_v29, %v544_v40  ;;  %v548_v53 = vrot.slane %v544_v40, 4  ;;  %v5328_v18 = vld [vmem:[#allocation2 + $0x30] sm:$0xff]   ;;  %v291_v24 = vld [vmem:[%s5104_s6 + $0xa0] sm:$0xff]  ;;  %s4876_s21 = scalar_lea.vmem %s4875_s17, 8192  ;;  %p4877_p6 = scmp.lt.s32.totalorder %s6739_s25, %s4875_s17 }
  0x94   : > { %802 = vst [vmem:[#allocation2 + $0x48] sm:$0xf] %v801_v44  ;;  %1242 = vmatmul.mubr.bf16.gmra.mxu0 %v5294_v31  ;;  %v5311_v56 = vrot.slane %v550_v42, 7  ;;  %v4285_v4 = vpack.c.bf16 %v322_v58, %v322_v58  ;;  %v4286_v7 = vpack.c.bf16 %v323_v59, %v323_v59  ;;  %v4288_v11 = vpack.c.bf16 %v325_v63, %v325_v63  ;;  %v814_v28 = vld [vmem:[#allocation2 + $0x60] sm:$0xf]  ;;  %p4873_p2 = pneg %p4872_p1  ;;  %p4878_p12 = scmp.lt.s32.totalorder %s4876_s21, %s4870_s8 }
  0x95   : > { %4393 = vmatpush3.bf16.msra.mxu1 %v4665_v60  ;;  %v324_v60 = vadd.f32 %v5172_v12, %v287_v54  ;;  %1251 = vmatprep.mubr.bf16.mxu0 %v4947_v0  ;;  %v539_v61 = vsel %vm5179_vm4, %v531_v38, %v538_v51  ;;  %v808_v62 = vsel %vm5192_vm5, %v547_v52, %v807_v46  ;;  %v4677_v47 = vld [vmem:[#allocation6 + $0x150] ss:$12 sps:$4 sm:$0xff]   ;;  %vm767_vm6 = vcmask 1040384  }
  0x96   : > { %4394 = vmatprep.subr.bf16.mxu1 %v4668_v15  ;;  %803 = vst [vmem:[#allocation2 + $0x4c] sm:$0xf] %v539_v61  ;;  %v555_v3 = vor.u32 %v553_v45, %v5311_v56  ;;  %809 = vst [vmem:[#allocation2 + $0x54] sm:$0xf] %v808_v62  ;;  %v326_v16 = vadd.f32 %v5172_v12, %v289_v8  ;;  %v559_v19 = vshrl.u32 %v4285_v4, 16  ;;  %v562_v22 = vshll.u32 %v4285_v4, 16  ;;  %p4879_p7 = por %p4878_p12, %p4877_p6 }
  0x97   : > { %v4287_v10 = vpack.c.bf16 %v324_v60, %v324_v60  ;;  %v567_v23 = vshrl.u32 %v4286_v7, 16  ;;  %v570_v27 = vshll.u32 %v4286_v7, 16  ;;  %v584_v33 = vshrl.u32 %v4288_v11, 16  ;;  %v4683_v54 = vld [vmem:[#allocation6 + $0x13c] ss:$12 sps:$4 sm:$0xff]   ;;  %vm5391_vm7 = vmand %vm767_vm6, %vm436_vm0 }
  0x98   : > { %1380 = vmatmul.mubr.bf16.gmra.mxu1 %v5297_v37  ;;  %v561_v36 = vrot.slane %v559_v19, 7  ;;  %v327_v38 = vadd.f32 %v5172_v12, %v290_v14  ;;  %v4289_v40 = vpack.c.bf16 %v326_v16, %v326_v16  ;;  %v328_v42 = vadd.f32 %v5172_v12, %v291_v24  ;;  %v292_v60 = vld [vmem:[%s5104_s6 + $0xa8] sm:$0xff]  ;;  %p4880_p9 = pnand %p4879_p7, %p4873_p2 }
  0x99   : > { %4395 = vmatpush3.bf16.msra.mxu1 %v4668_v15  ;;  %4398 = vmatprep.mubr.bf16.mxu1 %v5223_v26  ;;  %v4672_v15 = vld [vmem:[#allocation6 + $0x168] ss:$12 sps:$4 sm:$0xff]   ;;  %v556_v26 = vsel %vm5179_vm4, %v548_v53, %v555_v3  ;;  %v576_v29 = vshrl.u32 %v4287_v10, 16  ;;  %v579_v30 = vshll.u32 %v4287_v10, 16  ;;  %v5335_v43 = vrot.slane %v567_v23, 7  ;;  %v295_v10 = vld [vmem:[%s5104_s6 + $0xc0] sm:$0xff] }
  0x9a   : > { %4396 = vmatprep.subr.bf16.mxu1 %v4669_v50  ;;  %810 = vst [vmem:[#allocation2 + $0x58] sm:$0xf] %v556_v26  ;;  %v5337_v45 = vrot.slane %v584_v33, 7  ;;  %v587_v46 = vshll.u32 %v4288_v11, 16  ;;  %v564_v48 = vor.u32 %v562_v22, %v561_v36  ;;  %v565_v51 = vrot.slane %v561_v36, 4  ;;  %v293_v3 = vld [vmem:[%s5104_s6 + $0xb0] sm:$0xff] }
  0x9b   : > { %v578_v44 = vrot.slane %v576_v29, 7  ;;  %v4290_v52 = vpack.c.bf16 %v327_v38, %v327_v38  ;;  %v593_v53 = vshrl.u32 %v4289_v40, 16  ;;  %v572_v55 = vor.u32 %v570_v27, %v5335_v43  ;;  %v5349_v4 = vld [vmem:[#allocation2 + $0x3c] sm:$0xff]  }
  0x9c   : > { %1252 = vmatmul.mubr.bf16.gmra.mxu0 %v5328_v18  ;;  %v589_v59 = vor.u32 %v587_v46, %v5337_v45  ;;  %v815_v61 = vsel %vm5192_vm5, %v564_v48, %v814_v28  ;;  %v596_v8 = vshll.u32 %v4289_v40, 16  ;;  %v296_v26 = vld [vmem:[%s5104_s6 + $0xc8] sm:$0xff]  ;;  %v4291_v23 = vpack.c.bf16 %v328_v42, %v328_v42  ;;  %v4688_v33 = vld [vmem:[#allocation6 + $0x124] ss:$12 sps:$4 sm:$0xff]  }
  0x9d   : > { %4397 = vmatpush3.bf16.msra.mxu1 %v4669_v50  ;;  %v821_v50 = vld [vmem:[#allocation2 + $0x6c] sm:$0xf]  ;;  %1261 = vmatprep.mubr.bf16.mxu0 %v4947_v0  ;;  %v581_v58 = vor.u32 %v579_v30, %v578_v44  ;;  %v582_v62 = vrot.slane %v578_v44, 4  ;;  %v595_v63 = vrot.slane %v593_v53, 7  ;;  %v573_v7 = vsel %vm5179_vm4, %v565_v51, %v572_v55  ;;  %816 = vst [vmem:[#allocation2 + $0x60] sm:$0xf] %v815_v61 }
  0x9e   : > { %2345 = vmatprep.subr.bf16.mxu1 %v4674_v9  ;;  %v294_v9 = vld [vmem:[%s5104_s6 + $0xb8] sm:$0xff]  ;;  %817 = vst [vmem:[#allocation2 + $0x64] sm:$0xf] %v573_v7  ;;  %v604_v16 = vshll.u32 %v4290_v52, 16  ;;  %v330_v24 = vadd.f32 %v5172_v12, %v293_v3  ;;  %v332_v29 = vadd.f32 %v5172_v12, %v295_v10  ;;  %v4702_v30 = vld [vmem:[#allocation6 + $0xe0] ss:$12 sps:$4 sm:$0xff]   ;;  %v333_v42 = vadd.f32 %v5172_v12, %v296_v26 }
  0x9f   : > { %v822_v6 = vsel %vm5192_vm5, %v581_v58, %v821_v50  ;;  %v590_v11 = vsel %vm5179_vm4, %v582_v62, %v589_v59  ;;  %v599_v14 = vrot.slane %v595_v63, 4  ;;  %v598_v19 = vor.u32 %v596_v8, %v595_v63  ;;  %v4686_v44 = vld [vmem:[#allocation6 + $0x120] ss:$12 sps:$4 sm:$0xff]   ;;  %4446 = vmatprep.subr.bf16.mxu0 %v4702_v30  ;;  %v842_v62 = vld [vmem:[#allocation2 + $0x90] sm:$0xf] }
  0xa0   : > { %4399 = vmatmul.mubr.bf16.vlgmr.msra.gmra.mxu1 %v5246_v5  ;;  %v828_v5 = vld [vmem:[#allocation2 + $0x78] sm:$0xf]  ;;  %823 = vst [vmem:[#allocation2 + $0x6c] sm:$0xf] %v822_v6  ;;  %824 = vst [vmem:[#allocation2 + $0x70] sm:$0xf] %v590_v11  ;;  %v331_v28 = vadd.f32 %v5172_v12, %v294_v9  ;;  %v4293_v50 = vpack.c.bf16 %v330_v24, %v330_v24  ;;  %v4295_v55 = vpack.c.bf16 %v332_v29, %v332_v29 }
  0xa1   : > { %2346 = vmatpush1.bf16.msra.mxu1 %v4672_v15  ;;  %4402 = vmatprep.mubr.bf16.mxu1 %v5271_v49  ;;  %v601_v49 = vshrl.u32 %v4290_v52, 16  ;;  %v329_v15 = vadd.f32 %v5172_v12, %v292_v60  ;;  %v829_v38 = vsel %vm5192_vm5, %v598_v19, %v828_v5  ;;  %v610_v40 = vshrl.u32 %v4291_v23, 16  ;;  %v835_v51 = vld [vmem:[#allocation2 + $0x84] sm:$0xf]  ;;  %v4680_v5 = vld [vmem:[#allocation2 + $0x48] sm:$0xff]  }
  0xa2   : > { %2347 = vmatprep.subr.bf16.mxu1 %v4679_v25  ;;  %v4681_v25 = vld [vmem:[#allocation6 + $0x138] ss:$12 sps:$4 sm:$0xff]   ;;  %830 = vst [vmem:[#allocation2 + $0x78] sm:$0xf] %v829_v38  ;;  %v613_v46 = vshll.u32 %v4291_v23, 16  ;;  %v4294_v12 = vpack.c.bf16 %v331_v28, %v331_v28  ;;  %v627_v59 = vshrl.u32 %v4293_v50, 16  ;;  %v4296_v63 = vpack.c.bf16 %v333_v42, %v333_v42  ;;  %4447 = vmatpush3.bf16.msra.mxu0 %v4702_v30 }
  0xa3   : > { %v5361_v22 = vrot.slane %v601_v49, 7  ;;  %v4292_v27 = vpack.c.bf16 %v329_v15, %v329_v15  ;;  %v4693_v52 = vld [vmem:[#allocation6 + $0x10c] ss:$12 sps:$4 sm:$0xff]   ;;  %v630_v60 = vshll.u32 %v4293_v50, 16  ;;  %v644_v49 = vshrl.u32 %v4295_v55, 16 }
  0xa4   : > { %1262 = vmatmul.mubr.bf16.gmra.mxu0 %v5349_v4  ;;  %v629_v7 = vrot.slane %v627_v59, 7  ;;  %v635_v6 = vshrl.u32 %v4294_v12, 16  ;;  %v638_v8 = vshll.u32 %v4294_v12, 16  ;;  %v647_v9 = vshll.u32 %v4295_v55, 16  ;;  %v4709_v10 = vld [vmem:[#allocation6 + $0xc8] ss:$12 sps:$4 sm:$0xff]  }
  0xa5   : > { %2348 = vmatpush1.bf16.msra.mxu1 %v4677_v47  ;;  %v606_v36 = vor.u32 %v604_v16, %v5361_v22  ;;  %v618_v47 = vshrl.u32 %v4292_v27, 16  ;;  %v621_v48 = vshll.u32 %v4292_v27, 16  ;;  %1271 = vmatprep.mubr.bf16.mxu0 %v4947_v0  ;;  %v4691_v11 = vld [vmem:[#allocation6 + $0x108] ss:$12 sps:$4 sm:$0xff]   ;;  %v646_v23 = vrot.slane %v644_v49, 7 }
  0xa6   : > { %2349 = vmatprep.subr.bf16.mxu1 %v4683_v54  ;;  %v612_v54 = vrot.slane %v610_v40, 7  ;;  %v632_v16 = vor.u32 %v630_v60, %v629_v7  ;;  %v633_v15 = vrot.slane %v629_v7, 4  ;;  %v5383_v26 = vrot.slane %v635_v6, 7  ;;  %v4700_v19 = vld [vmem:[#allocation6 + $0xf4] ss:$12 sps:$4 sm:$0xff]   ;;  %4448 = vmatprep.subr.bf16.mxu0 %v4709_v10 }
  0xa7   : > { %v607_v53 = vsel %vm5179_vm4, %v599_v14, %v606_v36  ;;  %v5376_v58 = vrot.slane %v618_v47, 7  ;;  %v652_v24 = vshrl.u32 %v4296_v63, 16  ;;  %v455_v27 = vrot.slane %v5204_v57, 4  ;;  %v849_v30 = vld [vmem:[#allocation2 + $0x9c] sm:$0xf]  ;;  %4449 = vmatpush3.bf16.msra.mxu0 %v4709_v10 }
  0xa8   : > { %4403 = vmatmul.mubr.bf16.gmra.mxu1 %v5294_v31  ;;  %831 = vst [vmem:[#allocation2 + $0x7c] sm:$0xf] %v607_v53  ;;  %v615_v61 = vor.u32 %v613_v46, %v612_v54  ;;  %v616_v31 = vrot.slane %v612_v54, 4  ;;  %v640_v28 = vor.u32 %v638_v8, %v5383_v26  ;;  %v843_v29 = vsel %vm5192_vm5, %v632_v16, %v842_v62  ;;  %v4698_v42 = vld [vmem:[#allocation6 + $0xf0] ss:$12 sps:$4 sm:$0xff]   ;;  %v4689_v53 = vld [vmem:[#allocation2 + $0x60] sm:$0xff]  }
  0xa9   : > { %4406 = vmatprep.mubr.bf16.mxu1 %v5328_v18  ;;  %2350 = vmatpush1.bf16.msra.mxu1 %v4681_v25  ;;  %v623_v3 = vor.u32 %v621_v48, %v5376_v58  ;;  %v655_v25 = vshll.u32 %v4296_v63, 16  ;;  %844 = vst [vmem:[#allocation2 + $0x90] sm:$0xf] %v843_v29  ;;  %v649_v36 = vor.u32 %v647_v9, %v646_v23  ;;  %v650_v57 = vrot.slane %v646_v23, 4  ;;  %v4705_v46 = vld [vmem:[#allocation6 + $0xdc] ss:$12 sps:$4 sm:$0xff]  }
  0xaa   : > { %2351 = vmatprep.subr.bf16.mxu1 %v4688_v33  ;;  %v836_v18 = vsel %vm5192_vm5, %v615_v61, %v835_v51  ;;  %v5397_v38 = vrot.slane %v652_v24, 7  ;;  %v641_v40 = vsel %vm5179_vm4, %v633_v15, %v640_v28  ;;  %v769_v47 = vld [vmem:[#allocation2 + $0x14] sm:$0x1]  ;;  %v4703_v54 = vld [vmem:[#allocation6 + $0xd8] ss:$12 sps:$4 sm:$0xff]   ;;  %v489_v55 = vrot.slane %v5249_v17, 4 }
  0xab   : > { %v624_v14 = vsel %vm5179_vm4, %v616_v31, %v623_v3  ;;  %837 = vst [vmem:[#allocation2 + $0x84] sm:$0xf] %v836_v18  ;;  %845 = vst [vmem:[#allocation2 + $0x94] sm:$0xf] %v641_v40  ;;  %v4684_v48 = vld [vmem:[#allocation2 + $0x54] sm:$0xff]   ;;  %v770_v51 = vsel %vm5391_vm7, %v455_v27, %v769_v47  ;;  %v4690_v63 = vld [vmem:[#allocation2 + $0x6c] sm:$0xff]  }
  0xac   : > { %838 = vst [vmem:[#allocation2 + $0x88] sm:$0xf] %v624_v14  ;;  %1272 = vmatmul.mubr.bf16.gmra.mxu0 %v4680_v5  ;;  %771 = vst [vmem:[#allocation2 + $0x14] sm:$0x1] %v770_v51  ;;  %v4713_v12 = vld [vmem:[#allocation6 + $0x22c] ss:$12 sps:$4 sm:$0xff]  }
  0xad   : > { %2352 = vmatpush1.bf16.msra.mxu1 %v4686_v44  ;;  %1281 = vmatprep.mubr.bf16.mxu0 %v4947_v0  ;;  %v657_v44 = vor.u32 %v655_v25, %v5397_v38  ;;  %v4706_v59 = vld [vmem:[#allocation6 + $0xc0] ss:$12 sps:$4 sm:$0xff]   ;;  %v1623_v60 = vld [vmem:[#allocation2] sm:$0xf]  ;;  %v783_v31 = vld [vmem:[#allocation2 + $0x2c] sm:$0x1] }
  0xae   : > { %2353 = vmatprep.subr.bf16.mxu1 %v4693_v52  ;;  %v472_v52 = vrot.slane %v5230_v41, 4  ;;  %v1624_v61 = vld [vmem:[#allocation2 + $0x4] sm:$0xf]  ;;  %v5413_v62 = vld [vmem:[#allocation6 + $0x230] ss:$12 sps:$4 sm:$0xff]   ;;  %3253 = vmatprep.subr.bf16.mxu0 %v4713_v12  ;;  %v784_v17 = vsel %vm5391_vm7, %v489_v55, %v783_v31  ;;  %v1684_v7 = vshll.u32 %v1623_v60, 16 }
  0xaf   : > { %v658_v50 = vsel %vm5179_vm4, %v650_v57, %v657_v44  ;;  %785 = vst [vmem:[#allocation2 + $0x2c] sm:$0x1] %v784_v17  ;;  %v5417_v3 = vld [vmem:[#allocation2 + $0x78] sm:$0xff]   ;;  %v1690_v6 = vshll.u32 %v1624_v61, 16  ;;  %v1694_v18 = vshrl.u32 %v1624_v61, 16  ;;  %v506_v8 = vrot.slane %v5258_v32, 4 }
  0xb0   : > { %4407 = vmatmul.mubr.bf16.gmra.mxu1 %v5349_v4  ;;  %v850_v4 = vsel %vm5192_vm5, %v649_v36, %v849_v30  ;;  %852 = vst [vmem:[#allocation2 + $0xa0] sm:$0xf] %v658_v50  ;;  %v777_v41 = vsel %vm5391_vm7, %v472_v52, %v776_v21  ;;  %v1625_v49 = vld [vmem:[#allocation2 + $0x8] sm:$0x1]  ;;  %v1626_v10 = vld [vmem:[#allocation2 + $0xc] sm:$0xf] }
  0xb1   : > { %4410 = vmatprep.mubr.bf16.mxu1 %v4680_v5  ;;  %2354 = vmatpush1.bf16.msra.mxu1 %v4691_v11  ;;  %851 = vst [vmem:[#allocation2 + $0x9c] sm:$0xf] %v850_v4  ;;  %778 = vst [vmem:[#allocation2 + $0x20] sm:$0x1] %v777_v41  ;;  %v1681_v5 = vshrl.u32 %v1623_v60, 16  ;;  %v1686_v11 = vrot.slane %v1684_v7, 5 }
  0xb2   : > { %2355 = vmatprep.subr.bf16.mxu1 %v4700_v19  ;;  %v5423_v14 = vrot.slane %v1690_v6, 5  ;;  %v1696_v16 = vrot.slane %v1694_v18, 4  ;;  %v1627_v15 = vld [vmem:[#allocation2 + $0x10] sm:$0xf]  ;;  %v790_v19 = vld [vmem:[#allocation2 + $0x38] sm:$0x1] }
  0xb3   : > { %v1683_v9 = vrot.slane %v1681_v5, 4  ;;  %vm1677_vm8 = vsmask.f32 3328  ;;  %v1705_v23 = vshrl.u32 %v1626_v10, 16  ;;  %v1708_v24 = vshll.u32 %v1626_v10, 16  ;;  %v5428_v27 = vld [vmem:[#allocation2 + $0x84] sm:$0xff]  }
  0xb4   : > { %1282 = vmatmul.mubr.bf16.gmra.mxu0 %v4684_v48  ;;  %v791_v32 = vsel %vm5391_vm7, %v506_v8, %v790_v19  ;;  %v523_v25 = vrot.slane %v5290_v20, 4  ;;  %v1700_v28 = vshll.u32 %v1625_v49, 16  ;;  %v1714_v29 = vshll.u32 %v1627_v15, 16  ;;  %v5431_v57 = vld [vmem:[#allocation2 + $0x90] sm:$0xff]   ;;  %v797_v44 = vld [vmem:[#allocation2 + $0x44] sm:$0x1] }
  0xb5   : > { %2356 = vmatpush1.bf16.msra.mxu1 %v4698_v42  ;;  %1291 = vmatprep.mubr.bf16.mxu0 %v4947_v0  ;;  %v1718_v30 = vshrl.u32 %v1627_v15, 16  ;;  %792 = vst [vmem:[#allocation2 + $0x38] sm:$0x1] %v791_v32  ;;  %v676_v36 = vrot.slane %v5188_v34, 4  ;;  %vm1678_vm9 = vsmask.f32 7440  ;;  %v1687_v40 = vor.u32 %v1686_v11, %v1683_v9 }
  0xb6   : > { %2357 = vmatprep.subr.bf16.mxu1 %v4705_v46  ;;  %v1697_v42 = vor.u32 %v1696_v16, %v5423_v14  ;;  %v693_v4 = vrot.slane %v5210_v13, 4  ;;  %v710_v46 = vrot.slane %v5244_v1, 4  ;;  %v540_v20 = vrot.slane %v5299_v39, 4  ;;  %v804_v55 = vld [vmem:[#allocation2 + $0x50] sm:$0x1]  ;;  %vm5449_vm10 = vmor %vm1677_vm8, %vm1678_vm9 }
  0xb7   : > { %v557_v47 = vrot.slane %v5311_v56, 4  ;;  %v574_v51 = vrot.slane %v5335_v43, 4  ;;  %v1707_v50 = vrot.slane %v1705_v23, 4  ;;  %v1710_v52 = vrot.slane %v1708_v24, 5  ;;  %v1632_v8 = vld [vmem:[#allocation2 + $0x24] sm:$0xf] }
  0xb8   : > { %4411 = vmatmul.mubr.bf16.gmra.mxu1 %v4684_v48  ;;  %v1629_v48 = vld [vmem:[#allocation2 + $0x18] sm:$0xf]  ;;  %v1720_v12 = vrot.slane %v1718_v30, 4  ;;  %v798_v39 = vsel %vm5391_vm7, %v523_v25, %v797_v44  ;;  %v1688_v56 = vrot.slane %v1687_v40, 4  ;;  %v591_v61 = vrot.slane %v5337_v45, 4  ;;  %v5459_v9 = vld [vmem:[#allocation2 + $0x9c] sm:$0xff]  }
  0xb9   : > { %4414 = vmatprep.mubr.bf16.mxu1 %v4689_v53  ;;  %2358 = vmatpush1.bf16.msra.mxu1 %v4703_v54  ;;  %v1702_v54 = vrot.slane %v1700_v28, 5  ;;  %v1729_v60 = vshrl.u32 %v1629_v48, 16  ;;  %v1732_v21 = vshll.u32 %v1629_v48, 16  ;;  %799 = vst [vmem:[#allocation2 + $0x44] sm:$0x1] %v798_v39  ;;  %v608_v5 = vrot.slane %v5361_v22, 4 }
  0xba   : > { %2359 = vmatprep.subr.bf16.mxu1 %v4708_v35  ;;  %v5441_v35 = vrot.slane %v1714_v29, 5  ;;  %v625_v7 = vrot.slane %v5376_v58, 4  ;;  %v642_v6 = vrot.slane %v5383_v26, 4  ;;  %v1711_v18 = vor.u32 %v1710_v52, %v1707_v50  ;;  %v1633_v11 = vld [vmem:[#allocation2 + $0x28] sm:$0xf]  ;;  %v4743_v43 = vld [vmem:[#allocation2 + $0xb4] sm:$0xff]  }
  0xbb   : > { %v659_v49 = vrot.slane %v5397_v38, 4  ;;  %v811_v16 = vld [vmem:[#allocation2 + $0x5c] sm:$0x1]  ;;  %v1693_v15 = vsel %vm5449_vm10, %v1688_v56, %v5423_v14  ;;  %v1628_v23 = vld [vmem:[#allocation2 + $0x14] sm:$0x1]  ;;  %v1731_v24 = vrot.slane %v1729_v60, 4 }
  0xbc   : > { %1292 = vmatmul.mubr.bf16.gmra.mxu0 %v4689_v53  ;;  %v1630_v53 = vld [vmem:[#allocation2 + $0x1c] sm:$0xf]  ;;  %v1721_v10 = vor.u32 %v1720_v12, %v5441_v35  ;;  %v1734_v32 = vrot.slane %v1732_v21, 5  ;;  %v1753_v29 = vshrl.u32 %v1632_v8, 16  ;;  %v1756_v30 = vshll.u32 %v1632_v8, 16  ;;  %v4742_v52 = vld [vmem:[#allocation2 + $0xa8] sm:$0xff]  }
  0xbd   : > { %2360 = vmatpush1.bf16.msra.mxu1 %v4706_v59  ;;  %1301 = vmatprep.mubr.bf16.mxu0 %v4947_v0  ;;  %v1698_v59 = vrot.slane %v1697_v42, 4  ;;  %v1738_v31 = vshll.u32 %v1630_v53, 16  ;;  %v1742_v17 = vshrl.u32 %v1630_v53, 16  ;;  %v5470_v40 = vrot.slane %v1711_v18, 4  ;;  %v1635_v50 = vld [vmem:[#allocation2 + $0x30] sm:$0xf] }
  0xbe   : > { %4486 = vmatprep.subr.bf16.mxu1 %v5413_v62  ;;  %v1762_v42 = vshll.u32 %v1633_v11, 16  ;;  %v1766_v44 = vshrl.u32 %v1633_v11, 16  ;;  %v812_v14 = vsel %vm5391_vm7, %v557_v47, %v811_v16  ;;  %v1724_v48 = vshll.u32 %v1628_v23, 16  ;;  %v1638_v12 = vld [vmem:[#allocation2 + $0x3c] sm:$0xf] }
  0xbf   : > { %v1703_v19 = vsel %vm5449_vm10, %v1698_v59, %v1702_v54  ;;  %v5467_v25 = vrot.slane %v1738_v31, 5  ;;  %v1744_v28 = vrot.slane %v1742_v17, 4  ;;  %813 = vst [vmem:[#allocation2 + $0x5c] sm:$0x1] %v812_v14  ;;  %v1636_v54 = vld [vmem:[#allocation2 + $0x34] sm:$0xf]  ;;  %v1735_v39 = vor.u32 %v1734_v32, %v1731_v24 }
  0xc0   : > { %4415 = vmatmul.mubr.bf16.gmra.mxu1 %v4690_v63  ;;  %v5478_v53 = vcombine.low %v1693_v15, %v1703_v19  ;;  %v1755_v47 = vrot.slane %v1753_v29, 4  ;;  %v1758_v56 = vrot.slane %v1756_v30, 5  ;;  %v1639_v59 = vld [vmem:[#allocation2 + $0x40] sm:$0xf]  ;;  %v818_v60 = vld [vmem:[#allocation2 + $0x68] sm:$0x1] }
  0xc1   : > { %4418 = vmatprep.mubr.bf16.mxu1 %v5417_v3  ;;  %v1634_v21 = vld [vmem:[#allocation2 + $0x2c] sm:$0x1]  ;;  %v5481_v31 = vrot.slane %v1762_v42, 5  ;;  %v1768_v17 = vrot.slane %v1766_v44, 4  ;;  %v1780_v18 = vshll.u32 %v1635_v50, 16  ;;  %v1790_v11 = vshrl.u32 %v1636_v54, 16 }
  0xc2   : > { %v1801_v16 = vshrl.u32 %v1638_v12, 16  ;;  %v1726_v15 = vrot.slane %v1724_v48, 5  ;;  %v1804_v19 = vshll.u32 %v1638_v12, 16  ;;  %v1810_v23 = vshll.u32 %v1639_v59, 16  ;;  %v4717_v58 = vld [vmem:[#allocation6 + $0x218] ss:$12 sps:$4 sm:$0xff]  }
  0xc3   : > { %v819_v24 = vsel %vm5391_vm7, %v574_v51, %v818_v60  ;;  %v5487_v32 = vrot.slane %v1735_v39, 4  ;;  %v1772_v29 = vshll.u32 %v1634_v21, 16  ;;  %v1814_v30 = vshrl.u32 %v1639_v59, 16  ;;  %v1642_v39 = vld [vmem:[#allocation2 + $0x4c] sm:$0xf] }
  0xc4   : > { %1302 = vmatmul.mubr.bf16.gmra.mxu0 %v4690_v63  ;;  %v805_v63 = vsel %vm5391_vm7, %v540_v20, %v804_v55  ;;  %v5476_v20 = vrot.slane %v1721_v10, 4  ;;  %v1745_v55 = vor.u32 %v1744_v28, %v5467_v25  ;;  %v1786_v10 = vshll.u32 %v1636_v54, 16  ;;  %820 = vst [vmem:[#allocation2 + $0x68] sm:$0x1] %v819_v24  ;;  %v832_v60 = vld [vmem:[#allocation2 + $0x80] sm:$0x1] }
  0xc5   : > { %1311 = vmatprep.mubr.bf16.mxu0 %v4947_v0  ;;  %806 = vst [vmem:[#allocation2 + $0x50] sm:$0x1] %v805_v63  ;;  %v1777_v63 = vshrl.u32 %v1635_v50, 16  ;;  %v1759_v42 = vor.u32 %v1758_v56, %v1755_v47  ;;  %v1769_v44 = vor.u32 %v1768_v17, %v5481_v31  ;;  %v1782_v48 = vrot.slane %v1780_v18, 5  ;;  %v1641_v50 = vld [vmem:[#allocation2 + $0x48] sm:$0xf] }
  0xc6   : > { %v5489_v28 = vrot.slane %v1745_v55, 4  ;;  %v1792_v54 = vrot.slane %v1790_v11, 4  ;;  %v1803_v12 = vrot.slane %v1801_v16, 4  ;;  %v1727_v55 = vsel %vm5449_vm10, %v5476_v20, %v1726_v15  ;;  %v1637_v47 = vld [vmem:[#allocation2 + $0x38] sm:$0x1] }
  0xc7   : > { %v1779_v14 = vrot.slane %v1777_v63, 4  ;;  %v1806_v56 = vrot.slane %v1804_v19, 5  ;;  %v5506_v59 = vrot.slane %v1810_v23, 5  ;;  %v1816_v21 = vrot.slane %v1814_v30, 4  ;;  %v1644_v16 = vld [vmem:[#allocation2 + $0x54] sm:$0xf] }
  0xc8   : > { %4419 = vmatmul.mubr.bf16.gmra.mxu1 %v5428_v27  ;;  %v1825_v17 = vshrl.u32 %v1641_v50, 16  ;;  %v1828_v63 = vshll.u32 %v1641_v50, 16  ;;  %v1760_v18 = vrot.slane %v1759_v42, 4  ;;  %v1834_v11 = vshll.u32 %v1642_v39, 16  ;;  %v839_v42 = vld [vmem:[#allocation2 + $0x8c] sm:$0x1] }
  0xc9   : > { %4422 = vmatprep.mubr.bf16.mxu1 %v5431_v57  ;;  %v833_v15 = vsel %vm5391_vm7, %v608_v5, %v832_v60  ;;  %v1741_v45 = vsel %vm5449_vm10, %v5487_v32, %v5467_v25  ;;  %v1838_v23 = vshrl.u32 %v1642_v39, 16  ;;  %v1807_v24 = vor.u32 %v1806_v56, %v1803_v12  ;;  %v5528_v5 = vld [vmem:[#allocation2 + $0x58] sm:$0xf]  ;;  %v5549_v12 = vld [vmem:[#allocation2 + $0x64] sm:$0xf] }
  0xca   : > { %834 = vst [vmem:[#allocation2 + $0x80] sm:$0x1] %v833_v15  ;;  %v1817_v22 = vor.u32 %v1816_v21, %v5506_v59  ;;  %v1830_v30 = vrot.slane %v1828_v63, 5  ;;  %v1765_v25 = vsel %vm5449_vm10, %v1760_v18, %v5481_v31  ;;  %v846_v15 = vld [vmem:[#allocation2 + $0x98] sm:$0x1]  ;;  %vm2891_vm11 = vcmask 1042432  }
  0xcb   : > { %v1840_v31 = vrot.slane %v1838_v23, 4  ;;  %v5555_v39 = vrot.slane %v1807_v24, 4  ;;  %v5576_v23 = vld [vmem:[#allocation2 + $0x5c] sm:$0x1]  ;;  %v5701_v13 = vld [vmem:[#allocation2 + $0xa0] sm:$0xf] }
  0xcc   : > { %1312 = vmatmul.mubr.bf16.gmra.mxu0 %v5417_v3  ;;  %v1631_v3 = vld [vmem:[#allocation2 + $0x20] sm:$0x1]  ;;  %vm2892_vm12 = vcmask 1046532  }
  0xcd   : > { %1321 = vmatprep.mubr.bf16.mxu0 %v4947_v0  ;;  %v1748_v8 = vshll.u32 %v1631_v3, 16  ;;  %v5496_v3 = vrot.slane %v1786_v10, 5  ;;  %v1796_v10 = vshll.u32 %v1637_v47, 16  ;;  %v1643_v47 = vld [vmem:[#allocation2 + $0x50] sm:$0x1]  ;;  %vm5895_vm13 = vmor %vm2891_vm11, %vm2892_vm12 }
  0xcf   : > { %v5494_v51 = vrot.slane %v1748_v8, 5  ;;  %v1770_v8 = vrot.slane %v1769_v44, 4  ;;  %v1793_v20 = vor.u32 %v1792_v54, %v5496_v3  ;;  %v1849_v44 = vshrl.u32 %v1644_v16, 16 }
  0xd0   : > { %4423 = vmatmul.mubr.bf16.gmra.mxu1 %v5459_v9  ;;  %v1862_v54 = vshrl.u32 %v5528_v5, 16 }
  0xd1   : > { %4426 = vmatprep.mubr.bf16.mxu1 %v4742_v52  ;;  %v825_v52 = vld [vmem:[#allocation2 + $0x74] sm:$0x1]  ;;  %v5540_v50 = vrot.slane %v1793_v20, 4  ;;  %v1851_v60 = vrot.slane %v1849_v44, 4 }
  0xd4   : > { %1322 = vmatmul.mubr.bf16.gmra.mxu0 %v5428_v27  ;;  %v1717_v27 = vsel %vm5449_vm10, %v5470_v40, %v5441_v35  ;;  %v1774_v35 = vrot.slane %v1772_v29, 5  ;;  %v1783_v40 = vor.u32 %v1782_v48, %v1779_v14  ;;  %v1827_v29 = vrot.slane %v1825_v17, 4 }
  0xd5   : > { %1331 = vmatprep.mubr.bf16.mxu0 %v4947_v0  ;;  %v5517_v19 = vcombine.low %v1717_v27, %v1727_v55  ;;  %v1852_v14 = vshll.u32 %v1644_v16, 16  ;;  %v5557_v27 = vrot.slane %v1817_v22, 4  ;;  %v1864_v16 = vrot.slane %v1862_v54, 4 }
  0xd6   : > { %v1775_v32 = vsel %vm5449_vm10, %v1770_v8, %v1774_v35  ;;  %v5538_v48 = vrot.slane %v1783_v40, 4  ;;  %v1831_v56 = vor.u32 %v1830_v30, %v1827_v29  ;;  %v1886_v35 = vshrl.u32 %v5549_v12, 16  ;;  %v5565_v40 = vld [vmem:[#allocation2 + $0x70] sm:$0xf] }
  0xd7   : > { %v1854_v21 = vrot.slane %v1852_v14, 5  ;;  %v5561_v8 = vcombine.low %v1765_v25, %v1775_v32  ;;  %v5585_v25 = vld [vmem:[#allocation6 + $0x200] ss:$12 sps:$4 sm:$0xff]  }
  0xd8   : > { %4427 = vmatmul.mubr.bf16.gmra.mxu1 %v4743_v43  ;;  %v1647_v43 = vld [vmem:[#allocation2 + $0x60] sm:$0xf]  ;;  %v1789_v20 = vsel %vm5449_vm10, %v5538_v48, %v5496_v3  ;;  %v1906_v3 = vshll.u32 %v5565_v40, 16  ;;  %v1888_v44 = vrot.slane %v1886_v35, 4 }
  0xd9   : > { %4430 = vmatprep.mubr.bf16.mxu1 %v5283_v2  ;;  %v826_v2 = vsel %vm5391_vm7, %v591_v61, %v825_v52  ;;  %v1751_v61 = vsel %vm5449_vm10, %v5489_v28, %v5494_v51  ;;  %v1640_v28 = vld [vmem:[#allocation2 + $0x44] sm:$0x1]  ;;  %v5542_v52 = vrot.slane %v1796_v10, 5  ;;  %v1858_v51 = vshll.u32 %v5528_v5, 16 }
  0xda   : > { %827 = vst [vmem:[#allocation2 + $0x74] sm:$0x1] %v826_v2  ;;  %v1820_v55 = vshll.u32 %v1640_v28, 16  ;;  %v1873_v17 = vshrl.u32 %v1647_v43, 16  ;;  %v1876_v63 = vshll.u32 %v1647_v43, 16  ;;  %v5559_v18 = vcombine.low %v1741_v45, %v1751_v61 }
  0xdb   : > { %v1650_v2 = vld [vmem:[#allocation2 + $0x6c] sm:$0xf]  ;;  %v5574_v45 = vrot.slane %v1831_v56, 4  ;;  %v1844_v61 = vshll.u32 %v1643_v47, 16  ;;  %v1855_v29 = vor.u32 %v1854_v21, %v1851_v60  ;;  %v1868_v43 = vshll.u32 %v5576_v23, 16 }
  0xdc   : > { %1332 = vmatmul.mubr.bf16.gmra.mxu0 %v5431_v57  ;;  %v5544_v57 = vrot.slane %v1834_v11, 5  ;;  %v5572_v11 = vrot.slane %v1858_v51, 5  ;;  %v1897_v24 = vshrl.u32 %v1650_v2, 16  ;;  %v1900_v22 = vshll.u32 %v1650_v2, 16  ;;  %v5617_v21 = vld [vmem:[#allocation2 + $0x7c] sm:$0xf] }
  0xdd   : > { %1341 = vmatprep.mubr.bf16.mxu0 %v4947_v0  ;;  %v5579_v30 = vrot.slane %v1873_v17, 4  ;;  %v1878_v32 = vrot.slane %v1876_v63, 5  ;;  %v5595_v14 = vrot.slane %v1820_v55, 5  ;;  %v1799_v26 = vsel %vm5449_vm10, %v5540_v50, %v5542_v52  ;;  %v4711_v50 = vld [vmem:[#allocation6 + $0x228] ss:$12 sps:$4 sm:$0xff]  }
  0xde   : > { %v1841_v10 = vor.u32 %v1840_v31, %v5544_v57  ;;  %v853_v31 = vld [vmem:[#allocation2 + $0xa4] sm:$0x1]  ;;  %v1899_v51 = vrot.slane %v1897_v24, 4  ;;  %v1902_v54 = vrot.slane %v1900_v22, 5  ;;  %v5611_v55 = vrot.slane %v1844_v61, 5 }
  0xdf   : > { %v5613_v47 = vrot.slane %v1855_v29, 4  ;;  %v5615_v56 = vrot.slane %v1906_v3, 5  ;;  %v2948_v52 = vrot.slane %v5576_v23, 5  ;;  %v1879_v17 = vor.u32 %v1878_v32, %v5579_v30  ;;  %v4714_v61 = vld [vmem:[#allocation6 + $0x210] ss:$12 sps:$4 sm:$0xff]  }
  0xe0   : > { %4431 = vmatmul.mubr.bf16.gmra.mxu1 %v5297_v37  ;;  %v840_v37 = vsel %vm5391_vm7, %v625_v7, %v839_v42  ;;  %v1882_v7 = vshll.u32 %v5549_v12, 16  ;;  %v1910_v42 = vshrl.u32 %v5565_v40, 16  ;;  %v5597_v48 = vrot.slane %v1841_v10, 4  ;;  %v4716_v24 = vld [vmem:[#allocation6 + $0x214] ss:$12 sps:$4 sm:$0xff]  }
  0xe1   : > { %2377 = vmatprep.mubr.bf16.mxu1 %v4947_v0  ;;  %841 = vst [vmem:[#allocation2 + $0x8c] sm:$0x1] %v840_v37  ;;  %v1653_v37 = vld [vmem:[#allocation2 + $0x78] sm:$0xf]  ;;  %v854_v2 = vsel %vm5391_vm7, %v659_v49, %v853_v31  ;;  %v5629_v22 = vrot.slane %v1868_v43, 5  ;;  %v1903_v29 = vor.u32 %v1902_v54, %v1899_v51  ;;  %v1930_v38 = vshll.u32 %v5617_v21, 16 }
  0xe2   : > { %v5587_v28 = vrot.slane %v1882_v7, 5  ;;  %v1912_v60 = vrot.slane %v1910_v42, 4  ;;  %v860_v7 = vld [vmem:[#allocation2 + $0xb0] sm:$0x1]  ;;  %855 = vst [vmem:[#allocation2 + $0xa4] sm:$0x1] %v854_v2  ;;  %v1837_v3 = vsel %vm5449_vm10, %v5574_v45, %v5544_v57  ;;  %v1847_v57 = vsel %vm5449_vm10, %v5597_v48, %v5611_v55 }
  0xe3   : > { %v1934_v49 = vshrl.u32 %v5617_v21, 16  ;;  %v4720_v30 = vld [vmem:[#allocation6 + $0x1fc] ss:$12 sps:$4 sm:$0xff]   ;;  %v1656_v32 = vld [vmem:[#allocation2 + $0x84] sm:$0xf]  ;;  %v5657_v45 = vrot.slane %v1879_v17, 4 }
  0xe4   : > { %1342 = vmatmul.mubr.bf16.gmra.mxu0 %v5459_v9  ;;  %v847_v9 = vsel %vm5391_vm7, %v642_v6, %v846_v15  ;;  %v5609_v6 = vld [vmem:[#allocation2 + $0x68] sm:$0x1]  ;;  %v1889_v63 = vor.u32 %v1888_v44, %v5587_v28  ;;  %v1924_v15 = vshll.u32 %v1653_v37, 16  ;;  %v1913_v42 = vor.u32 %v1912_v60, %v5615_v56  ;;  %v5661_v34 = vld [vmem:[#allocation2 + $0x74] sm:$0x1] }
  0xe5   : > { %4450 = vmatprep.mubr.bf16.mxu0 %v5478_v53  ;;  %848 = vst [vmem:[#allocation2 + $0x98] sm:$0x1] %v847_v9  ;;  %v1892_v10 = vshll.u32 %v5609_v6, 16  ;;  %v5642_v44 = vld [vmem:[#allocation2 + $0x88] sm:$0xf]  ;;  %v5669_v48 = vrot.slane %v1903_v29, 4 }
  0xe6   : > { %v4731_v9 = vld [vmem:[#allocation6 + $0x1e8] ss:$12 sps:$4 sm:$0xff]   ;;  %v5659_v43 = vrot.slane %v1889_v63, 4  ;;  %v1926_v31 = vrot.slane %v1924_v15, 5  ;;  %v5671_v51 = vrot.slane %v1930_v38, 5  ;;  %v5673_v54 = vrot.slane %v1934_v49, 4 }
  0xe7   : > { %v4718_v55 = vld [vmem:[#allocation6 + $0x1f8] ss:$12 sps:$4 sm:$0xff]   ;;  %v5675_v60 = vrot.slane %v1913_v42, 4  ;;  %v1948_v17 = vshll.u32 %v1656_v32, 16  ;;  %v1954_v63 = vshll.u32 %v5642_v44, 16  ;;  %v1861_v38 = vsel %vm5449_vm10, %v5613_v47, %v5572_v11 }
  0xe8   : > { %2378 = vmatmul.mubr.bf16.vlgmr.msra.gmra.mxu1 %v5478_v53  ;;  %v1865_v53 = vor.u32 %v1864_v16, %v5572_v11  ;;  %v1921_v16 = vshrl.u32 %v1653_v37, 16  ;;  %v1945_v37 = vshrl.u32 %v1656_v32, 16  ;;  %v5679_v2 = vld [vmem:[#allocation2 + $0x94] sm:$0xf]  ;;  %v1662_v15 = vld [vmem:[#allocation2 + $0x9c] sm:$0xf] }
  0xe9   : > { %4487 = vmatpush3.bf16.msra.mxu1 %v5413_v62  ;;  %2385 = vmatprep.mubr.bf16.mxu1 %v4947_v0  ;;  %v1813_v62 = vsel %vm5449_vm10, %v5555_v39, %v5506_v59  ;;  %v5699_v49 = vld [vmem:[#allocation2 + $0x80] sm:$0x1]  ;;  %v4721_v11 = vld [vmem:[#allocation6 + $0x1e0] ss:$12 sps:$4 sm:$0xff]   ;;  %v5711_v47 = vld [vmem:[#allocation2 + $0x8c] sm:$0x1] }
  0xea   : > { %4488 = vmatprep.subr.bf16.mxu1 %v4717_v58  ;;  %v5626_v35 = vrot.slane %v1865_v53, 4  ;;  %v861_v53 = vsel %vm5391_vm7, %v676_v36, %v860_v7  ;;  %v1659_v36 = vld [vmem:[#allocation2 + $0x90] sm:$0xf]  ;;  %v1958_v7 = vshrl.u32 %v5642_v44, 16  ;;  %v5715_v42 = vrot.slane %v1954_v63, 5 }
  0xeb   : > { %862 = vst [vmem:[#allocation2 + $0xb0] sm:$0x1] %v861_v53  ;;  %v1978_v32 = vshll.u32 %v5679_v2, 16  ;;  %v1937_v63 = vor.u32 %v5673_v54, %v5671_v51  ;;  %v4725_v54 = vld [vmem:[#allocation6 + $0x1c8] ss:$12 sps:$4 sm:$0xff]  }
  0xec   : > { %4451 = vmatmul.mubr.bf16.vlgmr.msra.gmra.mxu0 %v5517_v19 }
  0xed   : > { %4489 = vmatpush3.bf16.msra.mxu1 %v4717_v58  ;;  %v5635_v58 = vcombine.low %v1789_v20, %v1799_v26  ;;  %3254 = vmatpush1.bf16.msra.mxu0 %v4711_v50  ;;  %v1823_v20 = vsel %vm5449_vm10, %v5557_v27, %v5595_v14  ;;  %v2955_v27 = vrot.slane %v5609_v6, 5  ;;  %v1923_v14 = vrot.slane %v1921_v16, 4  ;;  %v867_v26 = vld [vmem:[#allocation2 + $0xbc] sm:$0x1] }
  0xee   : > { %4490 = vmatprep.subr.bf16.mxu1 %v5585_v25  ;;  %4454 = vmatprep.mubr.bf16.mxu0 %v5559_v18  ;;  %v1916_v50 = vshll.u32 %v5661_v34, 16  ;;  %v1972_v16 = vshll.u32 %v1659_v36, 16  ;;  %v5691_v29 = vcombine.low %v1813_v62, %v1823_v20  ;;  %v5708_v62 = vrot.slane %v1945_v37, 4 }
  0xef   : > { %3255 = vmatprep.subr.bf16.mxu0 %v4716_v24  ;;  %v868_v24 = vsel %vm5391_vm7, %v693_v4, %v867_v26  ;;  %v1871_v4 = vsel %vm5449_vm10, %v5626_v35, %v5629_v22  ;;  %v1927_v39 = vor.u32 %v1926_v31, %v1923_v14  ;;  %v1982_v35 = vshrl.u32 %v5679_v2, 16  ;;  %v4727_v22 = vld [vmem:[#allocation6 + $0x1cc] ss:$12 sps:$4 sm:$0xff]  }
  0xf0   : > { %2386 = vmatmul.mubr.bf16.gmra.mxu1 %v5517_v19  ;;  %v5665_v19 = vrot.slane %v1892_v10, 5  ;;  %v1969_v10 = vshrl.u32 %v1659_v36, 16  ;;  %869 = vst [vmem:[#allocation2 + $0xbc] sm:$0x1] %v868_v24  ;;  %v1974_v20 = vrot.slane %v1972_v16, 5  ;;  %v5724_v14 = vrot.slane %v1916_v50, 5 }
  0xf1   : > { %2395 = vmatprep.mubr.bf16.mxu1 %v4947_v0  ;;  %4491 = vmatpush3.bf16.msra.mxu1 %v5585_v25  ;;  %v4723_v25 = vld [vmem:[#allocation6 + $0x1e4] ss:$12 sps:$4 sm:$0xff]   ;;  %v1996_v31 = vshll.u32 %v1662_v15, 16  ;;  %v2002_v26 = vshll.u32 %v5701_v13, 16  ;;  %v2006_v37 = vshrl.u32 %v5701_v13, 16  ;;  %v5739_v50 = vrot.slane %v1978_v32, 5 }
  0xf2   : > { %4492 = vmatprep.subr.bf16.mxu1 %v4731_v9  ;;  %3256 = vmatpush1.bf16.msra.mxu0 %v4714_v61  ;;  %v5693_v61 = vcombine.low %v1837_v3, %v1847_v57  ;;  %v5713_v3 = vrot.slane %v1948_v17, 5  ;;  %v5721_v53 = vrot.slane %v1969_v10, 4  ;;  %v1993_v57 = vshrl.u32 %v1662_v15, 16  ;;  %v874_v36 = vld [vmem:[#allocation2 + $0xc8] sm:$0x1] }
  0xf3   : > { %3257 = vmatprep.subr.bf16.mxu0 %v4720_v30  ;;  %v4738_v30 = vld [vmem:[#allocation6 + $0x1d0] ss:$12 sps:$4 sm:$0xff]   ;;  %v5730_v17 = vrot.slane %v1927_v39, 4  ;;  %v5735_v10 = vld [vmem:[#allocation2 + $0x98] sm:$0x1]  ;;  %v1984_v16 = vrot.slane %v1982_v35, 4  ;;  %v1885_v32 = vsel %vm5449_vm10, %v5657_v45, %v5587_v28  ;;  %v1895_v35 = vsel %vm5449_vm10, %v5659_v43, %v5665_v19 }
  0xf4   : > { %4455 = vmatmul.mubr.bf16.gmra.mxu0 %v5561_v8  ;;  %v1665_v15 = vld [vmem:[#allocation2 + $0xa8] sm:$0xf]  ;;  %v4739_v24 = vld [vmem:[#allocation6 + $0x1b8] ss:$12 sps:$4 sm:$0xff]   ;;  %v1975_v39 = vor.u32 %v1974_v20, %v5721_v53  ;;  %v5748_v59 = vrot.slane %v1993_v57, 4  ;;  %v1988_v1 = vshll.u32 %v5735_v10, 16  ;;  %v1909_v20 = vsel %vm5449_vm10, %v5669_v48, %v5615_v56 }
  0xf5   : > { %4493 = vmatpush3.bf16.msra.mxu1 %v4731_v9  ;;  %4458 = vmatprep.mubr.bf16.mxu0 %v5635_v58  ;;  %v1960_v9 = vrot.slane %v1958_v7, 4  ;;  %v1940_v7 = vshll.u32 %v5699_v49, 16  ;;  %v1998_v33 = vrot.slane %v1996_v31, 5  ;;  %v2020_v53 = vshll.u32 %v1665_v15, 16  ;;  %v4728_v57 = vld [vmem:[#allocation6 + $0x1b0] ss:$12 sps:$4 sm:$0xff]  }
  0xf6   : > { %3258 = vmatpush1.bf16.msra.mxu0 %v4718_v55  ;;  %4494 = vmatprep.subr.bf16.mxu1 %v4738_v30  ;;  %v1951_v55 = vor.u32 %v5713_v3, %v5708_v62  ;;  %v5750_v62 = vld [vmem:[#allocation2 + $0xac] sm:$0xf]  ;;  %v1985_v28 = vor.u32 %v1984_v16, %v5739_v50  ;;  %v4740_v43 = vld [vmem:[#allocation6 + $0x1a0] ss:$12 sps:$4 sm:$0xff]   ;;  %v1919_v19 = vsel %vm5449_vm10, %v5675_v60, %v5724_v14  ;;  %v4734_v31 = vld [vmem:[#allocation6 + $0x19c] ss:$12 sps:$4 sm:$0xff]  }
  0xf7   : > { %3259 = vmatprep.subr.bf16.mxu0 %v4723_v25  ;;  %v875_v25 = vsel %vm5391_vm7, %v710_v46, %v874_v36  ;;  %v4730_v3 = vld [vmem:[#allocation6 + $0x1b4] ss:$12 sps:$4 sm:$0xff]   ;;  %v5753_v46 = vrot.slane %v2002_v26, 5  ;;  %v2026_v45 = vshll.u32 %v5750_v62, 16  ;;  %v2030_v36 = vshrl.u32 %v5750_v62, 16 }
  0xf8   : > { %2396 = vmatmul.mubr.bf16.gmra.mxu1 %v5559_v18  ;;  %v5728_v18 = vcombine.low %v1861_v38, %v1871_v4  ;;  %v1961_v38 = vor.u32 %v1960_v9, %v5715_v42  ;;  %v1964_v4 = vshll.u32 %v5711_v47, 16  ;;  %876 = vst [vmem:[#allocation2 + $0xc8] sm:$0x1] %v875_v25  ;;  %v2017_v9 = vshrl.u32 %v1665_v15, 16  ;;  %v1668_v15 = vld [vmem:[#allocation2 + $0xb4] sm:$0xf] }
  0xf9   : > { %2405 = vmatprep.mubr.bf16.mxu1 %v4947_v0  ;;  %4495 = vmatpush3.bf16.msra.mxu1 %v4738_v30  ;;  %v2008_v30 = vrot.slane %v2006_v37, 4  ;;  %v5781_v56 = vrot.slane %v1940_v7, 5  ;;  %v5783_v48 = vrot.slane %v1951_v55, 4  ;;  %v5790_v37 = vrot.slane %v1975_v39, 4  ;;  %v5795_v55 = vld [vmem:[#allocation2 + $0xb8] sm:$0xf] }
  0xfa   : > { %3260 = vmatpush1.bf16.msra.mxu0 %v4721_v11  ;;  %4496 = vmatprep.subr.bf16.mxu1 %v4739_v24  ;;  %v5763_v11 = vld [vmem:[#allocation2 + $0xa4] sm:$0x1]  ;;  %v5786_v26 = vrot.slane %v1961_v38, 4  ;;  %v1999_v16 = vor.u32 %v1998_v33, %v5748_v59  ;;  %v2022_v7 = vrot.slane %v2020_v53, 5  ;;  %v5797_v25 = vrot.slane %v1985_v28, 4 }
  0xfb   : > { %3261 = vmatprep.subr.bf16.mxu0 %v4727_v22  ;;  %v5779_v22 = vrot.slane %v1937_v63, 4  ;;  %v2009_v60 = vor.u32 %v2008_v30, %v5753_v46  ;;  %v2012_v14 = vshll.u32 %v5763_v11, 16  ;;  %v2019_v63 = vrot.slane %v2017_v9, 4  ;;  %v1671_v59 = vld [vmem:[#allocation2 + $0xc0] sm:$0xf] }
  0xfc   : > { %4459 = vmatmul.mubr.bf16.gmra.mxu0 %v5691_v29  ;;  %v5801_v38 = vrot.slane %v2026_v45, 5  ;;  %v5803_v39 = vcombine.low %v1885_v32, %v1895_v35  ;;  %v1933_v33 = vsel %vm5449_vm10, %v5730_v17, %v5671_v51  ;;  %v5815_v30 = vld [vmem:[#allocation2 + $0xb0] sm:$0x1]  ;;  %v2041_v9 = vshrl.u32 %v1668_v15, 16  ;;  %v4737_v17 = vld [vmem:[#allocation6 + $0x184] ss:$12 sps:$4 sm:$0xff]  }
  0xfd   : > { %4497 = vmatpush3.bf16.msra.mxu1 %v4739_v24  ;;  %4462 = vmatprep.mubr.bf16.mxu0 %v5693_v61  ;;  %v5799_v24 = vrot.slane %v1988_v1, 5  ;;  %v1943_v1 = vsel %vm5449_vm10, %v5779_v22, %v5781_v56  ;;  %v2044_v53 = vshll.u32 %v1668_v15, 16  ;;  %v2050_v32 = vshll.u32 %v5795_v55, 16 }
  0xfe   : > { %3262 = vmatpush1.bf16.msra.mxu0 %v4725_v54  ;;  %4498 = vmatprep.subr.bf16.mxu1 %v4740_v43  ;;  %v4732_v54 = vld [vmem:[#allocation6 + $0x198] ss:$12 sps:$4 sm:$0xff]   ;;  %v2054_v35 = vshrl.u32 %v5795_v55, 16  ;;  %v2000_v28 = vrot.slane %v1999_v16, 4  ;;  %v2010_v45 = vrot.slane %v2009_v60, 4  ;;  %v2023_v51 = vor.u32 %v2022_v7, %v2019_v63 }
  0xff   : > { %3263 = vmatprep.subr.bf16.mxu0 %v4730_v3  ;;  %v5805_v3 = vcombine.low %v1909_v20, %v1919_v19  ;;  %v4741_v20 = vld [vmem:[#allocation6 + $0x188] ss:$12 sps:$4 sm:$0xff]   ;;  %v2036_v19 = vshll.u32 %v5815_v30, 16  ;;  %v2068_v22 = vshll.u32 %v1671_v59, 16  ;;  %v2969_v56 = vrot.slane %v5699_v49, 5 }
 0x100   : > { %2406 = vmatmul.mubr.bf16.gmra.mxu1 %v5561_v8  ;;  %v5788_v8 = vrot.slane %v1964_v4, 5  ;;  %v2032_v4 = vrot.slane %v2030_v36, 4  ;;  %v2014_v36 = vrot.slane %v2012_v14, 5  ;;  %v1981_v15 = vsel %vm5449_vm10, %v5790_v37, %v5739_v50  ;;  %v4735_v7 = vld [vmem:[#allocation6 + $0x180] ss:$12 sps:$4 sm:$0xff]  }
 0x101   : > { %2415 = vmatprep.mubr.bf16.mxu1 %v4947_v0  ;;  %4499 = vmatpush3.bf16.msra.mxu1 %v4740_v43  ;;  %v2046_v60 = vrot.slane %v2044_v53, 5  ;;  %v5838_v14 = vrot.slane %v2050_v32, 5  ;;  %v2056_v63 = vrot.slane %v2054_v35, 4  ;;  %v5851_v37 = vld [vmem:[#allocation2 + $0xc4] sm:$0xf]  ;;  %v5853_v53 = vcombine.low %v1933_v33, %v1943_v1 }
 0x102   : > { %3264 = vmatpush1.bf16.msra.mxu0 %v4728_v57  ;;  %v2033_v43 = vor.u32 %v2032_v4, %v5801_v38  ;;  %v2065_v57 = vshrl.u32 %v1671_v59, 16  ;;  %4500 = vmatprep.subr.bf16.mxu1 %v4741_v20  ;;  %v1967_v16 = vsel %vm5449_vm10, %v5786_v26, %v5788_v8  ;;  %v2015_v50 = vsel %vm5449_vm10, %v2010_v45, %v2014_v36  ;;  %v5849_v8 = vld [vmem:[#allocation2 + $0xbc] sm:$0x1]  ;;  %v1674_v32 = vld [vmem:[#allocation2 + $0xcc] sm:$0xf] }
 0x103   : > { %3265 = vmatprep.subr.bf16.mxu0 %v4734_v31  ;;  %v1957_v31 = vsel %vm5449_vm10, %v5783_v48, %v5715_v42  ;;  %v1991_v42 = vsel %vm5449_vm10, %v5797_v25, %v5799_v24  ;;  %v2005_v48 = vsel %vm5449_vm10, %v2000_v28, %v5753_v46  ;;  %v2024_v26 = vrot.slane %v2023_v51, 4  ;;  %v5862_v36 = vld [vmem:[#allocation2 + $0xd0] sm:$0xf] }
 0x104   : > { %4463 = vmatmul.mubr.bf16.gmra.mxu0 %v5728_v18  ;;  %v2038_v4 = vrot.slane %v2036_v19, 5  ;;  %v2067_v59 = vrot.slane %v2065_v57, 4  ;;  %v5855_v25 = vcombine.low %v1957_v31, %v1967_v16  ;;  %v2976_v46 = vrot.slane %v5711_v47, 5  ;;  %v2826_v31 = vld [vmem:[#allocation2 + $0x54] sm:$0xe] }
 0x105   : > { %4466 = vmatprep.mubr.bf16.mxu0 %v5803_v39  ;;  %4501 = vmatpush3.bf16.msra.mxu1 %v4741_v20  ;;  %v2057_v28 = vor.u32 %v2056_v63, %v5838_v14  ;;  %v2060_v45 = vshll.u32 %v5849_v8, 16  ;;  %v2074_v20 = vshll.u32 %v5851_v37, 16  ;;  %v5864_v51 = vcombine.low %v1981_v15, %v1991_v42  ;;  %v2831_v24 = vld [vmem:[#allocation2 + $0x90] sm:$0xe] }
 0x106   : > { %3266 = vmatpush1.bf16.msra.mxu0 %v4732_v54  ;;  %v2034_v54 = vrot.slane %v2033_v43, 4  ;;  %v5866_v33 = vcombine.low %v2005_v48, %v2015_v50  ;;  %v2029_v43 = vsel %vm5449_vm10, %v2024_v26, %v5801_v38  ;;  %v2092_v16 = vshll.u32 %v1674_v32, 16  ;;  %v2828_v26 = vld [vmem:[#allocation2 + $0x6c] sm:$0xe] }
 0x107   : > { %3267 = vmatprep.subr.bf16.mxu0 %v4737_v17  ;;  %v2078_v17 = vshrl.u32 %v5851_v37, 16  ;;  %v2098_v15 = vshll.u32 %v5862_v36, 16  ;;  %v5882_v38 = vrot.slane %v2057_v28, 4  ;;  %v5884_v63 = vrot.slane %v2060_v45, 5  ;;  %v5902_v45 = vld [vmem:[#allocation2 + $0xc8] sm:$0x1] }
 0x108   : > { %2416 = vmatmul.mubr.bf16.gmra.mxu1 %v5635_v58  ;;  %v2043_v58 = vrot.slane %v2041_v9, 4  ;;  %v2070_v9 = vrot.slane %v2068_v22, 5  ;;  %v2039_v19 = vsel %vm5449_vm10, %v2034_v54, %v2038_v4  ;;  %v2089_v22 = vshrl.u32 %v1674_v32, 16 }
 0x109   : > { %2425 = vmatprep.mubr.bf16.mxu1 %v4947_v0  ;;  %v2080_v42 = vrot.slane %v2078_v17, 4  ;;  %v4209_v48 = vrot.slane %v2826_v31, 9  ;;  %v2945_v50 = vrot.slane %v5528_v5, 5  ;;  %v2952_v32 = vrot.slane %v5549_v12, 5 }
 0x10a   : > { %v2047_v35 = vor.u32 %v2046_v60, %v2043_v58  ;;  %3268 = vmatpush1.bf16.msra.mxu0 %v4735_v7  ;;  %v2071_v57 = vor.u32 %v2070_v9, %v2067_v59  ;;  %v2827_v58 = vld [vmem:[#allocation2 + $0x60] sm:$0xe]  ;;  %v5886_v7 = vrot.slane %v2074_v20, 5  ;;  %v5892_v4 = vrot.slane %v2089_v22, 4 }
 0x10b   : > { %v4210_v9 = vrot.slane %v2827_v58, 9  ;;  %v5900_v28 = vcombine.low %v2029_v43, %v2039_v19  ;;  %v5904_v20 = vrot.slane %v2092_v16, 5  ;;  %v5906_v5 = vrot.slane %v2098_v15, 5 }
 0x10c   : > { %4467 = vmatmul.mubr.bf16.gmra.mxu0 %v5805_v3  ;;  %v5880_v60 = vrot.slane %v2047_v35, 4  ;;  %v5890_v54 = vrot.slane %v2071_v57, 4  ;;  %v2829_v35 = vld [vmem:[#allocation2 + $0x78] sm:$0xe]  ;;  %v2946_v17 = vsel %vm5895_vm13, %v4209_v48, %v2945_v50  ;;  %v2830_v57 = vld [vmem:[#allocation2 + $0x84] sm:$0xe]  ;;  %v2081_v12 = vor.u32 %v2080_v42, %v5886_v7 }
 0x10d   : > { %4470 = vmatprep.mubr.bf16.mxu0 %v5853_v53  ;;  %v2947_v22 = vrot.slane %v2945_v50, 4  ;;  %v2953_v31 = vsel %vm5895_vm13, %v4210_v9, %v2952_v32  ;;  %v2954_v58 = vrot.slane %v2952_v32, 4  ;;  %v4211_v1 = vrot.slane %v2828_v26, 9 }
 0x10e   : > { %v2959_v43 = vrot.slane %v5565_v40, 5  ;;  %v4212_v19 = vrot.slane %v2829_v35, 9  ;;  %v2966_v16 = vrot.slane %v5617_v21, 5  ;;  %v2084_v15 = vshll.u32 %v5902_v45, 16 }
 0x10f   : > { %v2949_v48 = vsel %vm5895_vm13, %v2947_v22, %v2948_v52  ;;  %v2956_v42 = vsel %vm5895_vm13, %v2954_v58, %v2955_v27  ;;  %v4213_v50 = vrot.slane %v2830_v57, 9  ;;  %v2973_v27 = vrot.slane %v5642_v44, 5  ;;  %v2832_v57 = vld [vmem:[#allocation2 + $0x9c] sm:$0xe] }
 0x110   : > { %2426 = vmatmul.mubr.bf16.gmra.mxu1 %v5691_v29  ;;  %v2102_v29 = vshrl.u32 %v5862_v36, 16  ;;  %v5927_v40 = vcombine.low %v2946_v17, %v2949_v48  ;;  %v5929_v21 = vcombine.low %v2953_v31, %v2956_v42  ;;  %v2960_v23 = vsel %vm5895_vm13, %v4211_v1, %v2959_v43 }
 0x111   : > { %2435 = vmatprep.mubr.bf16.mxu1 %v4947_v0  ;;  %v2961_v26 = vrot.slane %v2959_v43, 4  ;;  %v2967_v6 = vsel %vm5895_vm13, %v4212_v19, %v2966_v16  ;;  %v2968_v52 = vrot.slane %v2966_v16, 4  ;;  %v4214_v9 = vrot.slane %v2831_v24, 9  ;;  %v5955_v19 = vld [vmem:[#allocation2 + $0xd4] sm:$0x1] }
 0x112   : > { %v6814_v32 = vrot.slane %v5661_v34, 5  ;;  %v2980_v17 = vrot.slane %v5679_v2, 5  ;;  %v2987_v1 = vrot.slane %v5701_v13, 5  ;;  %v2974_v44 = vsel %vm5895_vm13, %v4213_v50, %v2973_v27 }
 0x113   : > { %v2970_v31 = vsel %vm5895_vm13, %v2968_v52, %v2969_v56  ;;  %v2975_v24 = vrot.slane %v2973_v27, 4  ;;  %v4215_v58 = vrot.slane %v2832_v57, 9  ;;  %v2082_v43 = vrot.slane %v2081_v12, 4 }
 0x114   : > { %4471 = vmatmul.mubr.bf16.gmra.mxu0 %v5855_v25  ;;  %v2963_v35 = vsel %vm5895_vm13, %v2961_v26, %v6814_v32  ;;  %v5951_v34 = vcombine.low %v2967_v6, %v2970_v31  ;;  %v2982_v2 = vrot.slane %v2980_v17, 4  ;;  %v2086_v13 = vrot.slane %v2084_v15, 5  ;;  %v2819_v31 = vld [vmem:[#allocation2] sm:$0xe] }
 0x115   : > { %4474 = vmatprep.mubr.bf16.mxu0 %v5864_v51  ;;  %v5943_v22 = vcombine.low %v2960_v23, %v2963_v35  ;;  %v2977_v49 = vsel %vm5895_vm13, %v2975_v24, %v2976_v46  ;;  %v2989_v56 = vrot.slane %v2987_v1, 4  ;;  %v6815_v48 = vrot.slane %v5735_v10, 5  ;;  %v2834_v24 = vld [vmem:[#allocation2 + $0xb4] sm:$0xe] }
 0x116   : > { %v5961_v16 = vcombine.low %v2974_v44, %v2977_v49  ;;  %v2988_v50 = vsel %vm5895_vm13, %v4215_v58, %v2987_v1  ;;  %v2053_v47 = vsel %vm5449_vm10, %v5880_v60, %v5838_v14  ;;  %v2063_v46 = vsel %vm5449_vm10, %v5882_v38, %v5884_v63 }
 0x117   : > { %v2984_v42 = vsel %vm5895_vm13, %v2982_v2, %v6815_v48  ;;  %v6816_v10 = vrot.slane %v5763_v11, 5  ;;  %v2095_v23 = vor.u32 %v5904_v20, %v5892_v4  ;;  %v2108_v60 = vshll.u32 %v5955_v19, 16  ;;  %v2833_v4 = vld [vmem:[#allocation2 + $0xa8] sm:$0xe]  ;;  %v2820_v48 = vld [vmem:[#allocation2 + $0xc] sm:$0xe] }
 0x118   : > { %2436 = vmatmul.mubr.bf16.gmra.mxu1 %v5693_v61  ;;  %v2104_v61 = vrot.slane %v2102_v29, 4  ;;  %v2981_v29 = vsel %vm5895_vm13, %v4214_v9, %v2980_v17  ;;  %v2997_v11 = vrot.slane %v5815_v30, 5  ;;  %v2087_v38 = vsel %vm5449_vm10, %v2082_v43, %v2086_v13  ;;  %v4744_v17 = vld [vmem:[#allocation2 + $0x4] sm:$0xf] }
 0x119   : > { %2445 = vmatprep.mubr.bf16.mxu1 %v4947_v0  ;;  %v5978_v12 = vcombine.low %v2981_v29, %v2984_v42  ;;  %v2991_v15 = vsel %vm5895_vm13, %v2989_v56, %v6816_v10  ;;  %v2994_v63 = vrot.slane %v5750_v62, 5  ;;  %v6001_v20 = vcombine.low %v2053_v47, %v2063_v46  ;;  %v4746_v42 = vld [vmem:[#allocation2 + $0x10] sm:$0xf]  ;;  %v2835_v10 = vld [vmem:[#allocation2 + $0xc0] sm:$0xe] }
 0x11a   : > { %v2105_v14 = vor.u32 %v2104_v61, %v5906_v5  ;;  %v5990_v26 = vcombine.low %v2988_v50, %v2991_v15  ;;  %v4216_v6 = vrot.slane %v2833_v4, 9  ;;  %v2096_v9 = vrot.slane %v2095_v23, 4 }
 0x11b   : > { %v2996_v52 = vrot.slane %v2994_v63, 4  ;;  %v2110_v30 = vrot.slane %v2108_v60, 5  ;;  %v2896_v57 = vrot.slane %v4744_v17, 5  ;;  %v3004_v1 = vrot.slane %v5849_v8, 5  ;;  %v2836_v60 = vld [vmem:[#allocation2 + $0xcc] sm:$0xe] }
 0x11c   : > { %4475 = vmatmul.mubr.bf16.gmra.mxu0 %v5866_v33  ;;  %v2106_v61 = vrot.slane %v2105_v14, 4  ;;  %v2995_v32 = vsel %vm5895_vm13, %v4216_v6, %v2994_v63  ;;  %v2101_v62 = vsel %vm5449_vm10, %v2096_v9, %v5906_v5  ;;  %v3001_v44 = vrot.slane %v5795_v55, 5  ;;  %v4745_v5 = vld [vmem:[#allocation2 + $0x8] sm:$0x1]  ;;  %v4747_v6 = vld [vmem:[#allocation2 + $0x14] sm:$0x1] }
 0x11d   : > { %4478 = vmatprep.mubr.bf16.mxu0 %v5900_v28  ;;  %v4217_v29 = vrot.slane %v2834_v24, 9  ;;  %v4202_v58 = vrot.slane %v2819_v31, 9  ;;  %v2898_v43 = vrot.slane %v2896_v57, 4  ;;  %v2899_v13 = vrot.slane %v4745_v5, 5  ;;  %v4749_v31 = vld [vmem:[#allocation2 + $0x20] sm:$0x1] }
 0x11e   : > { %v2111_v35 = vsel %vm5449_vm10, %v2106_v61, %v2110_v30  ;;  %v3003_v2 = vrot.slane %v3001_v44, 4  ;;  %v2903_v50 = vrot.slane %v4746_v42, 5  ;;  %v3008_v47 = vrot.slane %v5851_v37, 5  ;;  %v4751_v42 = vld [vmem:[#allocation2 + $0x2c] sm:$0x1] }
 0x11f   : > { %v3002_v41 = vsel %vm5895_vm13, %v4217_v29, %v3001_v44  ;;  %v2897_v55 = vsel %vm5895_vm13, %v4202_v58, %v2896_v57  ;;  %v2900_v56 = vsel %vm5895_vm13, %v2898_v43, %v2899_v13  ;;  %v3018_v46 = vrot.slane %v5955_v19, 5  ;;  %v4750_v58 = vld [vmem:[#allocation2 + $0x28] sm:$0xf] }
 0x120   : > { %2446 = vmatmul.mubr.bf16.gmra.mxu1 %v5728_v18  ;;  %v2077_v18 = vsel %vm5449_vm10, %v5890_v54, %v5886_v7  ;;  %v2998_v7 = vsel %vm5895_vm13, %v2996_v52, %v2997_v11  ;;  %v3005_v8 = vsel %vm5895_vm13, %v3003_v2, %v3004_v1  ;;  %v4218_v15 = vrot.slane %v2835_v10, 9 }
 0x121   : > { %2455 = vmatprep.mubr.bf16.mxu1 %v4947_v0  ;;  %v6003_v27 = vcombine.low %v2077_v18, %v2087_v38  ;;  %v6009_v54 = vcombine.low %v2995_v32, %v2998_v7  ;;  %v6028_v49 = vcombine.low %v3002_v41, %v3005_v8  ;;  %v3010_v23 = vrot.slane %v3008_v47, 4  ;;  %v4748_v7 = vld [vmem:[#allocation2 + $0x1c] sm:$0xf]  ;;  %v2822_v41 = vld [vmem:[#allocation2 + $0x24] sm:$0xe] }
 0x122   : > { %v3011_v14 = vrot.slane %v5902_v45, 5  ;;  %v6042_v11 = vcombine.low %v2897_v55, %v2900_v56  ;;  %v4203_v18 = vrot.slane %v2820_v48, 9  ;;  %v4219_v38 = vrot.slane %v2836_v60, 9 }
 0x123   : > { %v2905_v4 = vrot.slane %v2903_v50, 4  ;;  %v2906_v37 = vrot.slane %v4747_v6, 5  ;;  %v3009_v19 = vsel %vm5895_vm13, %v4218_v15, %v3008_v47  ;;  %v2913_v44 = vrot.slane %v4749_v31, 5 }
 0x124   : > { %4479 = vmatmul.mubr.bf16.gmra.mxu0 %v6001_v20  ;;  %v3012_v52 = vsel %vm5895_vm13, %v3010_v23, %v3011_v14  ;;  %v2904_v30 = vsel %vm5895_vm13, %v4203_v18, %v2903_v50  ;;  %v2917_v43 = vrot.slane %v4750_v58, 5  ;;  %v2920_v50 = vrot.slane %v4751_v42, 5  ;;  %v4752_v14 = vld [vmem:[#allocation2 + $0x34] sm:$0xf] }
 0x125   : > { %4482 = vmatprep.mubr.bf16.mxu0 %v6003_v27  ;;  %v2907_v32 = vsel %vm5895_vm13, %v2905_v4, %v2906_v37  ;;  %v2924_v60 = vrot.slane %v4752_v14, 5 }
 0x126   : > { %v6064_v17 = vcombine.low %v2904_v30, %v2907_v32  ;;  %v2919_v48 = vrot.slane %v2917_v43, 4 }
 0x128   : > { %2456 = vmatmul.mubr.bf16.gmra.mxu1 %v5803_v39  ;;  %v6022_v39 = vcombine.low %v2101_v62, %v2111_v35  ;;  %v2910_v62 = vrot.slane %v4748_v7, 5  ;;  %v2821_v35 = vld [vmem:[#allocation2 + $0x18] sm:$0xe]  ;;  %v2921_v23 = vsel %vm5895_vm13, %v2919_v48, %v2920_v50 }
 0x129   : > { %2465 = vmatprep.mubr.bf16.mxu1 %v4947_v0  ;;  %v4204_v57 = vrot.slane %v2821_v35, 9 }
 0x12a   : > { %v2912_v1 = vrot.slane %v2910_v62, 4 }
 0x12b   : > { %v2911_v29 = vsel %vm5895_vm13, %v4204_v57, %v2910_v62 }
 0x12c   : > { %4483 = vmatmul.mubr.bf16.gmra.mxu0 %v6022_v39  ;;  %v2914_v2 = vsel %vm5895_vm13, %v2912_v1, %v2913_v44 }
 0x12d   : > { %3285 = vmatprep.mubr.bf16.mxu0 %v4947_v0  ;;  %v6076_v56 = vcombine.low %v2911_v29, %v2914_v2  ;;  %v2824_v2 = vld [vmem:[#allocation2 + $0x3c] sm:$0xe] }
 0x12e   : > { %v4207_v48 = vrot.slane %v2824_v2, 9 }
 0x130   : > { %2466 = vmatmul.mubr.bf16.gmra.mxu1 %v5805_v3  ;;  %v3015_v3 = vrot.slane %v5862_v36, 5  ;;  %v6048_v36 = vcombine.low %v3009_v19, %v3012_v52 }
 0x131   : > { %2475 = vmatprep.mubr.bf16.mxu1 %v4947_v0 }
 0x132   : > { %v3017_v63 = vrot.slane %v3015_v3, 4  ;;  %v3016_v45 = vsel %vm5895_vm13, %v4219_v38, %v3015_v3 }
 0x134   : > { %v3019_v9 = vsel %vm5895_vm13, %v3017_v63, %v3018_v46  ;;  %3286 = vmatmul.mubr.bf16.vlgmr.msra.gmra.mxu0 %v6042_v11  ;;  %v2823_v63 = vld [vmem:[#allocation2 + $0x30] sm:$0xe] }
 0x135   : > { %v6054_v61 = vcombine.low %v3016_v45, %v3019_v9  ;;  %3293 = vmatprep.mubr.bf16.mxu0 %v4947_v0  ;;  %v4206_v52 = vrot.slane %v2823_v63, 9  ;;  %v2926_v45 = vrot.slane %v2924_v60, 4  ;;  %v4753_v9 = vld [vmem:[#allocation2 + $0x38] sm:$0x1] }
 0x136   : > { %v2927_v30 = vrot.slane %v4753_v9, 5 }
 0x137   : > { %v2925_v31 = vsel %vm5895_vm13, %v4206_v52, %v2924_v60 }
 0x138   : > { %2476 = vmatmul.mubr.bf16.gmra.mxu1 %v5853_v53  ;;  %v2928_v44 = vsel %vm5895_vm13, %v2926_v45, %v2927_v30 }
 0x139   : > { %2485 = vmatprep.mubr.bf16.mxu1 %v4947_v0 }
 0x13c   : > { %v1215_v53 = vpop.f32.mrf.mxu0  ;;  %3294 = vmatmul.mubr.bf16.gmra.mxu0 %v6064_v17 }
 0x13d   : > { %3303 = vmatprep.mubr.bf16.mxu0 %v4947_v0 }
 0x13e   : > { %v1217_v5 = vpop.f32.mrf.mxu0 }
 0x140   : > { %v1353_v24 = vpop.f32.mrf.mxu1  ;;  %2486 = vmatmul.mubr.bf16.gmra.mxu1 %v5855_v25  ;;  %v1218_v8 = vpop.f32.mrf.mxu0  ;;  %v4205_v25 = vrot.slane %v2822_v41, 9 }
 0x141   : > { %2495 = vmatprep.mubr.bf16.mxu1 %v4947_v0 }
 0x142   : > { %v6073_v13 = vpop.f32.mrf.mxu1  ;;  %v1220_v47 = vpop.f32.mrf.mxu0  ;;  %v2918_v15 = vsel %vm5895_vm13, %v4205_v25, %v2917_v43 }
 0x143   : > { %v6092_v19 = vcombine.low %v2918_v15, %v2921_v23 }
 0x144   : > { %v1357_v55 = vpop.f32.mrf.mxu1  ;;  %v1223_v10 = vpop.f32.mrf.mxu0  ;;  %3304 = vmatmul.mubr.bf16.gmra.mxu0 %v6076_v56 }
 0x145   : > { %3313 = vmatprep.mubr.bf16.mxu0 %v4947_v0 }
 0x146   : > { %v6078_v46 = vpop.f32.mrf.mxu1  ;;  %v1225_v18 = vpop.f32.mrf.mxu0 }
 0x147   : > { %v6088_v4 = vadd.f32 %v1225_v18, %v1215_v53  ;;  %v4754_v53 = vld [vmem:[#allocation2 + $0x40] sm:$0xf]  ;;  %v4756_v18 = vld [vmem:[#allocation2 + $0x4c] sm:$0xf] }
 0x148   : > { %v1363_v3 = vpop.f32.mrf.mxu1  ;;  %2496 = vmatmul.mubr.bf16.gmra.mxu1 %v5864_v51  ;;  %v1227_v51 = vpop.f32.mrf.mxu0 }
 0x149   : > { %2505 = vmatprep.mubr.bf16.mxu1 %v4947_v0 }
 0x14a   : > { %v1365_v38 = vpop.f32.mrf.mxu1  ;;  %v1229_v32 = vpop.f32.mrf.mxu0 }
 0x14b   : > { %v6090_v6 = vadd.f32 %v1365_v38, %v1353_v24  ;;  %v6094_v62 = vadd.f32 %v1229_v32, %v1218_v8  ;;  %v2931_v24 = vrot.slane %v4754_v53, 5  ;;  %v4755_v8 = vld [vmem:[#allocation2 + $0x44] sm:$0x1]  ;;  %v2938_v38 = vrot.slane %v4756_v18, 5 }
 0x14c   : > { %v1367_v37 = vpop.f32.mrf.mxu1  ;;  %v1233_v57 = vpop.f32.mrf.mxu0  ;;  %3314 = vmatmul.mubr.bf16.gmra.mxu0 %v6092_v19 }
 0x14d   : > { %3323 = vmatprep.mubr.bf16.mxu0 %v4947_v0  ;;  %v2933_v42 = vrot.slane %v2931_v24, 4 }
 0x14e   : > { %v1369_v7 = vpop.f32.mrf.mxu1  ;;  %v1235_v29 = vpop.f32.mrf.mxu0 }
 0x14f   : > { %v6096_v35 = vadd.f32 %v1369_v7, %v1357_v55  ;;  %v1561_v58 = vadd.f32 %v1235_v29, %v1223_v10  ;;  %v2934_v55 = vrot.slane %v4755_v8, 5 }
 0x150   : > { %v1373_v1 = vpop.f32.mrf.mxu1  ;;  %2506 = vmatmul.mubr.bf16.gmra.mxu1 %v5866_v33  ;;  %v1237_v41 = vpop.f32.mrf.mxu0  ;;  %v6108_v33 = vcombine.low %v2925_v31, %v2928_v44 }
 0x151   : > { %2515 = vmatprep.mubr.bf16.mxu1 %v4947_v0  ;;  %v2935_v60 = vsel %vm5895_vm13, %v2933_v42, %v2934_v55  ;;  %v2940_v1 = vrot.slane %v2938_v38, 4 }
 0x152   : > { %v1374_v43 = vpop.f32.mrf.mxu1  ;;  %v1239_v50 = vpop.f32.mrf.mxu0 }
 0x153   : > { %v6106_v5 = vadd.f32 %v1374_v43, %v1363_v3  ;;  %v1562_v47 = vadd.f32 %v1239_v50, %v1227_v51  ;;  %v2932_v3 = vsel %vm5895_vm13, %v4207_v48, %v2931_v24  ;;  %v2825_v51 = vld [vmem:[#allocation2 + $0x48] sm:$0xe] }
 0x154   : > { %v1376_v25 = vpop.f32.mrf.mxu1  ;;  %v1243_v14 = vpop.f32.mrf.mxu0  ;;  %3324 = vmatmul.mubr.bf16.gmra.mxu0 %v6108_v33  ;;  %v6120_v9 = vcombine.low %v2932_v3, %v2935_v60  ;;  %v4208_v7 = vrot.slane %v2825_v51, 9 }
 0x155   : > { %3333 = vmatprep.mubr.bf16.mxu0 %v4947_v0 }
 0x156   : > { %v1377_v15 = vpop.f32.mrf.mxu1  ;;  %v1245_v63 = vpop.f32.mrf.mxu0 }
 0x157   : > { %v6110_v23 = vadd.f32 %v1377_v15, %v1367_v37  ;;  %v1563_v37 = vadd.f32 %v1245_v63, %v1233_v57  ;;  %v2939_v57 = vsel %vm5895_vm13, %v4208_v7, %v2938_v38 }
 0x158   : > { %v1381_v10 = vpop.f32.mrf.mxu1  ;;  %2516 = vmatmul.mubr.bf16.gmra.mxu1 %v5900_v28  ;;  %v1247_v45 = vpop.f32.mrf.mxu0  ;;  %v4757_v28 = vld [vmem:[#allocation2 + $0x50] sm:$0x1] }
 0x159   : > { %2525 = vmatprep.mubr.bf16.mxu1 %v4947_v0  ;;  %v2941_v30 = vrot.slane %v4757_v28, 5 }
 0x15a   : > { %v1382_v52 = vpop.f32.mrf.mxu1  ;;  %v1249_v31 = vpop.f32.mrf.mxu0 }
 0x15b   : > { %v1564_v44 = vadd.f32 %v1249_v31, %v1237_v41  ;;  %v2942_v2 = vsel %vm5895_vm13, %v2940_v1, %v2941_v30 }
 0x15c   : > { %v1383_v32 = vpop.f32.mrf.mxu1  ;;  %v1253_v24 = vpop.f32.mrf.mxu0  ;;  %3334 = vmatmul.mubr.bf16.gmra.mxu0 %v6120_v9  ;;  %v6130_v25 = vcombine.low %v2939_v57, %v2942_v2 }
 0x15d   : > { %3343 = vmatprep.mubr.bf16.mxu0 %v4947_v0 }
 0x15e   : > { %v1384_v53 = vpop.f32.mrf.mxu1  ;;  %v1255_v43 = vpop.f32.mrf.mxu0 }
 0x15f   : > { %v1565_v8 = vadd.f32 %v1255_v43, %v1243_v14 }
 0x160   : > { %v4400_v29 = vpop.f32.mrf.mxu1  ;;  %2526 = vmatmul.mubr.bf16.gmra.mxu1 %v6001_v20  ;;  %v1257_v55 = vpop.f32.mrf.mxu0 }
 0x161   : > { %2535 = vmatprep.mubr.bf16.mxu1 %v4947_v0 }
 0x162   : > { %v1420_v41 = vpop.f32.mrf.mxu1  ;;  %v1259_v42 = vpop.f32.mrf.mxu0 }
 0x163   : > { %v1566_v50 = vadd.f32 %v1259_v42, %v1247_v45 }
 0x164   : > { %v4401_v48 = vpop.f32.mrf.mxu1  ;;  %v1263_v15 = vpop.f32.mrf.mxu0  ;;  %3344 = vmatmul.mubr.bf16.gmra.mxu0 %v6130_v25 }
 0x165   : > { %3353 = vmatprep.mubr.bf16.mxu0 %v4947_v0 }
 0x166   : > { %v1422_v20 = vpop.f32.mrf.mxu1  ;;  %v1265_v3 = vpop.f32.mrf.mxu0 }
 0x167   : > { %v1567_v14 = vadd.f32 %v1265_v3, %v1253_v24 }
 0x168   : > { %v4404_v10 = vpop.f32.mrf.mxu1  ;;  %2536 = vmatmul.mubr.bf16.gmra.mxu1 %v6003_v27  ;;  %v1267_v38 = vpop.f32.mrf.mxu0 }
 0x169   : > { %v6135_v59 = vadd.f32 %v4404_v10, %v1561_v58  ;;  %2543 = vmatprep.mubr.bf16.mxu1 %v4947_v0 }
 0x16a   : > { %v1432_v60 = vpop.f32.mrf.mxu1  ;;  %v1269_v52 = vpop.f32.mrf.mxu0 }
 0x16b   : > { %v6139_v18 = vadd.f32 %v6088_v4, %v1432_v60  ;;  %v1568_v45 = vadd.f32 %v1269_v52, %v1257_v55 }
 0x16c   : > { %v4405_v63 = vpop.f32.mrf.mxu1  ;;  %v1273_v58 = vpop.f32.mrf.mxu0  ;;  %3354 = vmatmul.mubr.bf16.gmra.mxu0 %v5927_v40 }
 0x16d   : > { %v6141_v51 = vadd.f32 %v4405_v63, %v1562_v47  ;;  %3363 = vmatprep.mubr.bf16.mxu0 %v4947_v0 }
 0x16e   : > { %v1435_v28 = vpop.f32.mrf.mxu1  ;;  %v1275_v32 = vpop.f32.mrf.mxu0 }
 0x16f   : > { %v6144_v27 = vadd.f32 %v6094_v62, %v1435_v28  ;;  %v1569_v47 = vadd.f32 %v1275_v32, %v1263_v15 }
 0x170   : > { %v4408_v30 = vpop.f32.mrf.mxu1  ;;  %2544 = vmatmul.mubr.bf16.gmra.mxu1 %v6022_v39  ;;  %v1277_v31 = vpop.f32.mrf.mxu0 }
 0x171   : > { %v6149_v4 = vadd.f32 %v4408_v30, %v1565_v8  ;;  %4502 = vmatprep.mubr.bf16.mxu1 %v6042_v11 }
 0x172   : > { %v1448_v7 = vpop.f32.mrf.mxu1  ;;  %v1279_v24 = vpop.f32.mrf.mxu0 }
 0x173   : > { %v6152_v1 = vadd.f32 %v1563_v37, %v1448_v7  ;;  %v1570_v29 = vadd.f32 %v1279_v24, %v1267_v38 }
 0x174   : > { %v4409_v62 = vpop.f32.mrf.mxu1  ;;  %v1283_v39 = vpop.f32.mrf.mxu0  ;;  %3364 = vmatmul.mubr.bf16.gmra.mxu0 %v5929_v21 }
 0x175   : > { %v6154_v53 = vadd.f32 %v4409_v62, %v1566_v50  ;;  %3373 = vmatprep.mubr.bf16.mxu0 %v4947_v0 }
 0x176   : > { %v1451_v57 = vpop.f32.mrf.mxu1  ;;  %v1285_v37 = vpop.f32.mrf.mxu0 }
 0x177   : > { %v6156_v2 = vadd.f32 %v1564_v44, %v1451_v57  ;;  %v1571_v8 = vadd.f32 %v1285_v37, %v1273_v58 }
 0x178   : > { %v4412_v43 = vpop.f32.mrf.mxu1  ;;  %4503 = vmatmul.mubr.bf16.vlgmr.msra.gmra.mxu1 %v6064_v17  ;;  %v1287_v48 = vpop.f32.mrf.mxu0 }
 0x179   : > { %v6161_v11 = vadd.f32 %v4412_v43, %v1569_v47  ;;  %4506 = vmatprep.mubr.bf16.mxu1 %v6076_v56 }
 0x17a   : > { %v1464_v41 = vpop.f32.mrf.mxu1  ;;  %v1289_v50 = vpop.f32.mrf.mxu0 }
 0x17b   : > { %v6164_v55 = vadd.f32 %v1567_v14, %v1464_v41  ;;  %v1572_v20 = vadd.f32 %v1289_v50, %v1277_v31 }
 0x17c   : > { %v4413_v44 = vpop.f32.mrf.mxu1  ;;  %v1293_v17 = vpop.f32.mrf.mxu0  ;;  %3374 = vmatmul.mubr.bf16.gmra.mxu0 %v5943_v22 }
 0x17d   : > { %v6166_v42 = vadd.f32 %v4413_v44, %v1570_v29  ;;  %3383 = vmatprep.mubr.bf16.mxu0 %v4947_v0 }
 0x17e   : > { %v1467_v15 = vpop.f32.mrf.mxu1  ;;  %v1295_v56 = vpop.f32.mrf.mxu0 }
 0x17f   : > { %v6168_v10 = vadd.f32 %v1568_v45, %v1467_v15  ;;  %v1573_v14 = vadd.f32 %v1295_v56, %v1283_v39 }
 0x180   : > { %v4416_v3 = vpop.f32.mrf.mxu1  ;;  %4507 = vmatmul.mubr.bf16.gmra.mxu1 %v6092_v19  ;;  %v1297_v63 = vpop.f32.mrf.mxu0 }
 0x181   : > { %4510 = vmatprep.mubr.bf16.mxu1 %v6108_v33  ;;  %v6176_v28 = vadd.f32 %v4416_v3, %v1573_v14 }
 0x182   : > { %v1480_v60 = vpop.f32.mrf.mxu1  ;;  %v1299_v45 = vpop.f32.mrf.mxu0 }
 0x183   : > { %v6174_v38 = vadd.f32 %v1571_v8, %v1480_v60  ;;  %v1574_v58 = vadd.f32 %v1299_v45, %v1287_v48 }
 0x184   : > { %v4417_v52 = vpop.f32.mrf.mxu1  ;;  %v1303_v47 = vpop.f32.mrf.mxu0  ;;  %3384 = vmatmul.mubr.bf16.gmra.mxu0 %v5951_v34 }
 0x185   : > { %3393 = vmatprep.mubr.bf16.mxu0 %v4947_v0  ;;  %v6183_v33 = vadd.f32 %v4417_v52, %v1574_v58 }
 0x186   : > { %v1483_v30 = vpop.f32.mrf.mxu1  ;;  %v1305_v7 = vpop.f32.mrf.mxu0 }
 0x187   : > { %v6178_v32 = vadd.f32 %v1572_v20, %v1483_v30  ;;  %v1575_v31 = vadd.f32 %v1305_v7, %v1293_v17 }
 0x188   : > { %v4420_v19 = vpop.f32.mrf.mxu1  ;;  %4511 = vmatmul.mubr.bf16.gmra.mxu1 %v6120_v9  ;;  %v1307_v24 = vpop.f32.mrf.mxu0 }
 0x189   : > { %4514 = vmatprep.mubr.bf16.mxu1 %v6130_v25 }
 0x18a   : > { %v1496_v62 = vpop.f32.mrf.mxu1  ;;  %v1309_v39 = vpop.f32.mrf.mxu0 }
 0x18b   : > { %v6186_v29 = vadd.f32 %v1575_v31, %v1496_v62  ;;  %v1576_v43 = vadd.f32 %v1309_v39, %v1297_v63 }
 0x18c   : > { %v4421_v57 = vpop.f32.mrf.mxu1  ;;  %v1313_v8 = vpop.f32.mrf.mxu0  ;;  %3394 = vmatmul.mubr.bf16.gmra.mxu0 %v5961_v16 }
 0x18d   : > { %3403 = vmatprep.mubr.bf16.mxu0 %v4947_v0 }
 0x18e   : > { %v1499_v37 = vpop.f32.mrf.mxu1  ;;  %v1315_v25 = vpop.f32.mrf.mxu0 }
 0x18f   : > { %v6189_v9 = vadd.f32 %v1576_v43, %v1499_v37  ;;  %v1577_v48 = vadd.f32 %v1315_v25, %v1303_v47 }
 0x190   : > { %v4424_v41 = vpop.f32.mrf.mxu1  ;;  %4515 = vmatmul.mubr.bf16.gmra.mxu1 %v5927_v40  ;;  %v1317_v50 = vpop.f32.mrf.mxu0 }
 0x191   : > { %4518 = vmatprep.mubr.bf16.mxu1 %v5929_v21  ;;  %v6194_v15 = vadd.f32 %v4420_v19, %v1577_v48 }
 0x192   : > { %v1512_v44 = vpop.f32.mrf.mxu1  ;;  %v1319_v17 = vpop.f32.mrf.mxu0 }
 0x193   : > { %v1578_v3 = vadd.f32 %v1319_v17, %v1307_v24 }
 0x194   : > { %v4425_v20 = vpop.f32.mrf.mxu1  ;;  %v1323_v14 = vpop.f32.mrf.mxu0  ;;  %3404 = vmatmul.mubr.bf16.gmra.mxu0 %v5978_v12 }
 0x195   : > { %3413 = vmatprep.mubr.bf16.mxu0 %v4947_v0  ;;  %v6199_v40 = vadd.f32 %v4421_v57, %v1578_v3 }
 0x196   : > { %v1515_v56 = vpop.f32.mrf.mxu1  ;;  %v1325_v21 = vpop.f32.mrf.mxu0 }
 0x197   : > { %v1579_v63 = vadd.f32 %v1325_v21, %v1313_v8 }
 0x198   : > { %v4428_v60 = vpop.f32.mrf.mxu1  ;;  %4519 = vmatmul.mubr.bf16.gmra.mxu1 %v5943_v22  ;;  %v1327_v45 = vpop.f32.mrf.mxu0 }
 0x199   : > { %4522 = vmatprep.mubr.bf16.mxu1 %v5951_v34  ;;  %v6202_v30 = vadd.f32 %v1579_v63, %v1512_v44 }
 0x19a   : > { %v1528_v52 = vpop.f32.mrf.mxu1  ;;  %v1329_v47 = vpop.f32.mrf.mxu0 }
 0x19b   : > { %v1580_v19 = vadd.f32 %v1329_v47, %v1317_v50 }
 0x19c   : > { %v4429_v58 = vpop.f32.mrf.mxu1  ;;  %v1333_v31 = vpop.f32.mrf.mxu0  ;;  %3414 = vmatmul.mubr.bf16.gmra.mxu0 %v5990_v26 }
 0x19d   : > { %3423 = vmatprep.mubr.bf16.mxu0 %v4947_v0  ;;  %v6207_v62 = vadd.f32 %v1580_v19, %v1515_v56 }
 0x19e   : > { %v1531_v7 = vpop.f32.mrf.mxu1  ;;  %v1335_v24 = vpop.f32.mrf.mxu0 }
 0x19f   : > { %v1581_v57 = vadd.f32 %v1335_v24, %v1323_v14 }
 0x1a0   : > { %v4432_v22 = vpop.f32.mrf.mxu1  ;;  %4523 = vmatmul.mubr.bf16.gmra.mxu1 %v5961_v16  ;;  %v1337_v37 = vpop.f32.mrf.mxu0 }
 0x1a1   : > { %v6210_v34 = vadd.f32 %v4432_v22, %v6106_v5  ;;  %4526 = vmatprep.mubr.bf16.mxu1 %v5978_v12  ;;  %v6216_v25 = vadd.f32 %v4424_v41, %v1581_v57 }
 0x1a2   : > { %v1544_v39 = vpop.f32.mrf.mxu1  ;;  %v1339_v48 = vpop.f32.mrf.mxu0 }
 0x1a3   : > { %v6214_v43 = vadd.f32 %v6090_v6, %v1544_v39  ;;  %v1582_v44 = vadd.f32 %v1339_v48, %v1327_v45 }
 0x1a4   : > { %v4433_v8 = vpop.f32.mrf.mxu1  ;;  %v1343_v17 = vpop.f32.mrf.mxu0  ;;  %3424 = vmatmul.mubr.bf16.gmra.mxu0 %v6009_v54 }
 0x1a5   : > { %v6219_v16 = vadd.f32 %v4433_v8, %v6110_v23  ;;  %v1585_v12 = vadd.f32 %v6073_v13, %v1343_v17  ;;  %3433 = vmatprep.mubr.bf16.mxu0 %v4947_v0  ;;  %v6228_v41 = vadd.f32 %v4425_v20, %v1582_v44 }
 0x1a6   : > { %v1547_v50 = vpop.f32.mrf.mxu1  ;;  %v1345_v3 = vpop.f32.mrf.mxu0 }
 0x1a7   : > { %v6222_v5 = vadd.f32 %v6096_v35, %v1547_v50  ;;  %v1583_v56 = vadd.f32 %v1345_v3, %v1333_v31  ;;  %v6232_v14 = vadd.f32 %v4428_v60, %v1585_v12 }
 0x1a8   : > { %v2379_v6 = vpop.f32.mrf.mxu1  ;;  %4527 = vmatmul.mubr.bf16.gmra.mxu1 %v5990_v26  ;;  %v1347_v21 = vpop.f32.mrf.mxu0 }
 0x1a9   : > { %v2723_v23 = vadd.f32 %v2379_v6, %v6139_v18  ;;  %4530 = vmatprep.mubr.bf16.mxu1 %v6009_v54  ;;  %v1586_v63 = vadd.f32 %v6078_v46, %v1347_v21  ;;  %v6235_v45 = vadd.f32 %v1583_v56, %v1528_v52 }
 0x1aa   : > { %v2381_v35 = vpop.f32.mrf.mxu1  ;;  %v1349_v47 = vpop.f32.mrf.mxu0 }
 0x1ab   : > { %v1584_v20 = vadd.f32 %v1349_v47, %v1337_v37  ;;  %v6238_v22 = vadd.f32 %v4429_v58, %v1586_v63 }
 0x1ac   : > { %v2382_v13 = vpop.f32.mrf.mxu1  ;;  %v4452_v18 = vpop.f32.mrf.mxu0  ;;  %3434 = vmatmul.mubr.bf16.gmra.mxu0 %v6028_v49 }
 0x1ad   : > { %v2724_v26 = vadd.f32 %v2382_v13, %v6144_v27  ;;  %3443 = vmatprep.mubr.bf16.mxu0 %v4947_v0  ;;  %v6243_v60 = vadd.f32 %v1584_v20, %v1531_v7 }
 0x1ae   : > { %v2384_v19 = vpop.f32.mrf.mxu1  ;;  %v2584_v52 = vpop.f32.mrf.mxu0 }
 0x1b0   : > { %v2387_v54 = vpop.f32.mrf.mxu1  ;;  %4531 = vmatmul.mubr.bf16.gmra.mxu1 %v6028_v49  ;;  %v4453_v24 = vpop.f32.mrf.mxu0 }
 0x1b1   : > { %v2725_v46 = vadd.f32 %v2387_v54, %v6135_v59  ;;  %4534 = vmatprep.mubr.bf16.mxu1 %v6048_v36 }
 0x1b2   : > { %v2389_v27 = vpop.f32.mrf.mxu1  ;;  %v2586_v39 = vpop.f32.mrf.mxu0 }
 0x1b3   : > { %v2755_v31 = vadd.f32 %v2723_v23, %v2389_v27 }
 0x1b4   : > { %v2391_v58 = vpop.f32.mrf.mxu1  ;;  %v4456_v48 = vpop.f32.mrf.mxu0  ;;  %3444 = vmatmul.mubr.bf16.gmra.mxu0 %v6048_v36 }
 0x1b5   : > { %v2726_v57 = vadd.f32 %v2391_v58, %v6141_v51  ;;  %3451 = vmatprep.mubr.bf16.mxu0 %v4947_v0 }
 0x1b6   : > { %v2393_v37 = vpop.f32.mrf.mxu1  ;;  %v2596_v7 = vpop.f32.mrf.mxu0 }
 0x1b7   : > { %v2756_v8 = vadd.f32 %v2724_v26, %v2393_v37  ;;  %v6252_v50 = vadd.f32 %v2755_v31, %v2596_v7 }
 0x1b8   : > { %v2397_v49 = vpop.f32.mrf.mxu1  ;;  %4535 = vmatmul.mubr.bf16.gmra.mxu1 %v6054_v61  ;;  %v4457_v12 = vpop.f32.mrf.mxu0 }
 0x1b9   : > { %v2727_v59 = vadd.f32 %v2397_v49, %v6152_v1 }
 0x1ba   : > { %v2399_v44 = vpop.f32.mrf.mxu1  ;;  %v2599_v23 = vpop.f32.mrf.mxu0 }
 0x1bb   : > { %v2757_v17 = vadd.f32 %v2725_v46, %v2399_v44  ;;  %v6257_v56 = vadd.f32 %v2756_v8, %v2599_v23 }
 0x1bc   : > { %v2401_v51 = vpop.f32.mrf.mxu1  ;;  %v4460_v21 = vpop.f32.mrf.mxu0  ;;  %3452 = vmatmul.mubr.bf16.gmra.mxu0 %v6054_v61 }
 0x1bd   : > { %v2728_v6 = vadd.f32 %v2401_v51, %v6156_v2  ;;  %v6255_v3 = vadd.f32 %v4456_v48, %v2757_v17 }
 0x1be   : > { %v2403_v36 = vpop.f32.mrf.mxu1  ;;  %v2612_v63 = vpop.f32.mrf.mxu0 }
 0x1bf   : > { %v2758_v35 = vadd.f32 %v2726_v57, %v2403_v36 }
 0x1c0   : > { %v2407_v0 = vpop.f32.mrf.mxu1  ;;  %v4461_v20 = vpop.f32.mrf.mxu0 }
 0x1c1   : > { %v2729_v1 = vadd.f32 %v2407_v0, %v6149_v4  ;;  %v6261_v13 = vadd.f32 %v4457_v12, %v2758_v35 }
 0x1c2   : > { %v2409_v26 = vpop.f32.mrf.mxu1  ;;  %v2615_v54 = vpop.f32.mrf.mxu0 }
 0x1c3   : > { %v2759_v47 = vadd.f32 %v2727_v59, %v2409_v26 }
 0x1c4   : > { %v2411_v2 = vpop.f32.mrf.mxu1  ;;  %v4464_v27 = vpop.f32.mrf.mxu0 }
 0x1c5   : > { %v6263_v19 = vadd.f32 %v2759_v47, %v2612_v63  ;;  %v2730_v18 = vadd.f32 %v2411_v2, %v6154_v53 }
 0x1c6   : > { %v2413_v46 = vpop.f32.mrf.mxu1  ;;  %v2628_v24 = vpop.f32.mrf.mxu0 }
 0x1c7   : > { %v2760_v52 = vadd.f32 %v2728_v6, %v2413_v46 }
 0x1c8   : > { %v2417_v31 = vpop.f32.mrf.mxu1  ;;  %v4465_v39 = vpop.f32.mrf.mxu0 }
 0x1c9   : > { %v6266_v61 = vadd.f32 %v2760_v52, %v2615_v54  ;;  %v2731_v4 = vadd.f32 %v2417_v31, %v6164_v55 }
 0x1ca   : > { %v2419_v58 = vpop.f32.mrf.mxu1  ;;  %v2631_v48 = vpop.f32.mrf.mxu0 }
 0x1cb   : > { %v2761_v57 = vadd.f32 %v2729_v1, %v2419_v58 }
 0x1cc   : > { %v2421_v37 = vpop.f32.mrf.mxu1  ;;  %v4468_v7 = vpop.f32.mrf.mxu0 }
 0x1cd   : > { %v2732_v8 = vadd.f32 %v2421_v37, %v6168_v10  ;;  %v6270_v49 = vadd.f32 %v4460_v21, %v2761_v57 }
 0x1ce   : > { %v2423_v53 = vpop.f32.mrf.mxu1  ;;  %v2644_v12 = vpop.f32.mrf.mxu0 }
 0x1cf   : > { %v2762_v59 = vadd.f32 %v2730_v18, %v2423_v53 }
 0x1d0   : > { %v2427_v44 = vpop.f32.mrf.mxu1  ;;  %v4469_v23 = vpop.f32.mrf.mxu0 }
 0x1d1   : > { %v2733_v17 = vadd.f32 %v2427_v44, %v6161_v11  ;;  %v6273_v51 = vadd.f32 %v4461_v20, %v2762_v59 }
 0x1d2   : > { %v2429_v55 = vpop.f32.mrf.mxu1  ;;  %v2647_v0 = vpop.f32.mrf.mxu0 }
 0x1d3   : > { %v2763_v6 = vadd.f32 %v2731_v4, %v2429_v55 }
 0x1d4   : > { %v2431_v36 = vpop.f32.mrf.mxu1  ;;  %v6278_v63 = vpop.f32.mrf.mxu0 }
 0x1d5   : > { %v2734_v35 = vadd.f32 %v2431_v36, %v6166_v42  ;;  %v6276_v10 = vadd.f32 %v2763_v6, %v2628_v24 }
 0x1d6   : > { %v2433_v21 = vpop.f32.mrf.mxu1  ;;  %v2660_v11 = vpop.f32.mrf.mxu0 }
 0x1d7   : > { %v2764_v1 = vadd.f32 %v2732_v8, %v2433_v21 }
 0x1d8   : > { %v2437_v26 = vpop.f32.mrf.mxu1  ;;  %v6283_v54 = vpop.f32.mrf.mxu0 }
 0x1d9   : > { %v2735_v47 = vadd.f32 %v2437_v26, %v6174_v38  ;;  %v6281_v2 = vadd.f32 %v2764_v1, %v2631_v48 }
 0x1da   : > { %v2439_v20 = vpop.f32.mrf.mxu1  ;;  %v2663_v52 = vpop.f32.mrf.mxu0 }
 0x1db   : > { %v2765_v18 = vadd.f32 %v2733_v17, %v2439_v20 }
 0x1dc   : > { %v2441_v46 = vpop.f32.mrf.mxu1  ;;  %v6288_v58 = vpop.f32.mrf.mxu0 }
 0x1dd   : > { %v2736_v42 = vadd.f32 %v2441_v46, %v6178_v32  ;;  %v6286_v31 = vadd.f32 %v4464_v27, %v2765_v18 }
 0x1de   : > { %v2443_v4 = vpop.f32.mrf.mxu1  ;;  %v6291_v37 = vpop.f32.mrf.mxu0 }
 0x1df   : > { %v2766_v24 = vadd.f32 %v2734_v35, %v2443_v4 }
 0x1e0   : > { %v2447_v57 = vpop.f32.mrf.mxu1  ;;  %v6295_v59 = vpop.f32.mrf.mxu0 }
 0x1e1   : > { %v2737_v38 = vadd.f32 %v2447_v57, %v6176_v28  ;;  %v6293_v8 = vadd.f32 %v4465_v39, %v2766_v24 }
 0x1e2   : > { %v2449_v48 = vpop.f32.mrf.mxu1  ;;  %v6298_v27 = vpop.f32.mrf.mxu0 }
 0x1e3   : > { %v2767_v53 = vadd.f32 %v2735_v47, %v2449_v48 }
 0x1e4   : > { %v2451_v44 = vpop.f32.mrf.mxu1  ;;  %v6302_v36 = vpop.f32.mrf.mxu0 }
 0x1e5   : > { %v2738_v32 = vadd.f32 %v2451_v44, %v6183_v33  ;;  %v6300_v17 = vadd.f32 %v2767_v53, %v2644_v12 }
 0x1e6   : > { %v2453_v55 = vpop.f32.mrf.mxu1  ;;  %v6305_v39 = vpop.f32.mrf.mxu0 }
 0x1e7   : > { %v2768_v6 = vadd.f32 %v2736_v42, %v2453_v55 }
 0x1e8   : > { %v2457_v28 = vpop.f32.mrf.mxu1  ;;  %v6309_v47 = vpop.f32.mrf.mxu0 }
 0x1e9   : > { %v2739_v35 = vadd.f32 %v2457_v28, %v6186_v29  ;;  %v6307_v21 = vadd.f32 %v2768_v6, %v2647_v0 }
 0x1ea   : > { %v2459_v1 = vpop.f32.mrf.mxu1  ;;  %v6312_v12 = vpop.f32.mrf.mxu0 }
 0x1eb   : > { %v2769_v26 = vadd.f32 %v2737_v38, %v2459_v1 }
 0x1ec   : > { %v2461_v33 = vpop.f32.mrf.mxu1  ;;  %v6316_v4 = vpop.f32.mrf.mxu0 }
 0x1ed   : > { %v2740_v20 = vadd.f32 %v2461_v33, %v6189_v9  ;;  %v6314_v18 = vadd.f32 %v4468_v7, %v2769_v26 }
 0x1ee   : > { %v2463_v46 = vpop.f32.mrf.mxu1  ;;  %v6319_v0 = vpop.f32.mrf.mxu0 }
 0x1ef   : > { %v2770_v42 = vadd.f32 %v2738_v32, %v2463_v46 }
 0x1f0   : > { %v2467_v29 = vpop.f32.mrf.mxu1  ;;  %v6323_v53 = vpop.f32.mrf.mxu0 }
 0x1f1   : > { %v2741_v24 = vadd.f32 %v2467_v29, %v6194_v15  ;;  %v6321_v57 = vadd.f32 %v4469_v23, %v2770_v42 }
 0x1f2   : > { %v2469_v38 = vpop.f32.mrf.mxu1  ;;  %v6326_v7 = vpop.f32.mrf.mxu0 }
 0x1f3   : > { %v2771_v48 = vadd.f32 %v2739_v35, %v2469_v38 }
 0x1f4   : > { %v2471_v9 = vpop.f32.mrf.mxu1  ;;  %v3287_v28 = vpop.f32.mrf.mxu0 }
 0x1f5   : > { %v2742_v44 = vadd.f32 %v2471_v9, %v6199_v40  ;;  %v6328_v55 = vadd.f32 %v2771_v48, %v2660_v11  ;;  %v6331_v15 = vadd.f32 %v3287_v28, %v6252_v50 }
 0x1f6   : > { %v2473_v32 = vpop.f32.mrf.mxu1  ;;  %v3289_v26 = vpop.f32.mrf.mxu0 }
 0x1f7   : > { %v2772_v6 = vadd.f32 %v2740_v20, %v2473_v32 }
 0x1f8   : > { %v2477_v1 = vpop.f32.mrf.mxu1  ;;  %v3290_v42 = vpop.f32.mrf.mxu0 }
 0x1f9   : > { %v2743_v23 = vadd.f32 %v2477_v1, %v6202_v30  ;;  %v6334_v35 = vadd.f32 %v2772_v6, %v2663_v52  ;;  %v3632_v29 = vadd.f32 %v3290_v42, %v6257_v56 }
 0x1fa   : > { %v2479_v33 = vpop.f32.mrf.mxu1  ;;  %v3292_v38 = vpop.f32.mrf.mxu0 }
 0x1fb   : > { %v2773_v46 = vadd.f32 %v2741_v24, %v2479_v33 }
 0x1fc   : > { %v2481_v40 = vpop.f32.mrf.mxu1  ;;  %v6341_v9 = vpop.f32.mrf.mxu0 }
 0x1fd   : > { %v2744_v11 = vadd.f32 %v2481_v40, %v6207_v62  ;;  %v6339_v20 = vadd.f32 %v6278_v63, %v2773_v46 }
 0x1fe   : > { %v2483_v48 = vpop.f32.mrf.mxu1  ;;  %v6344_v32 = vpop.f32.mrf.mxu0 }
 0x1ff   : > { %v2774_v50 = vadd.f32 %v2742_v44, %v2483_v48 }
 0x200   : > { %v2487_v30 = vpop.f32.mrf.mxu1  ;;  %v6349_v28 = vpop.f32.mrf.mxu0 }
 0x201   : > { %v2745_v52 = vadd.f32 %v2487_v30, %v6216_v25  ;;  %v6347_v24 = vadd.f32 %v6283_v54, %v2774_v50 }
 0x202   : > { %v2489_v6 = vpop.f32.mrf.mxu1  ;;  %v3301_v1 = vpop.f32.mrf.mxu0 }
 0x203   : > { %v2775_v56 = vadd.f32 %v2743_v23, %v2489_v6  ;;  %v6355_v33 = vadd.f32 %v3632_v29, %v3301_v1 }
 0x204   : > { %v2491_v62 = vpop.f32.mrf.mxu1  ;;  %v6357_v46 = vpop.f32.mrf.mxu0 }
 0x205   : > { %v2746_v63 = vadd.f32 %v2491_v62, %v6228_v41  ;;  %v6353_v44 = vadd.f32 %v2775_v56, %v6291_v37 }
 0x206   : > { %v2493_v26 = vpop.f32.mrf.mxu1  ;;  %v6360_v40 = vpop.f32.mrf.mxu0 }
 0x207   : > { %v2776_v25 = vadd.f32 %v2744_v11, %v2493_v26 }
 0x208   : > { %v2497_v42 = vpop.f32.mrf.mxu1  ;;  %v3309_v48 = vpop.f32.mrf.mxu0 }
 0x209   : > { %v2747_v54 = vadd.f32 %v2497_v42, %v6235_v45  ;;  %v6363_v23 = vadd.f32 %v2776_v25, %v6298_v27  ;;  %v6366_v37 = vadd.f32 %v3309_v48, %v6266_v61 }
 0x20a   : > { %v2499_v38 = vpop.f32.mrf.mxu1  ;;  %v6369_v11 = vpop.f32.mrf.mxu0 }
 0x20b   : > { %v2777_v41 = vadd.f32 %v2745_v52, %v2499_v38 }
 0x20c   : > { %v2501_v50 = vpop.f32.mrf.mxu1  ;;  %v6374_v56 = vpop.f32.mrf.mxu0 }
 0x20d   : > { %v2748_v29 = vadd.f32 %v2501_v50, %v6243_v60  ;;  %v6372_v30 = vadd.f32 %v6288_v58, %v2777_v41 }
 0x20e   : > { %v2503_v45 = vpop.f32.mrf.mxu1  ;;  %v6377_v52 = vpop.f32.mrf.mxu0 }
 0x20f   : > { %6817 = vst [vmem:[#allocation13_spill] sm:$0xff] %v6372_v30  ;;  %v2778_v6 = vadd.f32 %v2746_v63, %v2503_v45 }
 0x210   : > { %v2507_v27 = vpop.f32.mrf.mxu1  ;;  %v6382_v60 = vpop.f32.mrf.mxu0 }
 0x211   : > { %v2749_v62 = vadd.f32 %v2507_v27, %v6232_v14  ;;  %v6380_v1 = vadd.f32 %v6295_v59, %v2778_v6 }
 0x212   : > { %v2509_v61 = vpop.f32.mrf.mxu1  ;;  %v6385_v42 = vpop.f32.mrf.mxu0 }
 0x213   : > { %6818 = vst [vmem:[#allocation14_spill] sm:$0xff] %v6380_v1  ;;  %v2779_v26 = vadd.f32 %v2747_v54, %v2509_v61 }
 0x214   : > { %v2511_v25 = vpop.f32.mrf.mxu1  ;;  %v6390_v14 = vpop.f32.mrf.mxu0 }
 0x215   : > { %v2750_v58 = vadd.f32 %v2511_v25, %v6238_v22  ;;  %v6388_v63 = vadd.f32 %v2779_v26, %v6305_v39 }
 0x216   : > { %v2513_v38 = vpop.f32.mrf.mxu1  ;;  %v6393_v50 = vpop.f32.mrf.mxu0 }
 0x217   : > { %6819 = vst [vmem:[#allocation15_spill] sm:$0xff] %v6388_v63  ;;  %v2780_v41 = vadd.f32 %v2748_v29, %v2513_v38 }
 0x218   : > { %v2517_v48 = vpop.f32.mrf.mxu1  ;;  %v6398_v22 = vpop.f32.mrf.mxu0 }
 0x219   : > { %v2751_v59 = vadd.f32 %v2517_v48, %v6214_v43  ;;  %v6396_v54 = vadd.f32 %v2780_v41, %v6312_v12 }
 0x21a   : > { %v2519_v45 = vpop.f32.mrf.mxu1  ;;  %v6401_v61 = vpop.f32.mrf.mxu0 }
 0x21b   : > { %6820 = vst [vmem:[#allocation16_spill] sm:$0xff] %v6396_v54  ;;  %v2781_v6 = vadd.f32 %v2749_v62, %v2519_v45 }
 0x21c   : > { %v2521_v27 = vpop.f32.mrf.mxu1  ;;  %v6406_v43 = vpop.f32.mrf.mxu0 }
 0x21d   : > { %v2752_v39 = vadd.f32 %v2521_v27, %v6222_v5  ;;  %v6404_v29 = vadd.f32 %v6302_v36, %v2781_v6 }
 0x21e   : > { %v2523_v26 = vpop.f32.mrf.mxu1  ;;  %v6409_v41 = vpop.f32.mrf.mxu0 }
 0x21f   : > { %6821 = vst [vmem:[#allocation17_spill] sm:$0xff] %v6404_v29  ;;  %v2782_v25 = vadd.f32 %v2750_v58, %v2523_v26 }
 0x220   : > { %v2527_v38 = vpop.f32.mrf.mxu1  ;;  %v3339_v5 = vpop.f32.mrf.mxu0 }
 0x221   : > { %v2753_v12 = vadd.f32 %v2527_v38, %v6210_v34  ;;  %v6412_v62 = vadd.f32 %v6309_v47, %v2782_v25 }
 0x222   : > { %v2529_v48 = vpop.f32.mrf.mxu1  ;;  %v3341_v36 = vpop.f32.mrf.mxu0 }
 0x223   : > { %6822 = vst [vmem:[#allocation18_spill] sm:$0xff] %v6412_v62  ;;  %v2783_v45 = vadd.f32 %v2751_v59, %v2529_v48 }
 0x224   : > { %v2531_v27 = vpop.f32.mrf.mxu1  ;;  %v3345_v29 = vpop.f32.mrf.mxu0 }
 0x225   : > { %v2754_v54 = vadd.f32 %v2531_v27, %v6219_v16  ;;  %v6416_v6 = vadd.f32 %v2783_v45, %v6319_v0 }
 0x226   : > { %v2533_v58 = vpop.f32.mrf.mxu1  ;;  %v3347_v34 = vpop.f32.mrf.mxu0 }
 0x227   : > { %6823 = vst [vmem:[#allocation19_spill] sm:$0xff] %v6416_v6  ;;  %v2784_v26 = vadd.f32 %v2752_v39, %v2533_v58 }
 0x228   : > { %v2537_v63 = vpop.f32.mrf.mxu1  ;;  %v3349_v62 = vpop.f32.mrf.mxu0 }
 0x229   : > { %v6419_v38 = vadd.f32 %v2784_v26, %v6326_v7 }
 0x22a   : > { %v2538_v47 = vpop.f32.mrf.mxu1  ;;  %v3351_v48 = vpop.f32.mrf.mxu0 }
 0x22b   : > { %6824 = vst [vmem:[#allocation20_spill] sm:$0xff] %v6419_v38  ;;  %v2785_v25 = vadd.f32 %v2753_v12, %v2538_v47 }
 0x22c   : > { %v2540_v59 = vpop.f32.mrf.mxu1  ;;  %v3355_v0 = vpop.f32.mrf.mxu0 }
 0x22d   : > { %v6422_v1 = vadd.f32 %v6316_v4, %v2785_v25 }
 0x22e   : > { %v2541_v16 = vpop.f32.mrf.mxu1  ;;  %v3357_v6 = vpop.f32.mrf.mxu0 }
 0x22f   : > { %v2786_v27 = vadd.f32 %v2754_v54, %v2541_v16  ;;  %v3633_v54 = vadd.f32 %v6341_v9, %v6255_v3  ;;  %v6446_v9 = vld [vmem:[#allocation8 + $0x1] ss:$0 sm:$0xff] }
 0x230   : > { %v2545_v45 = vpop.f32.mrf.mxu1  ;;  %v3359_v58 = vpop.f32.mrf.mxu0 }
 0x231   : > { %v6425_v39 = vadd.f32 %v6323_v53, %v2786_v27  ;;  %v3634_v27 = vadd.f32 %v6349_v28, %v6261_v13  ;;  %v3665_v45 = vadd.f32 %v3633_v54, %v6360_v40  ;;  %v6456_v40 = vadd.f32 %v6366_v37, %v6385_v42 }
 0x232   : > { %v2546_v63 = vpop.f32.mrf.mxu1  ;;  %v3361_v26 = vpop.f32.mrf.mxu0 }
 0x234   : > { %v2547_v7 = vpop.f32.mrf.mxu1  ;;  %v3365_v12 = vpop.f32.mrf.mxu0 }
 0x235   : > { %v3637_v7 = vadd.f32 %v6374_v56, %v6270_v49  ;;  %v3639_v49 = vadd.f32 %v6390_v14, %v6276_v10  ;;  %v3642_v10 = vadd.f32 %v3339_v5, %v6293_v8  ;;  %v3645_v5 = vadd.f32 %v3355_v0, %v6314_v18 }
 0x236   : > { %v2548_v38 = vpop.f32.mrf.mxu1  ;;  %v6427_v59 = vpop.f32.mrf.mxu0  ;;  %v3647_v18 = vadd.f32 %v3365_v12, %v6328_v55 }
 0x237   : > { %v3635_v38 = vadd.f32 %v6357_v46, %v6263_v19  ;;  %v3638_v19 = vadd.f32 %v6382_v60, %v6273_v51  ;;  %v3641_v51 = vadd.f32 %v6406_v43, %v6286_v31  ;;  %v6470_v42 = vadd.f32 %v3639_v49, %v6409_v41  ;;  %v4758_v31 = vld [vmem:[%s5104_s6 + $0x10] sm:$0xff] }
 0x238   : > { %v4504_v47 = vpop.f32.mrf.mxu1  ;;  %v6429_v4 = vpop.f32.mrf.mxu0  ;;  %v3644_v41 = vadd.f32 %v3349_v62, %v6307_v21  ;;  %v6485_v8 = vadd.f32 %v3642_v10, %v3351_v48  ;;  %v3646_v21 = vadd.f32 %v3359_v58, %v6321_v57 }
 0x239   : > { %v3666_v47 = vadd.f32 %v3634_v27, %v6369_v11  ;;  %v3667_v13 = vadd.f32 %v3635_v38, %v6377_v52  ;;  %v3670_v56 = vadd.f32 %v3638_v19, %v6401_v61  ;;  %v6478_v61 = vadd.f32 %v3641_v51, %v3347_v34  ;;  %v4759_v27 = vld [vmem:[%s5104_s6] sm:$0xff] }
 0x23a   : > { %v3492_v30 = vpop.f32.mrf.mxu1  ;;  %v6433_v16 = vpop.f32.mrf.mxu0  ;;  %v6498_v62 = vadd.f32 %v3644_v41, %v3361_v26  ;;  %v4763_v41 = vld [vmem:[%s5104_s6 + $0x20] sm:$0xff] }
 0x23b   : > { %v3663_v30 = vadd.f32 %v6331_v15, %v6344_v32  ;;  %v3669_v15 = vadd.f32 %v3637_v7, %v6393_v50  ;;  %v3640_v32 = vadd.f32 %v6398_v22, %v6281_v2  ;;  %v3643_v2 = vadd.f32 %v3345_v29, %v6300_v17  ;;  %v6476_v50 = vld [vmem:[#allocation8 + $0x2] ss:$0 sm:$0xff] }
 0x23c   : > { %v4505_v25 = vpop.f32.mrf.mxu1  ;;  %v6440_v63 = vpop.f32.mrf.mxu0 }
 0x23d   : > { %v6473_v14 = vadd.f32 %v3640_v32, %v3341_v36  ;;  %v6488_v17 = vadd.f32 %v3643_v2, %v3357_v6  ;;  %v6490_v36 = vld [vmem:[#allocation8 + $0x3] ss:$0 sm:$0xff] }
 0x23e   : > { %v3494_v53 = vpop.f32.mrf.mxu1  ;;  %v6452_v46 = vpop.f32.mrf.mxu0 }
 0x240   : > { %v4508_v3 = vpop.f32.mrf.mxu1  ;;  %v6467_v37 = vpop.f32.mrf.mxu0 }
 0x241   : > { %v3697_v28 = vadd.f32 %v4508_v3, %v3665_v45  ;;  %v4760_v3 = vld [vmem:[%s5104_s6 + $0x18] sm:$0xff] }
 0x242   : > { %v3504_v11 = vpop.f32.mrf.mxu1  ;;  %v6482_v53 = vpop.f32.mrf.mxu0 }
 0x243   : > { %v3736_v52 = vadd.f32 %v6446_v9, %v3697_v28  ;;  %v3695_v60 = vadd.f32 %v3663_v30, %v3504_v11  ;;  %v6507_v28 = vadd.f32 %v3645_v5, %v6427_v59  ;;  %v3648_v11 = vadd.f32 %v6429_v4, %v6334_v35 }
 0x244   : > { %v4509_v22 = vpop.f32.mrf.mxu1  ;;  %v6495_v30 = vpop.f32.mrf.mxu0 }
 0x245   : > { %v3768_v43 = vadd.f32 %v4758_v31, %v3736_v52  ;;  %v3734_v25 = vadd.f32 %v6446_v9, %v3695_v60  ;;  %v3698_v54 = vadd.f32 %v4509_v22, %v3666_v47  ;;  %v6525_v60 = vadd.f32 %v3646_v21, %v6433_v16 }
 0x246   : > { %v3507_v29 = vpop.f32.mrf.mxu1  ;;  %v6504_v19 = vpop.f32.mrf.mxu0  ;;  %v3649_v16 = vadd.f32 %v6440_v63, %v6339_v20  ;;  %v4764_v63 = vld [vmem:[%s5104_s6 + $0x38] sm:$0xff] }
 0x247   : > { %vm3800_vm14 = vcmp.ge.f32.partialorder %v3768_v43, 0.0  ;;  %v3836_v34 = vmul.f32 %v6476_v50, %v3768_v43  ;;  %v3766_v38 = vadd.f32 %v4759_v27, %v3734_v25  ;;  %v3737_v45 = vadd.f32 %v6446_v9, %v3698_v54 }
 0x248   : > { %v3696_v6 = vadd.f32 %v6355_v33, %v3507_v29  ;;  %v4512_v48 = vpop.f32.mrf.mxu1  ;;  %v6512_v32 = vpop.f32.mrf.mxu0  ;;  %v6540_v27 = vadd.f32 %v3647_v18, %v6452_v46  ;;  %v3650_v46 = vadd.f32 %v6467_v37, %v6347_v24  ;;  %v4765_v24 = vld [vmem:[%s5104_s6 + $0x28] sm:$0xff] }
 0x249   : > { %v3868_v0 = vsel %vm3800_vm14, %v3768_v43, %v3836_v34  ;;  %vm3798_vm15 = vcmp.ge.f32.partialorder %v3766_v38, 0.0  ;;  %v3834_v7 = vmul.f32 %v6476_v50, %v3766_v38  ;;  %v3769_v47 = vadd.f32 %v4760_v3, %v3737_v45  ;;  %v4762_v43 = vld [vmem:[%s5104_s6 + $0x30] sm:$0xff] }
 0x24a   : > { %v3904_v57 = vadd.f32 %v6490_v36, %v3868_v0  ;;  %v3735_v55 = vadd.f32 %v6446_v9, %v3696_v6  ;;  %v3701_v58 = vadd.f32 %v4512_v48, %v3669_v15  ;;  %v3520_v33 = vpop.f32.mrf.mxu1  ;;  %v4761_v15 = vld [vmem:[%s5104_s6 + $0x8] sm:$0xff]  ;;  %v6528_v2 = vpop.f32.mrf.mxu0 }
 0x24b   : > { %v3866_v26 = vsel %vm3798_vm15, %v3766_v38, %v3834_v7  ;;  %vm3801_vm0 = vcmp.ge.f32.partialorder %v3769_v47, 0.0  ;;  %v3837_v12 = vmul.f32 %v6476_v50, %v3769_v47  ;;  %v3699_v49 = vadd.f32 %v3667_v13, %v3520_v33 }
 0x24c   : > { %3936 = vst [vmem:[%s6518_s18 + $0x10] sm:$0xff] %v3904_v57  ;;  %v3902_v59 = vadd.f32 %v6490_v36, %v3866_v26  ;;  %v3767_v51 = vadd.f32 %v4761_v15, %v3735_v55  ;;  %v3740_v52 = vadd.f32 %v6446_v9, %v3701_v58  ;;  %v4513_v13 = vpop.f32.mrf.mxu1  ;;  %v3395_v34 = vpop.f32.mrf.mxu0 }
 0x24d   : > { %v3869_v10 = vsel %vm3801_vm0, %v3769_v47, %v3837_v12  ;;  %v3738_v35 = vadd.f32 %v6446_v9, %v3699_v49  ;;  %v3702_v4 = vadd.f32 %v4513_v13, %v3670_v56  ;;  %v6561_v49 = vadd.f32 %v3648_v11, %v6482_v53 }
 0x24e   : > { %3934 = vst [vmem:[%s6518_s18] sm:$0xff] %v3902_v59  ;;  %v3905_v22 = vadd.f32 %v6490_v36, %v3869_v10  ;;  %vm3799_vm1 = vcmp.ge.f32.partialorder %v3767_v51, 0.0  ;;  %v3835_v31 = vmul.f32 %v6476_v50, %v3767_v51  ;;  %v3772_v25 = vadd.f32 %v4762_v43, %v3740_v52  ;;  %v3523_v54 = vpop.f32.mrf.mxu1 }
 0x24f   : > { %v3770_v5 = vadd.f32 %v4763_v41, %v3738_v35  ;;  %v3741_v56 = vadd.f32 %v6446_v9, %v3702_v4  ;;  %v3700_v29 = vadd.f32 %v6456_v40, %v3523_v54  ;;  %v6547_v40 = vpop.f32.mrf.mxu0  ;;  %v3651_v59 = vadd.f32 %v6495_v30, %v6353_v44  ;;  %v4767_v54 = vld [vmem:[%s5104_s6 + $0x40] sm:$0xff]  ;;  %v4768_v41 = vld [vmem:[%s5104_s6 + $0x58] sm:$0xff] }
 0x250   : > { %3937 = vst [vmem:[%s6518_s18 + $0x18] sm:$0xff] %v3905_v22  ;;  %v3867_v38 = vsel %vm3799_vm1, %v3767_v51, %v3835_v31  ;;  %vm3804_vm2 = vcmp.ge.f32.partialorder %v3772_v25, 0.0  ;;  %v3840_v45 = vmul.f32 %v6476_v50, %v3772_v25  ;;  %v4516_v21 = vpop.f32.mrf.mxu1  ;;  %v6572_v11 = vadd.f32 %v3649_v16, %v6504_v19 }
 0x251   : > { %v3903_v6 = vadd.f32 %v6490_v36, %v3867_v38  ;;  %vm3802_vm3 = vcmp.ge.f32.partialorder %v3770_v5, 0.0  ;;  %v3838_v20 = vmul.f32 %v6476_v50, %v3770_v5  ;;  %v3773_v48 = vadd.f32 %v4764_v63, %v3741_v56  ;;  %v3399_v58 = vpop.f32.mrf.mxu0 }
 0x252   : > { %v3872_v18 = vsel %vm3804_vm2, %v3772_v25, %v3840_v45  ;;  %v3739_v0 = vadd.f32 %v6446_v9, %v3700_v29  ;;  %v3705_v7 = vadd.f32 %v4516_v21, %v6478_v61  ;;  %v3536_v3 = vpop.f32.mrf.mxu1  ;;  %v3652_v22 = vadd.f32 %v6512_v32, %v6363_v23  ;;  %v6825_v23 = vld [vmem:[#allocation13_spill] sm:$0xff] }
 0x253   : > { %3935 = vst [vmem:[%s6518_s18 + $0x8] sm:$0xff] %v3903_v6  ;;  %v3908_v47 = vadd.f32 %v6490_v36, %v3872_v18  ;;  %v3870_v57 = vsel %vm3802_vm3, %v3770_v5, %v3838_v20  ;;  %vm3805_vm4 = vcmp.ge.f32.partialorder %v3773_v48, 0.0  ;;  %v3841_v55 = vmul.f32 %v6476_v50, %v3773_v48  ;;  %v3401_v52 = vpop.f32.mrf.mxu0  ;;  %v4769_v18 = vld [vmem:[%s5104_s6 + $0x48] sm:$0xff] }
 0x254   : > { %v3906_v33 = vadd.f32 %v6490_v36, %v3870_v57  ;;  %v3771_v37 = vadd.f32 %v4765_v24, %v3739_v0  ;;  %v3744_v26 = vadd.f32 %v6446_v9, %v3705_v7  ;;  %v3703_v61 = vadd.f32 %v6470_v42, %v3536_v3  ;;  %v4517_v12 = vpop.f32.mrf.mxu1  ;;  %v4766_v42 = vld [vmem:[%s5104_s6 + $0x50] sm:$0xff] }
 0x255   : > { %3940 = vst [vmem:[%s6518_s18 + $0x30] sm:$0xff] %v3908_v47  ;;  %v3873_v15 = vsel %vm3805_vm4, %v3773_v48, %v3841_v55  ;;  %v3706_v51 = vadd.f32 %v4517_v12, %v6485_v8  ;;  %v3405_v4 = vpop.f32.mrf.mxu0  ;;  %v6586_v29 = vadd.f32 %v3650_v46, %v6528_v2  ;;  %v3653_v32 = vadd.f32 %v3395_v34, %v6825_v23  ;;  %v6826_v3 = vld [vmem:[#allocation14_spill] sm:$0xff] }
 0x256   : > { %3938 = vst [vmem:[%s6518_s18 + $0x20] sm:$0xff] %v3906_v33  ;;  %v3909_v13 = vadd.f32 %v6490_v36, %v3873_v15  ;;  %vm3803_vm5 = vcmp.ge.f32.partialorder %v3771_v37, 0.0  ;;  %v3839_v10 = vmul.f32 %v6476_v50, %v3771_v37  ;;  %v3776_v35 = vadd.f32 %v4766_v42, %v3744_v26  ;;  %v3539_v53 = vpop.f32.mrf.mxu1 }
 0x257   : > { %v3742_v44 = vadd.f32 %v6446_v9, %v3703_v61  ;;  %v3745_v30 = vadd.f32 %v6446_v9, %v3706_v51  ;;  %v3704_v8 = vadd.f32 %v6473_v14, %v3539_v53  ;;  %v3407_v56 = vpop.f32.mrf.mxu0  ;;  %v6602_v47 = vadd.f32 %v3399_v58, %v6826_v3  ;;  %v6827_v51 = vld [vmem:[#allocation15_spill] sm:$0xff] }
 0x258   : > { %3941 = vst [vmem:[%s6518_s18 + $0x38] sm:$0xff] %v3909_v13  ;;  %v3871_v31 = vsel %vm3803_vm5, %v3771_v37, %v3839_v10  ;;  %vm3808_vm6 = vcmp.ge.f32.partialorder %v3776_v35, 0.0  ;;  %v3844_v43 = vmul.f32 %v6476_v50, %v3776_v35  ;;  %v4520_v25 = vpop.f32.mrf.mxu1  ;;  %v6615_v13 = vadd.f32 %v3405_v4, %v6827_v51  ;;  %v6830_v51 = vld [vmem:[#allocation18_spill] sm:$0xff] }
 0x259   : > { %v3907_v19 = vadd.f32 %v6490_v36, %v3871_v31  ;;  %v3774_v16 = vadd.f32 %v4767_v54, %v3742_v44  ;;  %v3777_v5 = vadd.f32 %v4768_v41, %v3745_v30  ;;  %v3743_v14 = vadd.f32 %v6446_v9, %v3704_v8  ;;  %v3409_v63 = vpop.f32.mrf.mxu0  ;;  %v4771_v44 = vld [vmem:[%s5104_s6 + $0x60] sm:$0xff] }
 0x25a   : > { %v3876_v38 = vsel %vm3808_vm6, %v3776_v35, %v3844_v43  ;;  %v3709_v45 = vadd.f32 %v4520_v25, %v6507_v28  ;;  %v3552_v21 = vpop.f32.mrf.mxu1  ;;  %v6599_v28 = vadd.f32 %v3651_v59, %v6547_v40  ;;  %v4770_v40 = vld [vmem:[%s5104_s6 + $0x70] sm:$0xff]  ;;  %v6612_v59 = vadd.f32 %v3652_v22, %v3401_v52  ;;  %v4772_v22 = vld [vmem:[%s5104_s6 + $0x78] sm:$0xff] }
 0x25b   : > { %3939 = vst [vmem:[%s6518_s18 + $0x28] sm:$0xff] %v3907_v19  ;;  %v3912_v6 = vadd.f32 %v6490_v36, %v3876_v38  ;;  %vm3806_vm7 = vcmp.ge.f32.partialorder %v3774_v16, 0.0  ;;  %v3842_v20 = vmul.f32 %v6476_v50, %v3774_v16  ;;  %vm3809_vm8 = vcmp.ge.f32.partialorder %v3777_v5, 0.0  ;;  %v3411_v55 = vpop.f32.mrf.mxu0 }
 0x25c   : > { %v3845_v48 = vmul.f32 %v6476_v50, %v3777_v5  ;;  %v3775_v2 = vadd.f32 %v4769_v18, %v3743_v14  ;;  %v3748_v34 = vadd.f32 %v6446_v9, %v3709_v45  ;;  %v3707_v46 = vadd.f32 %v6488_v17, %v3552_v21  ;;  %v4521_v0 = vpop.f32.mrf.mxu1  ;;  %v4773_v14 = vld [vmem:[%s5104_s6 + $0x68] sm:$0xff] }
 0x25d   : > { %3944 = vst [vmem:[%s6518_s18 + $0x50] sm:$0xff] %v3912_v6  ;;  %v3874_v7 = vsel %vm3806_vm7, %v3774_v16, %v3842_v20  ;;  %v3710_v57 = vadd.f32 %v4521_v0, %v6525_v60  ;;  %v3415_v60 = vpop.f32.mrf.mxu0  ;;  %v3685_v52 = vadd.f32 %v3653_v32, %v3407_v56  ;;  %v6828_v32 = vld [vmem:[#allocation16_spill] sm:$0xff] }
 0x25e   : > { %v3910_v33 = vadd.f32 %v6490_v36, %v3874_v7  ;;  %v3877_v24 = vsel %vm3809_vm8, %v3777_v5, %v3845_v48  ;;  %vm3807_vm9 = vcmp.ge.f32.partialorder %v3775_v2, 0.0  ;;  %v3843_v17 = vmul.f32 %v6476_v50, %v3775_v2  ;;  %v3555_v37 = vpop.f32.mrf.mxu1 }
 0x25f   : > { %v3913_v26 = vadd.f32 %v6490_v36, %v3877_v24  ;;  %v3780_v61 = vadd.f32 %v4770_v40, %v3748_v34  ;;  %v3746_v12 = vadd.f32 %v6446_v9, %v3707_v46  ;;  %v3749_v58 = vadd.f32 %v6446_v9, %v3710_v57  ;;  %v3417_v8 = vpop.f32.mrf.mxu0  ;;  %v4774_v34 = vld [vmem:[%s5104_s6 + $0x90] sm:$0xff]  ;;  %v6829_v24 = vld [vmem:[#allocation17_spill] sm:$0xff] }
 0x260   : > { %3942 = vst [vmem:[%s6518_s18 + $0x40] sm:$0xff] %v3910_v33  ;;  %v3875_v15 = vsel %vm3807_vm9, %v3775_v2, %v3843_v17  ;;  %v3708_v10 = vadd.f32 %v6498_v62, %v3555_v37  ;;  %v4524_v42 = vpop.f32.mrf.mxu1  ;;  %v3656_v38 = vadd.f32 %v3409_v63, %v6828_v32  ;;  %v4775_v63 = vld [vmem:[%s5104_s6 + $0x80] sm:$0xff]  ;;  %v3686_v57 = vadd.f32 %v6602_v47, %v3411_v55 }
 0x261   : > { %3945 = vst [vmem:[%s6518_s18 + $0x58] sm:$0xff] %v3913_v26  ;;  %v3911_v35 = vadd.f32 %v6490_v36, %v3875_v15  ;;  %vm3812_vm10 = vcmp.ge.f32.partialorder %v3780_v61, 0.0  ;;  %v3848_v53 = vmul.f32 %v6476_v50, %v3780_v61  ;;  %v3778_v30 = vadd.f32 %v4771_v44, %v3746_v12  ;;  %v3419_v16 = vpop.f32.mrf.mxu0 }
 0x262   : > { %v3781_v31 = vadd.f32 %v4772_v22, %v3749_v58  ;;  %v3747_v4 = vadd.f32 %v6446_v9, %v3708_v10  ;;  %v3713_v43 = vadd.f32 %v4524_v42, %v6572_v11  ;;  %v3568_v25 = vpop.f32.mrf.mxu1  ;;  %v3657_v17 = vadd.f32 %v3415_v60, %v6829_v24 }
 0x263   : > { %3943 = vst [vmem:[%s6518_s18 + $0x48] sm:$0xff] %v3911_v35  ;;  %v3880_v62 = vsel %vm3812_vm10, %v3780_v61, %v3848_v53  ;;  %vm3810_vm11 = vcmp.ge.f32.partialorder %v3778_v30, 0.0  ;;  %v3846_v19 = vmul.f32 %v6476_v50, %v3778_v30  ;;  %v3711_v54 = vadd.f32 %v6540_v27, %v3568_v25  ;;  %v3421_v27 = vpop.f32.mrf.mxu0 }
 0x264   : > { %v3916_v41 = vadd.f32 %v6490_v36, %v3880_v62  ;;  %vm3813_vm12 = vcmp.ge.f32.partialorder %v3781_v31, 0.0  ;;  %v3849_v5 = vmul.f32 %v6476_v50, %v3781_v31  ;;  %v3779_v56 = vadd.f32 %v4773_v14, %v3747_v4  ;;  %v4525_v11 = vpop.f32.mrf.mxu1 }
 0x265   : > { %v3878_v23 = vsel %vm3810_vm11, %v3778_v30, %v3846_v19  ;;  %v3752_v45 = vadd.f32 %v6446_v9, %v3713_v43  ;;  %v3750_v21 = vadd.f32 %v6446_v9, %v3711_v54  ;;  %v3714_v7 = vadd.f32 %v4525_v11, %v6586_v29  ;;  %v3425_v3 = vpop.f32.mrf.mxu0  ;;  %v4776_v30 = vld [vmem:[%s5104_s6 + $0x98] sm:$0xff] }
 0x266   : > { %3948 = vst [vmem:[%s6518_s18 + $0x70] sm:$0xff] %v3916_v41  ;;  %v3914_v6 = vadd.f32 %v6490_v36, %v3878_v23  ;;  %v3881_v20 = vsel %vm3813_vm12, %v3781_v31, %v3849_v5  ;;  %vm3811_vm13 = vcmp.ge.f32.partialorder %v3779_v56, 0.0  ;;  %v3847_v48 = vmul.f32 %v6476_v50, %v3779_v56  ;;  %v3571_v18 = vpop.f32.mrf.mxu1  ;;  %v4777_v31 = vld [vmem:[%s5104_s6 + $0x88] sm:$0xff]  ;;  %v4778_v5 = vld [vmem:[%s5104_s6 + $0xb0] sm:$0xff] }
 0x267   : > { %v3917_v2 = vadd.f32 %v6490_v36, %v3881_v20  ;;  %v3784_v46 = vadd.f32 %v4774_v34, %v3752_v45  ;;  %v3782_v0 = vadd.f32 %v4775_v63, %v3750_v21  ;;  %v3712_v37 = vadd.f32 %v6561_v49, %v3571_v18  ;;  %v3427_v29 = vpop.f32.mrf.mxu0 }
 0x268   : > { %3946 = vst [vmem:[%s6518_s18 + $0x60] sm:$0xff] %v3914_v6  ;;  %v3879_v33 = vsel %vm3811_vm13, %v3779_v56, %v3847_v48  ;;  %v4528_v26 = vpop.f32.mrf.mxu1  ;;  %v3753_v47 = vadd.f32 %v6446_v9, %v3714_v7  ;;  %v3687_v15 = vadd.f32 %v6615_v13, %v3417_v8  ;;  %v3658_v10 = vadd.f32 %v3419_v16, %v6830_v51  ;;  %v6831_v16 = vld [vmem:[#allocation19_spill] sm:$0xff]  ;;  %v4779_v56 = vld [vmem:[%s5104_s6 + $0xa0] sm:$0xff] }
 0x269   : > { %3949 = vst [vmem:[%s6518_s18 + $0x78] sm:$0xff] %v3917_v2  ;;  %v3915_v40 = vadd.f32 %v6490_v36, %v3879_v33  ;;  %vm3816_vm14 = vcmp.ge.f32.partialorder %v3784_v46, 0.0  ;;  %v3852_v61 = vmul.f32 %v6476_v50, %v3784_v46  ;;  %vm3814_vm15 = vcmp.ge.f32.partialorder %v3782_v0, 0.0  ;;  %v3429_v35 = vpop.f32.mrf.mxu0  ;;  %v6832_v7 = vld [vmem:[#allocation20_spill] sm:$0xff] }
 0x26a   : > { %v3850_v12 = vmul.f32 %v6476_v50, %v3782_v0  ;;  %v3751_v55 = vadd.f32 %v6446_v9, %v3712_v37  ;;  %v3717_v58 = vadd.f32 %v4528_v26, %v3685_v52  ;;  %v3584_v60 = vpop.f32.mrf.mxu1  ;;  %v3785_v22 = vadd.f32 %v4776_v30, %v3753_v47  ;;  %v4780_v26 = vld [vmem:[%s5104_s6 + $0xb8] sm:$0xff]  ;;  %v4783_v30 = vld [vmem:[%s5104_s6 + $0xc0] sm:$0xff] }
 0x26b   : > { %3947 = vst [vmem:[%s6518_s18 + $0x68] sm:$0xff] %v3915_v40  ;;  %v3884_v49 = vsel %vm3816_vm14, %v3784_v46, %v3852_v61  ;;  %v3715_v42 = vadd.f32 %v6599_v28, %v3584_v60  ;;  %v6659_v13 = vadd.f32 %v3656_v38, %v3421_v27  ;;  %v3431_v25 = vpop.f32.mrf.mxu0  ;;  %v3659_v41 = vadd.f32 %v3425_v3, %v6831_v16  ;;  %v4781_v61 = vld [vmem:[%s5104_s6 + $0xa8] sm:$0xff] }
 0x26c   : > { %v3920_v53 = vadd.f32 %v6490_v36, %v3884_v49  ;;  %v3882_v44 = vsel %vm3814_vm15, %v3782_v0, %v3850_v12  ;;  %v3783_v52 = vadd.f32 %v4777_v31, %v3751_v55  ;;  %v4529_v4 = vpop.f32.mrf.mxu1  ;;  %v3756_v8 = vadd.f32 %v6446_v9, %v3717_v58 }
 0x26d   : > { %v3918_v43 = vadd.f32 %v6490_v36, %v3882_v44  ;;  %v3754_v28 = vadd.f32 %v6446_v9, %v3715_v42  ;;  %vm3817_vm0 = vcmp.ge.f32.partialorder %v3785_v22, 0.0  ;;  %v3853_v62 = vmul.f32 %v6476_v50, %v3785_v22  ;;  %v3435_v32 = vpop.f32.mrf.mxu0 }
 0x26e   : > { %3952 = vst [vmem:[%s6518_s18 + $0x90] sm:$0xff] %v3920_v53  ;;  %vm3815_vm1 = vcmp.ge.f32.partialorder %v3783_v52, 0.0  ;;  %v3851_v19 = vmul.f32 %v6476_v50, %v3783_v52  ;;  %v3587_v54 = vpop.f32.mrf.mxu1  ;;  %v3788_v14 = vadd.f32 %v4778_v5, %v3756_v8  ;;  %v3718_v23 = vadd.f32 %v4529_v4, %v3686_v57  ;;  %v4782_v53 = vld [vmem:[%s5104_s6 + $0xd0] sm:$0xff] }
 0x26f   : > { %3950 = vst [vmem:[%s6518_s18 + $0x80] sm:$0xff] %v3918_v43  ;;  %v3786_v11 = vadd.f32 %v4779_v56, %v3754_v28  ;;  %v3885_v38 = vsel %vm3817_vm0, %v3785_v22, %v3853_v62  ;;  %v3689_v21 = vadd.f32 %v3657_v17, %v3427_v29  ;;  %v3716_v27 = vadd.f32 %v6612_v59, %v3587_v54  ;;  %v3437_v2 = vpop.f32.mrf.mxu0 }
 0x270   : > { %v3883_v45 = vsel %vm3815_vm1, %v3783_v52, %v3851_v19  ;;  %v4532_v6 = vpop.f32.mrf.mxu1  ;;  %v3921_v20 = vadd.f32 %v6490_v36, %v3885_v38  ;;  %vm3820_vm2 = vcmp.ge.f32.partialorder %v3788_v14, 0.0  ;;  %v3856_v18 = vmul.f32 %v6476_v50, %v3788_v14 }
 0x271   : > { %v3919_v48 = vadd.f32 %v6490_v36, %v3883_v45  ;;  %vm3818_vm3 = vcmp.ge.f32.partialorder %v3786_v11, 0.0  ;;  %v3854_v34 = vmul.f32 %v6476_v50, %v3786_v11  ;;  %v3757_v46 = vadd.f32 %v6446_v9, %v3718_v23  ;;  %v3439_v24 = vpop.f32.mrf.mxu0  ;;  %v4784_v45 = vld [vmem:[%s5104_s6 + $0xd8] sm:$0xff] }
 0x272   : > { %v3755_v63 = vadd.f32 %v6446_v9, %v3716_v27  ;;  %v3600_v0 = vpop.f32.mrf.mxu1  ;;  %3953 = vst [vmem:[%s6518_s18 + $0x98] sm:$0xff] %v3921_v20  ;;  %v3888_v59 = vsel %vm3820_vm2, %v3788_v14, %v3856_v18  ;;  %v3660_v3 = vadd.f32 %v3429_v35, %v6832_v7  ;;  %v3721_v57 = vadd.f32 %v4532_v6, %v3689_v21  ;;  %v4785_v27 = vld [vmem:[%s5104_s6 + $0xc8] sm:$0xff]  ;;  %v4786_v7 = vld [vmem:[%s5104_s6 + $0xe0] sm:$0xff] }
 0x273   : > { %3951 = vst [vmem:[%s6518_s18 + $0x88] sm:$0xff] %v3919_v48  ;;  %v3719_v33 = vadd.f32 %v3687_v15, %v3600_v0  ;;  %v3924_v17 = vadd.f32 %v6490_v36, %v3888_v59  ;;  %v3886_v37 = vsel %vm3818_vm3, %v3786_v11, %v3854_v34  ;;  %v3789_v40 = vadd.f32 %v4780_v26, %v3757_v46  ;;  %v3441_v49 = vpop.f32.mrf.mxu0 }
 0x274   : > { %v3787_v29 = vadd.f32 %v4781_v61, %v3755_v63  ;;  %v4533_v12 = vpop.f32.mrf.mxu1  ;;  %v3922_v47 = vadd.f32 %v6490_v36, %v3886_v37  ;;  %v3690_v55 = vadd.f32 %v3658_v10, %v3431_v25  ;;  %v3760_v58 = vadd.f32 %v6446_v9, %v3721_v57  ;;  %v4787_v61 = vld [vmem:[%s5104_s6 + $0xf0] sm:$0xff] }
 0x275   : > { %v3758_v60 = vadd.f32 %v6446_v9, %v3719_v33  ;;  %3956 = vst [vmem:[%s6518_s18 + $0xb0] sm:$0xff] %v3924_v17  ;;  %vm3821_vm4 = vcmp.ge.f32.partialorder %v3789_v40, 0.0  ;;  %v3857_v15 = vmul.f32 %v6476_v50, %v3789_v40  ;;  %v3661_v35 = vadd.f32 %v3435_v32, %v6422_v1  ;;  %v3445_v31 = vpop.f32.mrf.mxu0 }
 0x276   : > { %vm3819_vm5 = vcmp.ge.f32.partialorder %v3787_v29, 0.0  ;;  %v3855_v51 = vmul.f32 %v6476_v50, %v3787_v29  ;;  %v3603_v42 = vpop.f32.mrf.mxu1  ;;  %3954 = vst [vmem:[%s6518_s18 + $0xa0] sm:$0xff] %v3922_v47  ;;  %v3792_v44 = vadd.f32 %v4782_v53, %v3760_v58  ;;  %v3722_v22 = vadd.f32 %v4533_v12, %v3690_v55 }
 0x277   : > { %v3790_v10 = vadd.f32 %v4783_v30, %v3758_v60  ;;  %v3889_v52 = vsel %vm3821_vm4, %v3789_v40, %v3857_v15  ;;  %v3691_v43 = vadd.f32 %v3659_v41, %v3437_v2  ;;  %v3720_v8 = vadd.f32 %v6659_v13, %v3603_v42  ;;  %v3446_v19 = vpop.f32.mrf.mxu0  ;;  %v4788_v42 = vld [vmem:[%s5104_s6 + $0xe8] sm:$0xff] }
 0x278   : > { %v3887_v4 = vsel %vm3819_vm5, %v3787_v29, %v3855_v51  ;;  %v4536_v28 = vpop.f32.mrf.mxu1  ;;  %v3925_v25 = vadd.f32 %v6490_v36, %v3889_v52  ;;  %vm3824_vm6 = vcmp.ge.f32.partialorder %v3792_v44, 0.0  ;;  %v3860_v1 = vmul.f32 %v6476_v50, %v3792_v44 }
 0x279   : > { %v3923_v62 = vadd.f32 %v6490_v36, %v3887_v4  ;;  %vm3822_vm7 = vcmp.ge.f32.partialorder %v3790_v10, 0.0  ;;  %v3858_v54 = vmul.f32 %v6476_v50, %v3790_v10  ;;  %v3761_v16 = vadd.f32 %v6446_v9, %v3722_v22  ;;  %v3448_v23 = vpop.f32.mrf.mxu0  ;;  %v4789_v22 = vld [vmem:[%s5104_s6 + $0xf8] sm:$0xff] }
 0x27a   : > { %v3759_v41 = vadd.f32 %v6446_v9, %v3720_v8  ;;  %v3616_v5 = vpop.f32.mrf.mxu1  ;;  %3957 = vst [vmem:[%s6518_s18 + $0xb8] sm:$0xff] %v3925_v25  ;;  %v3892_v13 = vsel %vm3824_vm6, %v3792_v44, %v3860_v1  ;;  %v3662_v14 = vadd.f32 %v3439_v24, %v6425_v39  ;;  %v3693_v56 = vadd.f32 %v3661_v35, %v3446_v19 }
 0x27b   : > { %3955 = vst [vmem:[%s6518_s18 + $0xa8] sm:$0xff] %v3923_v62  ;;  %v3723_v11 = vadd.f32 %v3691_v43, %v3616_v5  ;;  %v3928_v32 = vadd.f32 %v6490_v36, %v3892_v13  ;;  %v3890_v38 = vsel %vm3822_vm7, %v3790_v10, %v3858_v54  ;;  %v3793_v21 = vadd.f32 %v4784_v45, %v3761_v16  ;;  %v3449_v34 = vpop.f32.mrf.mxu0 }
 0x27c   : > { %v3791_v6 = vadd.f32 %v4785_v27, %v3759_v41  ;;  %v4537_v20 = vpop.f32.mrf.mxu1  ;;  %v3926_v48 = vadd.f32 %v6490_v36, %v3890_v38  ;;  %v3692_v18 = vadd.f32 %v3660_v3, %v3441_v49  ;;  %v3725_v2 = vadd.f32 %v4536_v28, %v3693_v56 }
 0x27d   : > { %v3762_v39 = vadd.f32 %v6446_v9, %v3723_v11  ;;  %3960 = vst [vmem:[%s6518_s18 + $0xd0] sm:$0xff] %v3928_v32  ;;  %vm3825_vm8 = vcmp.ge.f32.partialorder %v3793_v21, 0.0  ;;  %v3861_v46 = vmul.f32 %v6476_v50, %v3793_v21  ;;  %v3694_v3 = vadd.f32 %v3662_v14, %v3449_v34  ;;  %v3453_v24 = vpop.f32.mrf.mxu0 }
 0x27e   : > { %vm3823_vm9 = vcmp.ge.f32.partialorder %v3791_v6, 0.0  ;;  %v3859_v63 = vmul.f32 %v6476_v50, %v3791_v6  ;;  %v3619_v0 = vpop.f32.mrf.mxu1  ;;  %3958 = vst [vmem:[%s6518_s18 + $0xc0] sm:$0xff] %v3926_v48  ;;  %v3764_v59 = vadd.f32 %v6446_v9, %v3725_v2 }
 0x27f   : > { %v3794_v57 = vadd.f32 %v4786_v7, %v3762_v39  ;;  %v3724_v33 = vadd.f32 %v3692_v18, %v3619_v0  ;;  %v3893_v17 = vsel %vm3825_vm8, %v3793_v21, %v3861_v46  ;;  %v3454_v12 = vpop.f32.mrf.mxu0  ;;  %v3726_v55 = vadd.f32 %v4537_v20, %v3694_v3 }
 0x280   : > { %v3891_v37 = vsel %vm3823_vm9, %v3791_v6, %v3859_v63  ;;  %v3929_v26 = vadd.f32 %v6490_v36, %v3893_v17  ;;  %v3796_v29 = vadd.f32 %v4787_v61, %v3764_v59 }
 0x281   : > { %v3927_v40 = vadd.f32 %v6490_v36, %v3891_v37  ;;  %vm3826_vm10 = vcmp.ge.f32.partialorder %v3794_v57, 0.0  ;;  %v3862_v47 = vmul.f32 %v6476_v50, %v3794_v57  ;;  %v3763_v58 = vadd.f32 %v6446_v9, %v3724_v33  ;;  %v3455_v49 = vpop.f32.mrf.mxu0 }
 0x282   : > { %3961 = vst [vmem:[%s6518_s18 + $0xd8] sm:$0xff] %v3929_v26  ;;  %vm3828_vm11 = vcmp.ge.f32.partialorder %v3796_v29, 0.0  ;;  %v3864_v60 = vmul.f32 %v6476_v50, %v3796_v29  ;;  %v3765_v51 = vadd.f32 %v6446_v9, %v3726_v55 }
 0x283   : > { %3959 = vst [vmem:[%s6518_s18 + $0xc8] sm:$0xff] %v3927_v40  ;;  %v3894_v15 = vsel %vm3826_vm10, %v3794_v57, %v3862_v47  ;;  %v3795_v35 = vadd.f32 %v4788_v42, %v3763_v58  ;;  %v3456_v30 = vpop.f32.mrf.mxu0 }
 0x284   : > { %v3896_v53 = vsel %vm3828_vm11, %v3796_v29, %v3864_v60  ;;  %v3930_v44 = vadd.f32 %v6490_v36, %v3894_v15  ;;  %v3797_v31 = vadd.f32 %v4789_v22, %v3765_v51 }
 0x285   : > { %v3932_v10 = vadd.f32 %v6490_v36, %v3896_v53  ;;  %vm3827_vm12 = vcmp.ge.f32.partialorder %v3795_v35, 0.0  ;;  %v3863_v52 = vmul.f32 %v6476_v50, %v3795_v35 }
 0x286   : > { %3962 = vst [vmem:[%s6518_s18 + $0xe0] sm:$0xff] %v3930_v44  ;;  %vm3829_vm13 = vcmp.ge.f32.partialorder %v3797_v31, 0.0  ;;  %v3865_v9 = vmul.f32 %v6476_v50, %v3797_v31 }
 0x287   : > { %3964 = vst [vmem:[%s6518_s18 + $0xf0] sm:$0xff] %v3932_v10  ;;  %v3895_v4 = vsel %vm3827_vm12, %v3795_v35, %v3863_v52 }
 0x288   : > { %v3931_v43 = vadd.f32 %v6490_v36, %v3895_v4  ;;  %v3897_v8 = vsel %vm3829_vm13, %v3797_v31, %v3865_v9 }
 0x289   : > { %v3933_v28 = vadd.f32 %v6490_v36, %v3897_v8 }
 0x28a   : > { %3963 = vst [vmem:[%s6518_s18 + $0xe8] sm:$0xff] %v3931_v43 }
 0x28b   : > { %3965 = vst [vmem:[%s6518_s18 + $0xf8] sm:$0xff] %v3933_v28 }
 0x28c   : > { %4883 = shalt.err (!%p4880_p9)
}
 0x28d   : > { %s4884_s22 = scalar_lea.hbm %s6737_s29, 4096  ;;  %s4888_s26 = scalar_lea.hbm %s6788_s3, 8192 }
 0x28e   : > { %p4885_p13 = scmp.ne.s32.totalorder %s6737_s29, %s4884_s22  ;;  %p4889_p4 = scmp.lt.s32.totalorder %s6737_s29, %s6788_s3 }
 0x28f   : > { %p4890_p8 = scmp.lt.s32.totalorder %s4888_s26, %s4884_s22 }
 0x290   : > { %p4886_p5 = pnand %p4885_p13, %p6833_p10 }
 0x291   : > { %p4891_p3 = por %p4890_p8, %p4889_p4 }
 0x292   : > { %p4887_p0 = pneg %p4886_p5 }
 0x294   : > { %p4892_p11 = pnand %p4891_p3, %p4887_p0 }
 0x296   : > { %4895 = shalt.err (!%p4892_p11)
}
 0x297   : > { %s4949_s6 = smov 128   ;;  %s4950_s18 = smov 8  }
 0x298   : > { %4564 = dma.vmem_to_hbm [thread:$0]  (%p6833_p10), %s6739_s25, 4096, %s6737_s29, %s3967_s16, %s4949_s6, %s4949_s6, %s4950_s18  }
 0x299 PF: > { %s3995_s20 = sand.u32 1, %s4926_s12   ;;  %p6834_p1 = scmp.ne.s32.totalorder %s6794_s19, 0 }
 0x29a   : > { %p6835_p2 = scmp.ge.s32.totalorder %s4938_s15, 2  ;;  %s3996_s27 = scalar_lea.sflag [#allocation5], %s3995_s20 }
 0x29c   : > { %p4578_p6 = pnand %p6835_p2, %p6834_p1 }
 0x29e   : > { %p4579_p12 = pneg %p4578_p6 }
 0x2a0   : > { %4921 = dma.done.wait (%p4579_p12), %s3996_s27, 4096  }
 0x2a1   : > { %4923 = vsyncadd (%p4579_p12), %s3996_s27, 4294963200  ;;  %p17_p7 = scmp.ge.s32.totalorder %s5043_s7, 4   ;;  %s6836_s12 = smov %s4930_s13 }
 0x2a2   : > { %s6837_s13 = smov %s4934_s14  ;;  %s6838_s14 = smov %s5059_s11 }
 0x2a3   : > { %s6839_s15 = smov %s5043_s7  ;;  %19 = sbr.rel (!%p17_p7) target bundleno = 6 (0x6), region = 88 }
 0x2a8   :  { %4001 = vsyncpa [#allocation4], 1 }
 0x2a9   :  { %4003 = vsyncpa [#allocation4 + $0x1], 1 }
 0x2aa   :  { %4004 = vsyncpa [#allocation7], 1 }
 0x2ab   :  { %4005 = vsyncpa [#allocation5], 1 }
 0x2ac   :  { %4007 = vsyncpa [#allocation5 + $0x1], 1 }

</bundles_post_ra>
